<compile_context>
chip_gen: v5e
topology: v5e:2x2
jax: 0.10.0
libtpu: 0.0.40
codegen_flags: <defaults>
</compile_context>

<pallas_src>
import functools

import jax
import jax.numpy as jnp
from jax.experimental import pallas as pl
from jax.experimental.pallas import tpu as pltpu

NEG_INF = -1e9
LN_EPS = 1e-5

# >= 2 keeps both v7x TensorCores busy; set to 1 on v5e/v6e (single TC) to fold
# the whole batch into one block.
NUM_PARALLEL_BLOCKS = 2


def _num_grid_blocks(batch):
    if batch % NUM_PARALLEL_BLOCKS == 0:
        return NUM_PARALLEL_BLOCKS
    return 1


# --------------------------------------------------------------------------
# In-kernel helpers (traced inside Pallas kernels)
# --------------------------------------------------------------------------

def _layernorm(x, gamma, beta, eps):
    # x: [M, D] f32, gamma/beta: [1, D] f32
    mu = jnp.mean(x, axis=-1, keepdims=True)
    var = jnp.mean((x - mu) ** 2, axis=-1, keepdims=True)
    return (x - mu) * jax.lax.rsqrt(var + eps) * gamma + beta


def _mha(q_all, k_all, v_all, bias, wo, num_heads, head_dim):
    """Multi-head attention for one batch row.

    q_all : [Sq, D] f32, already scaled by 1/sqrt(head_dim)
    k_all, v_all : [Sk, D] f32
    bias  : [Sq, Sk] f32 additive mask (built once, reused by every head)
    wo    : [D, D] bf16 output projection
    Returns [Sq, D] f32 = concat_h(softmax(q_h k_h^T + bias) v_h) @ wo,
    accumulated head-by-head (no lane-axis concatenate).
    """
    # TODO(synk): when H / S scale up, replace the static head loop with a
    # single head-batched dot_general on an [H, S, Dh] layout.
    sq = q_all.shape[0]
    d_out = wo.shape[1]
    acc = jnp.zeros((sq, d_out), jnp.float32)
    for h in range(num_heads):                     # static unroll, H is small
        sl = slice(h * head_dim, (h + 1) * head_dim)
        q = q_all[:, sl].astype(jnp.bfloat16)
        k = k_all[:, sl].astype(jnp.bfloat16)
        v = v_all[:, sl].astype(jnp.bfloat16)
        # q @ k^T without an explicit transpose: contract the last dims.
        s = jax.lax.dot_general(q, k, (((1,), (1,)), ((), ())),
                                preferred_element_type=jnp.float32)
        s = s + bias
        m = jnp.max(s, axis=-1, keepdims=True)
        p = jnp.exp(s - m)
        p = p / jnp.sum(p, axis=-1, keepdims=True)      # exact softmax
        ctx = jnp.dot(p.astype(jnp.bfloat16), v, preferred_element_type=jnp.float32)
        acc = acc + jnp.dot(ctx.astype(jnp.bfloat16), wo[sl, :],
                            preferred_element_type=jnp.float32)
    return acc


# --------------------------------------------------------------------------
# Fused Pallas kernels (one per transformer layer, grid over batch chunks)
# --------------------------------------------------------------------------

def _encoder_layer_kernel(lens_ref,                              # scalar prefetch (SMEM)
                          x_ref,
                          g1_ref, b1_ref, wqkv_ref, bqkv_ref, wo_ref, bo_ref,
                          g2_ref, b2_ref, w1_ref, bw1_ref, w2_ref, bw2_ref,
                          fg_ref, fb_ref,
                          o_ref, *, num_heads, eps):
    Bc, S, D = x_ref.shape
    Dh = D // num_heads
    scale = 1.0 / (Dh ** 0.5)
    b0 = pl.program_id(0) * Bc

    x = x_ref[...].astype(jnp.float32).reshape(Bc * S, D)          # residual base

    # ---- self-attention ----
    h = _layernorm(x, g1_ref[...], b1_ref[...], eps)
    qkv = jnp.dot(h.astype(wqkv_ref.dtype), wqkv_ref[...],
                  preferred_element_type=jnp.float32) + bqkv_ref[...]   # [Bc*S, 3D]
    q_all = qkv[:, :D] * scale
    k_all = qkv[:, D:2 * D]
    v_all = qkv[:, 2 * D:]
    wo = wo_ref[...]

    outs = []
    for i in range(Bc):                                            # static, Bc small
        length = lens_ref[b0 + i]
        col = jax.lax.broadcasted_iota(jnp.int32, (S, S), 1)
        bias = jnp.where(col < length, 0.0, NEG_INF)               # built once per row
        rr = slice(i * S, (i + 1) * S)
        outs.append(_mha(q_all[rr], k_all[rr], v_all[rr], bias, wo, num_heads, Dh))
    attn = outs[0] if Bc == 1 else jnp.concatenate(outs, axis=0)
    x = x + attn + bo_ref[...]

    # ---- FFN + final LN (the [M, F] intermediate never leaves VMEM) ----
    h2 = _layernorm(x, g2_ref[...], b2_ref[...], eps)
    ff = jnp.dot(h2.astype(w1_ref.dtype), w1_ref[...],
                 preferred_element_type=jnp.float32) + bw1_ref[...]
    ff = jnp.maximum(ff, 0.0)
    ff2 = jnp.dot(ff.astype(w2_ref.dtype), w2_ref[...],
                  preferred_element_type=jnp.float32) + bw2_ref[...]
    y = x + ff2
    y = _layernorm(y, fg_ref[...], fb_ref[...], eps)
    o_ref[...] = y.reshape(Bc, S, D).astype(o_ref.dtype)


def _decoder_layer_kernel(enc_lens_ref, dec_lens_ref,             # scalar prefetch (SMEM)
                          y_ref, enc_ref,
                          sg_ref, sb_ref, swqkv_ref, sbqkv_ref, swo_ref, sbo_ref,
                          cg_ref, cb_ref, cwq_ref, cbq_ref, cwkv_ref, cbkv_ref,
                          cwo_ref, cbo_ref,
                          fg_ref, fb_ref, w1_ref, bw1_ref, w2_ref, bw2_ref,
                          fin_g_ref, fin_b_ref,
                          o_ref, *, num_heads, eps):
    Bc, T, D = y_ref.shape
    S = enc_ref.shape[1]
    Dh = D // num_heads
    scale = 1.0 / (Dh ** 0.5)
    b0 = pl.program_id(0) * Bc

    y = y_ref[...].astype(jnp.float32).reshape(Bc * T, D)          # decoder stream
    enc = enc_ref[...].reshape(Bc * S, D)                          # bf16, feeds KV matmul

    # ---- causal self-attention ----
    h = _layernorm(y, sg_ref[...], sb_ref[...], eps)
    qkv = jnp.dot(h.astype(swqkv_ref.dtype), swqkv_ref[...],
                  preferred_element_type=jnp.float32) + sbqkv_ref[...]
    q_all = qkv[:, :D] * scale
    k_all = qkv[:, D:2 * D]
    v_all = qkv[:, 2 * D:]
    swo = swo_ref[...]

    outs = []
    for i in range(Bc):
        dlen = dec_lens_ref[b0 + i]
        col = jax.lax.broadcasted_iota(jnp.int32, (T, T), 1)
        row = jax.lax.broadcasted_iota(jnp.int32, (T, T), 0)
        bias = jnp.where((col < dlen) & (row >= col), 0.0, NEG_INF)
        rr = slice(i * T, (i + 1) * T)
        outs.append(_mha(q_all[rr], k_all[rr], v_all[rr], bias, swo, num_heads, Dh))
    attn = outs[0] if Bc == 1 else jnp.concatenate(outs, axis=0)
    y = y + attn + sbo_ref[...]

    # ---- cross-attention over the encoder hidden state ----
    h = _layernorm(y, cg_ref[...], cb_ref[...], eps)
    q_all = (jnp.dot(h.astype(cwq_ref.dtype), cwq_ref[...],
                     preferred_element_type=jnp.float32) + cbq_ref[...]) * scale
    kv = jnp.dot(enc.astype(cwkv_ref.dtype), cwkv_ref[...],
                 preferred_element_type=jnp.float32) + cbkv_ref[...]    # [Bc*S, 2D]
    k_all = kv[:, :D]
    v_all = kv[:, D:]
    cwo = cwo_ref[...]

    outs = []
    for i in range(Bc):
        elen = enc_lens_ref[b0 + i]
        col = jax.lax.broadcasted_iota(jnp.int32, (T, S), 1)
        bias = jnp.where(col < elen, 0.0, NEG_INF)
        rq = slice(i * T, (i + 1) * T)
        rk = slice(i * S, (i + 1) * S)
        outs.append(_mha(q_all[rq], k_all[rk], v_all[rk], bias, cwo, num_heads, Dh))
    attn = outs[0] if Bc == 1 else jnp.concatenate(outs, axis=0)
    y = y + attn + cbo_ref[...]

    # ---- FFN + final LN ----
    h = _layernorm(y, fg_ref[...], fb_ref[...], eps)
    ff = jnp.dot(h.astype(w1_ref.dtype), w1_ref[...],
                 preferred_element_type=jnp.float32) + bw1_ref[...]
    ff = jnp.maximum(ff, 0.0)
    ff2 = jnp.dot(ff.astype(w2_ref.dtype), w2_ref[...],
                  preferred_element_type=jnp.float32) + bw2_ref[...]
    y = y + ff2
    y = _layernorm(y, fin_g_ref[...], fin_b_ref[...], eps)
    o_ref[...] = y.reshape(Bc, T, D).astype(o_ref.dtype)


# --------------------------------------------------------------------------
# pallas_call wrappers
# --------------------------------------------------------------------------

def encoder_layer(p, x, enc_lens, final_g, final_b, cfg):
    B, S, D = x.shape
    F = cfg.d_ff
    GB = _num_grid_blocks(B)
    Bc = B // GB

    def rep(shape):
        zeros = (0,) * len(shape)
        return pl.BlockSpec(shape, lambda b, lens, _z=zeros: _z)

    kernel = functools.partial(_encoder_layer_kernel,
                               num_heads=cfg.num_heads, eps=LN_EPS)
    return pl.pallas_call(
        kernel,
        out_shape=jax.ShapeDtypeStruct((B, S, D), jnp.bfloat16),
        grid_spec=pltpu.PrefetchScalarGridSpec(
            num_scalar_prefetch=1,                     # enc_lens -> SMEM
            grid=(GB,),
            in_specs=[
                pl.BlockSpec((Bc, S, D), lambda b, lens: (b, 0, 0)),
                rep((1, D)), rep((1, D)),
                rep((D, 3 * D)), rep((1, 3 * D)),
                rep((D, D)), rep((1, D)),
                rep((1, D)), rep((1, D)),
                rep((D, F)), rep((1, F)),
                rep((F, D)), rep((1, D)),
                rep((1, D)), rep((1, D)),
            ],
            out_specs=pl.BlockSpec((Bc, S, D), lambda b, lens: (b, 0, 0)),
        ),
        compiler_params=pltpu.CompilerParams(dimension_semantics=("parallel",)),
    )(enc_lens, x,
      p["ln1_g"], p["ln1_b"], p["wqkv"], p["bqkv"], p["wo"], p["bo"],
      p["ln2_g"], p["ln2_b"], p["w1"], p["b1"], p["w2"], p["b2"],
      final_g, final_b)


def decoder_layer(p, y, enc_hidden, enc_lens, dec_lens, final_g, final_b, cfg):
    B, T, D = y.shape
    S = enc_hidden.shape[1]
    F = cfg.d_ff
    GB = _num_grid_blocks(B)
    Bc = B // GB

    def rep(shape):
        zeros = (0,) * len(shape)
        return pl.BlockSpec(shape, lambda b, el, dl, _z=zeros: _z)

    kernel = functools.partial(_decoder_layer_kernel,
                               num_heads=cfg.num_heads, eps=LN_EPS)
    return pl.pallas_call(
        kernel,
        out_shape=jax.ShapeDtypeStruct((B, T, D), jnp.float32),
        grid_spec=pltpu.PrefetchScalarGridSpec(
            num_scalar_prefetch=2,                     # enc_lens, dec_lens -> SMEM
            grid=(GB,),
            in_specs=[
                pl.BlockSpec((Bc, T, D), lambda b, el, dl: (b, 0, 0)),
                pl.BlockSpec((Bc, S, D), lambda b, el, dl: (b, 0, 0)),
                # self-attn
                rep((1, D)), rep((1, D)),
                rep((D, 3 * D)), rep((1, 3 * D)),
                rep((D, D)), rep((1, D)),
                # cross-attn
                rep((1, D)), rep((1, D)),
                rep((D, D)), rep((1, D)),
                rep((D, 2 * D)), rep((1, 2 * D)),
                rep((D, D)), rep((1, D)),
                # FFN + final LN
                rep((1, D)), rep((1, D)),
                rep((D, F)), rep((1, F)),
                rep((F, D)), rep((1, D)),
                rep((1, D)), rep((1, D)),
            ],
            out_specs=pl.BlockSpec((Bc, T, D), lambda b, el, dl: (b, 0, 0)),
        ),
        compiler_params=pltpu.CompilerParams(dimension_semantics=("parallel",)),
    )(enc_lens, dec_lens, y, enc_hidden,
      p["sln_g"], p["sln_b"], p["swqkv"], p["sbqkv"], p["swo"], p["sbo"],
      p["cln_g"], p["cln_b"], p["cwq"], p["cbq"], p["cwkv"], p["cbkv"],
      p["cwo"], p["cbo"],
      p["fln_g"], p["fln_b"], p["w1"], p["b1"], p["w2"], p["b2"],
      final_g, final_b)


# --------------------------------------------------------------------------
# Model glue (plain JAX): embeddings, mask -> lengths, parameter init
# --------------------------------------------------------------------------

class Config:
    vocab_size = 32
    d_model = 128
    num_heads = 4
    d_ff = 256
    decoder_start_token_id = 1
    pad_token_id = 0


def init_params(key, cfg):
    scale = 0.02
    keys = jax.random.split(key, 24)
    D, F, V = cfg.d_model, cfg.d_ff, cfg.vocab_size
    ki = iter(keys)

    def w(shape, dtype=jnp.bfloat16):
        return (scale * jax.random.normal(next(ki), shape)).astype(dtype)

    def zeros(shape):
        return jnp.zeros(shape, jnp.float32)

    def ones(shape):
        return jnp.ones(shape, jnp.float32)

    params = {
        "enc_embed": w((V, D)),
        "dec_embed": w((V, D)),
        "enc": {
            "ln1_g": ones((1, D)), "ln1_b": zeros((1, D)),
            "wqkv": w((D, 3 * D)), "bqkv": zeros((1, 3 * D)),
            "wo": w((D, D)), "bo": zeros((1, D)),
            "ln2_g": ones((1, D)), "ln2_b": zeros((1, D)),
            "w1": w((D, F)), "b1": zeros((1, F)),
            "w2": w((F, D)), "b2": zeros((1, D)),
        },
        "dec": {
            "sln_g": ones((1, D)), "sln_b": zeros((1, D)),
            "swqkv": w((D, 3 * D)), "sbqkv": zeros((1, 3 * D)),
            "swo": w((D, D)), "sbo": zeros((1, D)),
            "cln_g": ones((1, D)), "cln_b": zeros((1, D)),
            "cwq": w((D, D)), "cbq": zeros((1, D)),
            "cwkv": w((D, 2 * D)), "cbkv": zeros((1, 2 * D)),
            "cwo": w((D, D)), "cbo": zeros((1, D)),
            "fln_g": ones((1, D)), "fln_b": zeros((1, D)),
            "w1": w((D, F)), "b1": zeros((1, F)),
            "w2": w((F, D)), "b2": zeros((1, D)),
        },
        "enc_final_g": ones((1, D)), "enc_final_b": zeros((1, D)),
        "dec_final_g": ones((1, D)), "dec_final_b": zeros((1, D)),
    }
    return params


def _mask_to_lengths(mask):
    # TODO(synk): assumes a contiguous valid-prefix mask (standard padding); an
    # arbitrary 0/1 mask would need the full mask tensor passed to the kernel.
    return jnp.sum(mask.astype(jnp.int32), axis=-1).astype(jnp.int32)


def shift_right(labels, decoder_start_token_id, pad_token_id):
    shifted = jnp.roll(labels, 1, axis=-1)
    shifted = shifted.at[:, 0].set(decoder_start_token_id)
    shifted = jnp.where(shifted == -100, pad_token_id, shifted)
    return shifted


def seq2seq_forward(params, cfg, input_ids, attention_mask=None,
                    decoder_input_ids=None, decoder_attention_mask=None,
                    labels=None):
    """Mirrors Seq2SeqModel.forward: encoder -> last_hidden_state -> (shift_right) -> decoder."""
    B, S = input_ids.shape
    if attention_mask is None:
        attention_mask = jnp.ones((B, S), jnp.int32)
    enc_lens = _mask_to_lengths(attention_mask)

    x = jnp.take(params["enc_embed"], input_ids, axis=0)            # [B,S,D] bf16
    embed = encoder_forward = encoder_layer(
        params["enc"], x, enc_lens,
        params["enc_final_g"], params["enc_final_b"], cfg)          # last_hidden_state (bf16)

    if labels is not None and decoder_input_ids is None:
        decoder_input_ids = shift_right(labels, cfg.decoder_start_token_id,
                                        cfg.pad_token_id)
    T = decoder_input_ids.shape[1]
    if decoder_attention_mask is None:
        decoder_attention_mask = jnp.ones((B, T), jnp.int32)
    dec_lens = _mask_to_lengths(decoder_attention_mask)

    y = jnp.take(params["dec_embed"], decoder_input_ids, axis=0)    # [B,T,D] bf16
    output = decoder_layer(params["dec"], y, embed, enc_lens, dec_lens,
                           params["dec_final_g"], params["dec_final_b"], cfg)
    # TODO(synk): output_hidden_states / output_attentions / past_key_values /
    # use_cache / head_mask plumbing of the HF-style dict output is config glue
    # with no kernel equivalent; we return the decoder last_hidden_state only.
    return output


# --------------------------------------------------------------------------
# Main
# --------------------------------------------------------------------------

if __name__ == "__main__":
    cfg = Config()
    key = jax.random.PRNGKey(0)
    pkey, k1, k2 = jax.random.split(key, 3)

    params = init_params(pkey, cfg)

    B, S, T = 2, 8, 8
    input_ids = jax.random.randint(k1, (B, S), 2, cfg.vocab_size, dtype=jnp.int32)
    attention_mask = jnp.ones((B, S), jnp.int32).at[1, 6:].set(0)   # some padding
    labels = jax.random.randint(k2, (B, T), 2, cfg.vocab_size, dtype=jnp.int32)
    decoder_attention_mask = jnp.ones((B, T), jnp.int32)

    fwd = jax.jit(functools.partial(seq2seq_forward, params, cfg))
    out = fwd(input_ids, attention_mask=attention_mask, labels=labels,
              decoder_attention_mask=decoder_attention_mask)
    out = jax.block_until_ready(out)

    assert out.shape == (B, T, cfg.d_model)
    assert jnp.all(jnp.isfinite(out))
    print("KERNEL_OK")
</pallas_src>

<mosaic_0001>
module attributes {stable_mosaic.version = 11 : i64} {
  func.func @_decoder_layer_kernel(%arg0: i32, %arg1: memref<2xi32, #tpu.memory_space<smem>>, %arg2: memref<2xi32, #tpu.memory_space<smem>>, %arg3: memref<1x8x128xbf16, #tpu.memory_space<vmem>>, %arg4: memref<1x8x128xbf16, #tpu.memory_space<vmem>>, %arg5: memref<1x128xf32, #tpu.memory_space<vmem>>, %arg6: memref<1x128xf32, #tpu.memory_space<vmem>>, %arg7: memref<128x384xbf16, #tpu.memory_space<vmem>>, %arg8: memref<1x384xf32, #tpu.memory_space<vmem>>, %arg9: memref<128x128xbf16, #tpu.memory_space<vmem>>, %arg10: memref<1x128xf32, #tpu.memory_space<vmem>>, %arg11: memref<1x128xf32, #tpu.memory_space<vmem>>, %arg12: memref<1x128xf32, #tpu.memory_space<vmem>>, %arg13: memref<128x128xbf16, #tpu.memory_space<vmem>>, %arg14: memref<1x128xf32, #tpu.memory_space<vmem>>, %arg15: memref<128x256xbf16, #tpu.memory_space<vmem>>, %arg16: memref<1x256xf32, #tpu.memory_space<vmem>>, %arg17: memref<128x128xbf16, #tpu.memory_space<vmem>>, %arg18: memref<1x128xf32, #tpu.memory_space<vmem>>, %arg19: memref<1x128xf32, #tpu.memory_space<vmem>>, %arg20: memref<1x128xf32, #tpu.memory_space<vmem>>, %arg21: memref<128x256xbf16, #tpu.memory_space<vmem>>, %arg22: memref<1x256xf32, #tpu.memory_space<vmem>>, %arg23: memref<256x128xbf16, #tpu.memory_space<vmem>>, %arg24: memref<1x128xf32, #tpu.memory_space<vmem>>, %arg25: memref<1x128xf32, #tpu.memory_space<vmem>>, %arg26: memref<1x128xf32, #tpu.memory_space<vmem>>, %arg27: memref<1x8x128xf32, #tpu.memory_space<vmem>>) attributes {dimension_semantics = [#tpu.dimension_semantics<parallel>], iteration_bounds = array<i64: 2>, scalar_prefetch = 2 : i64, scratch_operands = 0 : i64, tpu.core_type = #tpu.core_type<tc>, window_params = [{transform_indices = @transform_0, window_bounds = array<i64: 1, 8, 128>}, {transform_indices = @transform_1, window_bounds = array<i64: 1, 8, 128>}, {pipeline_mode = #tpu.pipeline_mode<synchronous>, transform_indices = @transform_2, window_bounds = array<i64: 1, 128>}, {pipeline_mode = #tpu.pipeline_mode<synchronous>, transform_indices = @transform_3, window_bounds = array<i64: 1, 128>}, {pipeline_mode = #tpu.pipeline_mode<synchronous>, transform_indices = @transform_4, window_bounds = array<i64: 128, 384>}, {pipeline_mode = #tpu.pipeline_mode<synchronous>, transform_indices = @transform_5, window_bounds = array<i64: 1, 384>}, {pipeline_mode = #tpu.pipeline_mode<synchronous>, transform_indices = @transform_6, window_bounds = array<i64: 128, 128>}, {pipeline_mode = #tpu.pipeline_mode<synchronous>, transform_indices = @transform_7, window_bounds = array<i64: 1, 128>}, {pipeline_mode = #tpu.pipeline_mode<synchronous>, transform_indices = @transform_8, window_bounds = array<i64: 1, 128>}, {pipeline_mode = #tpu.pipeline_mode<synchronous>, transform_indices = @transform_9, window_bounds = array<i64: 1, 128>}, {pipeline_mode = #tpu.pipeline_mode<synchronous>, transform_indices = @transform_10, window_bounds = array<i64: 128, 128>}, {pipeline_mode = #tpu.pipeline_mode<synchronous>, transform_indices = @transform_11, window_bounds = array<i64: 1, 128>}, {pipeline_mode = #tpu.pipeline_mode<synchronous>, transform_indices = @transform_12, window_bounds = array<i64: 128, 256>}, {pipeline_mode = #tpu.pipeline_mode<synchronous>, transform_indices = @transform_13, window_bounds = array<i64: 1, 256>}, {pipeline_mode = #tpu.pipeline_mode<synchronous>, transform_indices = @transform_14, window_bounds = array<i64: 128, 128>}, {pipeline_mode = #tpu.pipeline_mode<synchronous>, transform_indices = @transform_15, window_bounds = array<i64: 1, 128>}, {pipeline_mode = #tpu.pipeline_mode<synchronous>, transform_indices = @transform_16, window_bounds = array<i64: 1, 128>}, {pipeline_mode = #tpu.pipeline_mode<synchronous>, transform_indices = @transform_17, window_bounds = array<i64: 1, 128>}, {pipeline_mode = #tpu.pipeline_mode<synchronous>, transform_indices = @transform_18, window_bounds = array<i64: 128, 256>}, {pipeline_mode = #tpu.pipeline_mode<synchronous>, transform_indices = @transform_19, window_bounds = array<i64: 1, 256>}, {pipeline_mode = #tpu.pipeline_mode<synchronous>, transform_indices = @transform_20, window_bounds = array<i64: 256, 128>}, {pipeline_mode = #tpu.pipeline_mode<synchronous>, transform_indices = @transform_21, window_bounds = array<i64: 1, 128>}, {pipeline_mode = #tpu.pipeline_mode<synchronous>, transform_indices = @transform_22, window_bounds = array<i64: 1, 128>}, {pipeline_mode = #tpu.pipeline_mode<synchronous>, transform_indices = @transform_23, window_bounds = array<i64: 1, 128>}, {transform_indices = @transform_24, window_bounds = array<i64: 1, 8, 128>}]} {
    %c1_i32 = arith.constant 1 : i32
    %0 = arith.muli %arg0, %c1_i32 : i32
    %c0 = arith.constant 0 : index
    %c0_0 = arith.constant 0 : index
    %c0_1 = arith.constant 0 : index
    %1 = vector.load %arg3[%c0, %c0_0, %c0_1] : memref<1x8x128xbf16, #tpu.memory_space<vmem>>, vector<1x8x128xbf16>
    %2 = arith.extf %1 : vector<1x8x128xbf16> to vector<1x8x128xf32>
    %3 = vector.shape_cast %2 : vector<1x8x128xf32> to vector<8x128xf32>
    %c0_2 = arith.constant 0 : index
    %c0_3 = arith.constant 0 : index
    %c0_4 = arith.constant 0 : index
    %4 = vector.load %arg4[%c0_2, %c0_3, %c0_4] : memref<1x8x128xbf16, #tpu.memory_space<vmem>>, vector<1x8x128xbf16>
    %5 = vector.shape_cast %4 : vector<1x8x128xbf16> to vector<8x128xbf16>
    %c0_5 = arith.constant 0 : index
    %c0_6 = arith.constant 0 : index
    %6 = vector.load %arg5[%c0_5, %c0_6] : memref<1x128xf32, #tpu.memory_space<vmem>>, vector<1x128xf32>
    %c0_7 = arith.constant 0 : index
    %c0_8 = arith.constant 0 : index
    %7 = vector.load %arg6[%c0_7, %c0_8] : memref<1x128xf32, #tpu.memory_space<vmem>>, vector<1x128xf32>
    %cst = arith.constant dense<0.000000e+00> : vector<8xf32>
    %8 = vector.multi_reduction <add>, %3, %cst [1] : vector<8x128xf32> to vector<8xf32>
    %9 = vector.shape_cast %8 : vector<8xf32> to vector<8x1xf32>
    %cst_9 = arith.constant 1.280000e+02 : f32
    %10 = vector.broadcast %cst_9 : f32 to vector<8x1xf32>
    %11 = arith.divf %9, %10 : vector<8x1xf32>
    %12 = vector.broadcast %11 : vector<8x1xf32> to vector<8x128xf32>
    %13 = arith.subf %3, %12 : vector<8x128xf32>
    %14 = arith.mulf %13, %13 : vector<8x128xf32>
    %cst_10 = arith.constant dense<0.000000e+00> : vector<8xf32>
    %15 = vector.multi_reduction <add>, %14, %cst_10 [1] : vector<8x128xf32> to vector<8xf32>
    %16 = vector.shape_cast %15 : vector<8xf32> to vector<8x1xf32>
    %cst_11 = arith.constant 1.280000e+02 : f32
    %17 = vector.broadcast %cst_11 : f32 to vector<8x1xf32>
    %18 = arith.divf %16, %17 : vector<8x1xf32>
    %19 = vector.broadcast %11 : vector<8x1xf32> to vector<8x128xf32>
    %20 = arith.subf %3, %19 : vector<8x128xf32>
    %cst_12 = arith.constant 9.99999974E-6 : f32
    %21 = vector.broadcast %cst_12 : f32 to vector<8x1xf32>
    %22 = arith.addf %18, %21 : vector<8x1xf32>
    %23 = math.rsqrt %22 : vector<8x1xf32>
    %24 = vector.broadcast %23 : vector<8x1xf32> to vector<8x128xf32>
    %25 = arith.mulf %20, %24 : vector<8x128xf32>
    %26 = vector.broadcast %6 : vector<1x128xf32> to vector<8x128xf32>
    %27 = arith.mulf %25, %26 : vector<8x128xf32>
    %28 = vector.broadcast %7 : vector<1x128xf32> to vector<8x128xf32>
    %29 = arith.addf %27, %28 : vector<8x128xf32>
    %30 = arith.truncf %29 : vector<8x128xf32> to vector<8x128xbf16>
    %c0_13 = arith.constant 0 : index
    %c0_14 = arith.constant 0 : index
    %31 = vector.load %arg7[%c0_13, %c0_14] : memref<128x384xbf16, #tpu.memory_space<vmem>>, vector<128x384xbf16>
    %cst_15 = arith.constant dense<0.000000e+00> : vector<8x384xf32>
    %32 = tpu.matmul %30, %31, %cst_15 {dimension_numbers = #tpu.dot_dimension_numbers<[1], [0], [0], [1], [0, 0, 1, 1], [], []>} : vector<8x128xbf16>, vector<128x384xbf16>, vector<8x384xf32> -> vector<8x384xf32>
    %c0_16 = arith.constant 0 : index
    %c0_17 = arith.constant 0 : index
    %33 = vector.load %arg8[%c0_16, %c0_17] : memref<1x384xf32, #tpu.memory_space<vmem>>, vector<1x384xf32>
    %34 = vector.broadcast %33 : vector<1x384xf32> to vector<8x384xf32>
    %35 = arith.addf %32, %34 : vector<8x384xf32>
    %36 = vector.extract_strided_slice %35 {offsets = [0, 0], sizes = [8, 128], strides = [1, 1]} : vector<8x384xf32> to vector<8x128xf32>
    %cst_18 = arith.constant 0.176776692 : f32
    %37 = vector.broadcast %cst_18 : f32 to vector<8x128xf32>
    %38 = arith.mulf %36, %37 : vector<8x128xf32>
    %39 = vector.extract_strided_slice %35 {offsets = [0, 128], sizes = [8, 128], strides = [1, 1]} : vector<8x384xf32> to vector<8x128xf32>
    %40 = vector.extract_strided_slice %35 {offsets = [0, 256], sizes = [8, 128], strides = [1, 1]} : vector<8x384xf32> to vector<8x128xf32>
    %c0_19 = arith.constant 0 : index
    %c0_20 = arith.constant 0 : index
    %41 = vector.load %arg9[%c0_19, %c0_20] : memref<128x128xbf16, #tpu.memory_space<vmem>>, vector<128x128xbf16>
    %c0_i32 = arith.constant 0 : i32
    %42 = arith.addi %0, %c0_i32 : i32
    %43 = arith.index_cast %42 : i32 to index
    %44 = memref.load %arg2[%43] : memref<2xi32, #tpu.memory_space<smem>>
    %45 = tpu.iota {dimensions = array<i32: 1>} : vector<8x8xi32>
    %46 = tpu.iota {dimensions = array<i32: 0>} : vector<8x8xi32>
    %47 = vector.broadcast %44 : i32 to vector<8x8xi32>
    %48 = arith.cmpi slt, %45, %47 : vector<8x8xi32>
    %49 = arith.cmpi sge, %46, %45 : vector<8x8xi32>
    %50 = arith.andi %48, %49 : vector<8x8xi1>
    %cst_21 = arith.constant 0.000000e+00 : f32
    %cst_22 = arith.constant -1.000000e+09 : f32
    %51 = vector.broadcast %cst_21 : f32 to vector<8x8xf32>
    %52 = vector.broadcast %cst_22 : f32 to vector<8x8xf32>
    %53 = arith.select %50, %51, %52 : vector<8x8xi1>, vector<8x8xf32>
    %cst_23 = arith.constant 0.000000e+00 : f32
    %54 = vector.broadcast %cst_23 : f32 to vector<8x128xf32>
    %55 = vector.extract_strided_slice %38 {offsets = [0, 0], sizes = [8, 32], strides = [1, 1]} : vector<8x128xf32> to vector<8x32xf32>
    %56 = arith.truncf %55 : vector<8x32xf32> to vector<8x32xbf16>
    %57 = vector.extract_strided_slice %39 {offsets = [0, 0], sizes = [8, 32], strides = [1, 1]} : vector<8x128xf32> to vector<8x32xf32>
    %58 = arith.truncf %57 : vector<8x32xf32> to vector<8x32xbf16>
    %59 = vector.extract_strided_slice %40 {offsets = [0, 0], sizes = [8, 32], strides = [1, 1]} : vector<8x128xf32> to vector<8x32xf32>
    %60 = arith.truncf %59 : vector<8x32xf32> to vector<8x32xbf16>
    %cst_24 = arith.constant dense<0.000000e+00> : vector<8x8xf32>
    %61 = tpu.matmul %56, %58, %cst_24 {dimension_numbers = #tpu.dot_dimension_numbers<[1], [1], [0], [0], [0, 0, 1, 0], [], []>} : vector<8x32xbf16>, vector<8x32xbf16>, vector<8x8xf32> -> vector<8x8xf32>
    %62 = arith.addf %61, %53 : vector<8x8xf32>
    %cst_25 = arith.constant dense<0xFF800000> : vector<8xf32>
    %63 = vector.multi_reduction <maximumf>, %62, %cst_25 [1] : vector<8x8xf32> to vector<8xf32>
    %64 = vector.shape_cast %63 : vector<8xf32> to vector<8x1xf32>
    %65 = vector.broadcast %64 : vector<8x1xf32> to vector<8x8xf32>
    %66 = arith.subf %62, %65 : vector<8x8xf32>
    %67 = math.exp %66 : vector<8x8xf32>
    %cst_26 = arith.constant dense<0.000000e+00> : vector<8xf32>
    %68 = vector.multi_reduction <add>, %67, %cst_26 [1] : vector<8x8xf32> to vector<8xf32>
    %69 = vector.shape_cast %68 : vector<8xf32> to vector<8x1xf32>
    %70 = vector.broadcast %69 : vector<8x1xf32> to vector<8x8xf32>
    %71 = arith.divf %67, %70 : vector<8x8xf32>
    %72 = arith.truncf %71 : vector<8x8xf32> to vector<8x8xbf16>
    %cst_27 = arith.constant dense<0.000000e+00> : vector<8x32xf32>
    %73 = tpu.matmul %72, %60, %cst_27 {dimension_numbers = #tpu.dot_dimension_numbers<[1], [0], [0], [1], [0, 0, 1, 1], [], []>} : vector<8x8xbf16>, vector<8x32xbf16>, vector<8x32xf32> -> vector<8x32xf32>
    %74 = arith.truncf %73 : vector<8x32xf32> to vector<8x32xbf16>
    %75 = vector.extract_strided_slice %41 {offsets = [0, 0], sizes = [32, 128], strides = [1, 1]} : vector<128x128xbf16> to vector<32x128xbf16>
    %cst_28 = arith.constant dense<0.000000e+00> : vector<8x128xf32>
    %76 = tpu.matmul %74, %75, %cst_28 {dimension_numbers = #tpu.dot_dimension_numbers<[1], [0], [0], [1], [0, 0, 1, 1], [], []>} : vector<8x32xbf16>, vector<32x128xbf16>, vector<8x128xf32> -> vector<8x128xf32>
    %77 = arith.addf %54, %76 : vector<8x128xf32>
    %78 = vector.extract_strided_slice %38 {offsets = [0, 32], sizes = [8, 32], strides = [1, 1]} : vector<8x128xf32> to vector<8x32xf32>
    %79 = arith.truncf %78 : vector<8x32xf32> to vector<8x32xbf16>
    %80 = vector.extract_strided_slice %39 {offsets = [0, 32], sizes = [8, 32], strides = [1, 1]} : vector<8x128xf32> to vector<8x32xf32>
    %81 = arith.truncf %80 : vector<8x32xf32> to vector<8x32xbf16>
    %82 = vector.extract_strided_slice %40 {offsets = [0, 32], sizes = [8, 32], strides = [1, 1]} : vector<8x128xf32> to vector<8x32xf32>
    %83 = arith.truncf %82 : vector<8x32xf32> to vector<8x32xbf16>
    %cst_29 = arith.constant dense<0.000000e+00> : vector<8x8xf32>
    %84 = tpu.matmul %79, %81, %cst_29 {dimension_numbers = #tpu.dot_dimension_numbers<[1], [1], [0], [0], [0, 0, 1, 0], [], []>} : vector<8x32xbf16>, vector<8x32xbf16>, vector<8x8xf32> -> vector<8x8xf32>
    %85 = arith.addf %84, %53 : vector<8x8xf32>
    %cst_30 = arith.constant dense<0xFF800000> : vector<8xf32>
    %86 = vector.multi_reduction <maximumf>, %85, %cst_30 [1] : vector<8x8xf32> to vector<8xf32>
    %87 = vector.shape_cast %86 : vector<8xf32> to vector<8x1xf32>
    %88 = vector.broadcast %87 : vector<8x1xf32> to vector<8x8xf32>
    %89 = arith.subf %85, %88 : vector<8x8xf32>
    %90 = math.exp %89 : vector<8x8xf32>
    %cst_31 = arith.constant dense<0.000000e+00> : vector<8xf32>
    %91 = vector.multi_reduction <add>, %90, %cst_31 [1] : vector<8x8xf32> to vector<8xf32>
    %92 = vector.shape_cast %91 : vector<8xf32> to vector<8x1xf32>
    %93 = vector.broadcast %92 : vector<8x1xf32> to vector<8x8xf32>
    %94 = arith.divf %90, %93 : vector<8x8xf32>
    %95 = arith.truncf %94 : vector<8x8xf32> to vector<8x8xbf16>
    %cst_32 = arith.constant dense<0.000000e+00> : vector<8x32xf32>
    %96 = tpu.matmul %95, %83, %cst_32 {dimension_numbers = #tpu.dot_dimension_numbers<[1], [0], [0], [1], [0, 0, 1, 1], [], []>} : vector<8x8xbf16>, vector<8x32xbf16>, vector<8x32xf32> -> vector<8x32xf32>
    %97 = arith.truncf %96 : vector<8x32xf32> to vector<8x32xbf16>
    %98 = vector.extract_strided_slice %41 {offsets = [32, 0], sizes = [32, 128], strides = [1, 1]} : vector<128x128xbf16> to vector<32x128xbf16>
    %cst_33 = arith.constant dense<0.000000e+00> : vector<8x128xf32>
    %99 = tpu.matmul %97, %98, %cst_33 {dimension_numbers = #tpu.dot_dimension_numbers<[1], [0], [0], [1], [0, 0, 1, 1], [], []>} : vector<8x32xbf16>, vector<32x128xbf16>, vector<8x128xf32> -> vector<8x128xf32>
    %100 = arith.addf %77, %99 : vector<8x128xf32>
    %101 = vector.extract_strided_slice %38 {offsets = [0, 64], sizes = [8, 32], strides = [1, 1]} : vector<8x128xf32> to vector<8x32xf32>
    %102 = arith.truncf %101 : vector<8x32xf32> to vector<8x32xbf16>
    %103 = vector.extract_strided_slice %39 {offsets = [0, 64], sizes = [8, 32], strides = [1, 1]} : vector<8x128xf32> to vector<8x32xf32>
    %104 = arith.truncf %103 : vector<8x32xf32> to vector<8x32xbf16>
    %105 = vector.extract_strided_slice %40 {offsets = [0, 64], sizes = [8, 32], strides = [1, 1]} : vector<8x128xf32> to vector<8x32xf32>
    %106 = arith.truncf %105 : vector<8x32xf32> to vector<8x32xbf16>
    %cst_34 = arith.constant dense<0.000000e+00> : vector<8x8xf32>
    %107 = tpu.matmul %102, %104, %cst_34 {dimension_numbers = #tpu.dot_dimension_numbers<[1], [1], [0], [0], [0, 0, 1, 0], [], []>} : vector<8x32xbf16>, vector<8x32xbf16>, vector<8x8xf32> -> vector<8x8xf32>
    %108 = arith.addf %107, %53 : vector<8x8xf32>
    %cst_35 = arith.constant dense<0xFF800000> : vector<8xf32>
    %109 = vector.multi_reduction <maximumf>, %108, %cst_35 [1] : vector<8x8xf32> to vector<8xf32>
    %110 = vector.shape_cast %109 : vector<8xf32> to vector<8x1xf32>
    %111 = vector.broadcast %110 : vector<8x1xf32> to vector<8x8xf32>
    %112 = arith.subf %108, %111 : vector<8x8xf32>
    %113 = math.exp %112 : vector<8x8xf32>
    %cst_36 = arith.constant dense<0.000000e+00> : vector<8xf32>
    %114 = vector.multi_reduction <add>, %113, %cst_36 [1] : vector<8x8xf32> to vector<8xf32>
    %115 = vector.shape_cast %114 : vector<8xf32> to vector<8x1xf32>
    %116 = vector.broadcast %115 : vector<8x1xf32> to vector<8x8xf32>
    %117 = arith.divf %113, %116 : vector<8x8xf32>
    %118 = arith.truncf %117 : vector<8x8xf32> to vector<8x8xbf16>
    %cst_37 = arith.constant dense<0.000000e+00> : vector<8x32xf32>
    %119 = tpu.matmul %118, %106, %cst_37 {dimension_numbers = #tpu.dot_dimension_numbers<[1], [0], [0], [1], [0, 0, 1, 1], [], []>} : vector<8x8xbf16>, vector<8x32xbf16>, vector<8x32xf32> -> vector<8x32xf32>
    %120 = arith.truncf %119 : vector<8x32xf32> to vector<8x32xbf16>
    %121 = vector.extract_strided_slice %41 {offsets = [64, 0], sizes = [32, 128], strides = [1, 1]} : vector<128x128xbf16> to vector<32x128xbf16>
    %cst_38 = arith.constant dense<0.000000e+00> : vector<8x128xf32>
    %122 = tpu.matmul %120, %121, %cst_38 {dimension_numbers = #tpu.dot_dimension_numbers<[1], [0], [0], [1], [0, 0, 1, 1], [], []>} : vector<8x32xbf16>, vector<32x128xbf16>, vector<8x128xf32> -> vector<8x128xf32>
    %123 = arith.addf %100, %122 : vector<8x128xf32>
    %124 = vector.extract_strided_slice %38 {offsets = [0, 96], sizes = [8, 32], strides = [1, 1]} : vector<8x128xf32> to vector<8x32xf32>
    %125 = arith.truncf %124 : vector<8x32xf32> to vector<8x32xbf16>
    %126 = vector.extract_strided_slice %39 {offsets = [0, 96], sizes = [8, 32], strides = [1, 1]} : vector<8x128xf32> to vector<8x32xf32>
    %127 = arith.truncf %126 : vector<8x32xf32> to vector<8x32xbf16>
    %128 = vector.extract_strided_slice %40 {offsets = [0, 96], sizes = [8, 32], strides = [1, 1]} : vector<8x128xf32> to vector<8x32xf32>
    %129 = arith.truncf %128 : vector<8x32xf32> to vector<8x32xbf16>
    %cst_39 = arith.constant dense<0.000000e+00> : vector<8x8xf32>
    %130 = tpu.matmul %125, %127, %cst_39 {dimension_numbers = #tpu.dot_dimension_numbers<[1], [1], [0], [0], [0, 0, 1, 0], [], []>} : vector<8x32xbf16>, vector<8x32xbf16>, vector<8x8xf32> -> vector<8x8xf32>
    %131 = arith.addf %130, %53 : vector<8x8xf32>
    %cst_40 = arith.constant dense<0xFF800000> : vector<8xf32>
    %132 = vector.multi_reduction <maximumf>, %131, %cst_40 [1] : vector<8x8xf32> to vector<8xf32>
    %133 = vector.shape_cast %132 : vector<8xf32> to vector<8x1xf32>
    %134 = vector.broadcast %133 : vector<8x1xf32> to vector<8x8xf32>
    %135 = arith.subf %131, %134 : vector<8x8xf32>
    %136 = math.exp %135 : vector<8x8xf32>
    %cst_41 = arith.constant dense<0.000000e+00> : vector<8xf32>
    %137 = vector.multi_reduction <add>, %136, %cst_41 [1] : vector<8x8xf32> to vector<8xf32>
    %138 = vector.shape_cast %137 : vector<8xf32> to vector<8x1xf32>
    %139 = vector.broadcast %138 : vector<8x1xf32> to vector<8x8xf32>
    %140 = arith.divf %136, %139 : vector<8x8xf32>
    %141 = arith.truncf %140 : vector<8x8xf32> to vector<8x8xbf16>
    %cst_42 = arith.constant dense<0.000000e+00> : vector<8x32xf32>
    %142 = tpu.matmul %141, %129, %cst_42 {dimension_numbers = #tpu.dot_dimension_numbers<[1], [0], [0], [1], [0, 0, 1, 1], [], []>} : vector<8x8xbf16>, vector<8x32xbf16>, vector<8x32xf32> -> vector<8x32xf32>
    %143 = arith.truncf %142 : vector<8x32xf32> to vector<8x32xbf16>
    %144 = vector.extract_strided_slice %41 {offsets = [96, 0], sizes = [32, 128], strides = [1, 1]} : vector<128x128xbf16> to vector<32x128xbf16>
    %cst_43 = arith.constant dense<0.000000e+00> : vector<8x128xf32>
    %145 = tpu.matmul %143, %144, %cst_43 {dimension_numbers = #tpu.dot_dimension_numbers<[1], [0], [0], [1], [0, 0, 1, 1], [], []>} : vector<8x32xbf16>, vector<32x128xbf16>, vector<8x128xf32> -> vector<8x128xf32>
    %146 = arith.addf %123, %145 : vector<8x128xf32>
    %147 = arith.addf %3, %146 : vector<8x128xf32>
    %c0_44 = arith.constant 0 : index
    %c0_45 = arith.constant 0 : index
    %148 = vector.load %arg10[%c0_44, %c0_45] : memref<1x128xf32, #tpu.memory_space<vmem>>, vector<1x128xf32>
    %149 = vector.broadcast %148 : vector<1x128xf32> to vector<8x128xf32>
    %150 = arith.addf %147, %149 : vector<8x128xf32>
    %c0_46 = arith.constant 0 : index
    %c0_47 = arith.constant 0 : index
    %151 = vector.load %arg11[%c0_46, %c0_47] : memref<1x128xf32, #tpu.memory_space<vmem>>, vector<1x128xf32>
    %c0_48 = arith.constant 0 : index
    %c0_49 = arith.constant 0 : index
    %152 = vector.load %arg12[%c0_48, %c0_49] : memref<1x128xf32, #tpu.memory_space<vmem>>, vector<1x128xf32>
    %cst_50 = arith.constant dense<0.000000e+00> : vector<8xf32>
    %153 = vector.multi_reduction <add>, %150, %cst_50 [1] : vector<8x128xf32> to vector<8xf32>
    %154 = vector.shape_cast %153 : vector<8xf32> to vector<8x1xf32>
    %cst_51 = arith.constant 1.280000e+02 : f32
    %155 = vector.broadcast %cst_51 : f32 to vector<8x1xf32>
    %156 = arith.divf %154, %155 : vector<8x1xf32>
    %157 = vector.broadcast %156 : vector<8x1xf32> to vector<8x128xf32>
    %158 = arith.subf %150, %157 : vector<8x128xf32>
    %159 = arith.mulf %158, %158 : vector<8x128xf32>
    %cst_52 = arith.constant dense<0.000000e+00> : vector<8xf32>
    %160 = vector.multi_reduction <add>, %159, %cst_52 [1] : vector<8x128xf32> to vector<8xf32>
    %161 = vector.shape_cast %160 : vector<8xf32> to vector<8x1xf32>
    %cst_53 = arith.constant 1.280000e+02 : f32
    %162 = vector.broadcast %cst_53 : f32 to vector<8x1xf32>
    %163 = arith.divf %161, %162 : vector<8x1xf32>
    %164 = vector.broadcast %156 : vector<8x1xf32> to vector<8x128xf32>
    %165 = arith.subf %150, %164 : vector<8x128xf32>
    %cst_54 = arith.constant 9.99999974E-6 : f32
    %166 = vector.broadcast %cst_54 : f32 to vector<8x1xf32>
    %167 = arith.addf %163, %166 : vector<8x1xf32>
    %168 = math.rsqrt %167 : vector<8x1xf32>
    %169 = vector.broadcast %168 : vector<8x1xf32> to vector<8x128xf32>
    %170 = arith.mulf %165, %169 : vector<8x128xf32>
    %171 = vector.broadcast %151 : vector<1x128xf32> to vector<8x128xf32>
    %172 = arith.mulf %170, %171 : vector<8x128xf32>
    %173 = vector.broadcast %152 : vector<1x128xf32> to vector<8x128xf32>
    %174 = arith.addf %172, %173 : vector<8x128xf32>
    %175 = arith.truncf %174 : vector<8x128xf32> to vector<8x128xbf16>
    %c0_55 = arith.constant 0 : index
    %c0_56 = arith.constant 0 : index
    %176 = vector.load %arg13[%c0_55, %c0_56] : memref<128x128xbf16, #tpu.memory_space<vmem>>, vector<128x128xbf16>
    %cst_57 = arith.constant dense<0.000000e+00> : vector<8x128xf32>
    %177 = tpu.matmul %175, %176, %cst_57 {dimension_numbers = #tpu.dot_dimension_numbers<[1], [0], [0], [1], [0, 0, 1, 1], [], []>} : vector<8x128xbf16>, vector<128x128xbf16>, vector<8x128xf32> -> vector<8x128xf32>
    %c0_58 = arith.constant 0 : index
    %c0_59 = arith.constant 0 : index
    %178 = vector.load %arg14[%c0_58, %c0_59] : memref<1x128xf32, #tpu.memory_space<vmem>>, vector<1x128xf32>
    %179 = vector.broadcast %178 : vector<1x128xf32> to vector<8x128xf32>
    %180 = arith.addf %177, %179 : vector<8x128xf32>
    %cst_60 = arith.constant 0.176776692 : f32
    %181 = vector.broadcast %cst_60 : f32 to vector<8x128xf32>
    %182 = arith.mulf %180, %181 : vector<8x128xf32>
    %c0_61 = arith.constant 0 : index
    %c0_62 = arith.constant 0 : index
    %183 = vector.load %arg15[%c0_61, %c0_62] : memref<128x256xbf16, #tpu.memory_space<vmem>>, vector<128x256xbf16>
    %cst_63 = arith.constant dense<0.000000e+00> : vector<8x256xf32>
    %184 = tpu.matmul %5, %183, %cst_63 {dimension_numbers = #tpu.dot_dimension_numbers<[1], [0], [0], [1], [0, 0, 1, 1], [], []>} : vector<8x128xbf16>, vector<128x256xbf16>, vector<8x256xf32> -> vector<8x256xf32>
    %c0_64 = arith.constant 0 : index
    %c0_65 = arith.constant 0 : index
    %185 = vector.load %arg16[%c0_64, %c0_65] : memref<1x256xf32, #tpu.memory_space<vmem>>, vector<1x256xf32>
    %186 = vector.broadcast %185 : vector<1x256xf32> to vector<8x256xf32>
    %187 = arith.addf %184, %186 : vector<8x256xf32>
    %188 = vector.extract_strided_slice %187 {offsets = [0, 0], sizes = [8, 128], strides = [1, 1]} : vector<8x256xf32> to vector<8x128xf32>
    %189 = vector.extract_strided_slice %187 {offsets = [0, 128], sizes = [8, 128], strides = [1, 1]} : vector<8x256xf32> to vector<8x128xf32>
    %c0_66 = arith.constant 0 : index
    %c0_67 = arith.constant 0 : index
    %190 = vector.load %arg17[%c0_66, %c0_67] : memref<128x128xbf16, #tpu.memory_space<vmem>>, vector<128x128xbf16>
    %c0_i32_68 = arith.constant 0 : i32
    %191 = arith.addi %0, %c0_i32_68 : i32
    %192 = arith.index_cast %191 : i32 to index
    %193 = memref.load %arg1[%192] : memref<2xi32, #tpu.memory_space<smem>>
    %194 = tpu.iota {dimensions = array<i32: 1>} : vector<8x8xi32>
    %195 = vector.broadcast %193 : i32 to vector<8x8xi32>
    %196 = arith.cmpi slt, %194, %195 : vector<8x8xi32>
    %cst_69 = arith.constant 0.000000e+00 : f32
    %cst_70 = arith.constant -1.000000e+09 : f32
    %197 = vector.broadcast %cst_69 : f32 to vector<8x8xf32>
    %198 = vector.broadcast %cst_70 : f32 to vector<8x8xf32>
    %199 = arith.select %196, %197, %198 : vector<8x8xi1>, vector<8x8xf32>
    %cst_71 = arith.constant 0.000000e+00 : f32
    %200 = vector.broadcast %cst_71 : f32 to vector<8x128xf32>
    %201 = vector.extract_strided_slice %182 {offsets = [0, 0], sizes = [8, 32], strides = [1, 1]} : vector<8x128xf32> to vector<8x32xf32>
    %202 = arith.truncf %201 : vector<8x32xf32> to vector<8x32xbf16>
    %203 = vector.extract_strided_slice %188 {offsets = [0, 0], sizes = [8, 32], strides = [1, 1]} : vector<8x128xf32> to vector<8x32xf32>
    %204 = arith.truncf %203 : vector<8x32xf32> to vector<8x32xbf16>
    %205 = vector.extract_strided_slice %189 {offsets = [0, 0], sizes = [8, 32], strides = [1, 1]} : vector<8x128xf32> to vector<8x32xf32>
    %206 = arith.truncf %205 : vector<8x32xf32> to vector<8x32xbf16>
    %cst_72 = arith.constant dense<0.000000e+00> : vector<8x8xf32>
    %207 = tpu.matmul %202, %204, %cst_72 {dimension_numbers = #tpu.dot_dimension_numbers<[1], [1], [0], [0], [0, 0, 1, 0], [], []>} : vector<8x32xbf16>, vector<8x32xbf16>, vector<8x8xf32> -> vector<8x8xf32>
    %208 = arith.addf %207, %199 : vector<8x8xf32>
    %cst_73 = arith.constant dense<0xFF800000> : vector<8xf32>
    %209 = vector.multi_reduction <maximumf>, %208, %cst_73 [1] : vector<8x8xf32> to vector<8xf32>
    %210 = vector.shape_cast %209 : vector<8xf32> to vector<8x1xf32>
    %211 = vector.broadcast %210 : vector<8x1xf32> to vector<8x8xf32>
    %212 = arith.subf %208, %211 : vector<8x8xf32>
    %213 = math.exp %212 : vector<8x8xf32>
    %cst_74 = arith.constant dense<0.000000e+00> : vector<8xf32>
    %214 = vector.multi_reduction <add>, %213, %cst_74 [1] : vector<8x8xf32> to vector<8xf32>
    %215 = vector.shape_cast %214 : vector<8xf32> to vector<8x1xf32>
    %216 = vector.broadcast %215 : vector<8x1xf32> to vector<8x8xf32>
    %217 = arith.divf %213, %216 : vector<8x8xf32>
    %218 = arith.truncf %217 : vector<8x8xf32> to vector<8x8xbf16>
    %cst_75 = arith.constant dense<0.000000e+00> : vector<8x32xf32>
    %219 = tpu.matmul %218, %206, %cst_75 {dimension_numbers = #tpu.dot_dimension_numbers<[1], [0], [0], [1], [0, 0, 1, 1], [], []>} : vector<8x8xbf16>, vector<8x32xbf16>, vector<8x32xf32> -> vector<8x32xf32>
    %220 = arith.truncf %219 : vector<8x32xf32> to vector<8x32xbf16>
    %221 = vector.extract_strided_slice %190 {offsets = [0, 0], sizes = [32, 128], strides = [1, 1]} : vector<128x128xbf16> to vector<32x128xbf16>
    %cst_76 = arith.constant dense<0.000000e+00> : vector<8x128xf32>
    %222 = tpu.matmul %220, %221, %cst_76 {dimension_numbers = #tpu.dot_dimension_numbers<[1], [0], [0], [1], [0, 0, 1, 1], [], []>} : vector<8x32xbf16>, vector<32x128xbf16>, vector<8x128xf32> -> vector<8x128xf32>
    %223 = arith.addf %200, %222 : vector<8x128xf32>
    %224 = vector.extract_strided_slice %182 {offsets = [0, 32], sizes = [8, 32], strides = [1, 1]} : vector<8x128xf32> to vector<8x32xf32>
    %225 = arith.truncf %224 : vector<8x32xf32> to vector<8x32xbf16>
    %226 = vector.extract_strided_slice %188 {offsets = [0, 32], sizes = [8, 32], strides = [1, 1]} : vector<8x128xf32> to vector<8x32xf32>
    %227 = arith.truncf %226 : vector<8x32xf32> to vector<8x32xbf16>
    %228 = vector.extract_strided_slice %189 {offsets = [0, 32], sizes = [8, 32], strides = [1, 1]} : vector<8x128xf32> to vector<8x32xf32>
    %229 = arith.truncf %228 : vector<8x32xf32> to vector<8x32xbf16>
    %cst_77 = arith.constant dense<0.000000e+00> : vector<8x8xf32>
    %230 = tpu.matmul %225, %227, %cst_77 {dimension_numbers = #tpu.dot_dimension_numbers<[1], [1], [0], [0], [0, 0, 1, 0], [], []>} : vector<8x32xbf16>, vector<8x32xbf16>, vector<8x8xf32> -> vector<8x8xf32>
    %231 = arith.addf %230, %199 : vector<8x8xf32>
    %cst_78 = arith.constant dense<0xFF800000> : vector<8xf32>
    %232 = vector.multi_reduction <maximumf>, %231, %cst_78 [1] : vector<8x8xf32> to vector<8xf32>
    %233 = vector.shape_cast %232 : vector<8xf32> to vector<8x1xf32>
    %234 = vector.broadcast %233 : vector<8x1xf32> to vector<8x8xf32>
    %235 = arith.subf %231, %234 : vector<8x8xf32>
    %236 = math.exp %235 : vector<8x8xf32>
    %cst_79 = arith.constant dense<0.000000e+00> : vector<8xf32>
    %237 = vector.multi_reduction <add>, %236, %cst_79 [1] : vector<8x8xf32> to vector<8xf32>
    %238 = vector.shape_cast %237 : vector<8xf32> to vector<8x1xf32>
    %239 = vector.broadcast %238 : vector<8x1xf32> to vector<8x8xf32>
    %240 = arith.divf %236, %239 : vector<8x8xf32>
    %241 = arith.truncf %240 : vector<8x8xf32> to vector<8x8xbf16>
    %cst_80 = arith.constant dense<0.000000e+00> : vector<8x32xf32>
    %242 = tpu.matmul %241, %229, %cst_80 {dimension_numbers = #tpu.dot_dimension_numbers<[1], [0], [0], [1], [0, 0, 1, 1], [], []>} : vector<8x8xbf16>, vector<8x32xbf16>, vector<8x32xf32> -> vector<8x32xf32>
    %243 = arith.truncf %242 : vector<8x32xf32> to vector<8x32xbf16>
    %244 = vector.extract_strided_slice %190 {offsets = [32, 0], sizes = [32, 128], strides = [1, 1]} : vector<128x128xbf16> to vector<32x128xbf16>
    %cst_81 = arith.constant dense<0.000000e+00> : vector<8x128xf32>
    %245 = tpu.matmul %243, %244, %cst_81 {dimension_numbers = #tpu.dot_dimension_numbers<[1], [0], [0], [1], [0, 0, 1, 1], [], []>} : vector<8x32xbf16>, vector<32x128xbf16>, vector<8x128xf32> -> vector<8x128xf32>
    %246 = arith.addf %223, %245 : vector<8x128xf32>
    %247 = vector.extract_strided_slice %182 {offsets = [0, 64], sizes = [8, 32], strides = [1, 1]} : vector<8x128xf32> to vector<8x32xf32>
    %248 = arith.truncf %247 : vector<8x32xf32> to vector<8x32xbf16>
    %249 = vector.extract_strided_slice %188 {offsets = [0, 64], sizes = [8, 32], strides = [1, 1]} : vector<8x128xf32> to vector<8x32xf32>
    %250 = arith.truncf %249 : vector<8x32xf32> to vector<8x32xbf16>
    %251 = vector.extract_strided_slice %189 {offsets = [0, 64], sizes = [8, 32], strides = [1, 1]} : vector<8x128xf32> to vector<8x32xf32>
    %252 = arith.truncf %251 : vector<8x32xf32> to vector<8x32xbf16>
    %cst_82 = arith.constant dense<0.000000e+00> : vector<8x8xf32>
    %253 = tpu.matmul %248, %250, %cst_82 {dimension_numbers = #tpu.dot_dimension_numbers<[1], [1], [0], [0], [0, 0, 1, 0], [], []>} : vector<8x32xbf16>, vector<8x32xbf16>, vector<8x8xf32> -> vector<8x8xf32>
    %254 = arith.addf %253, %199 : vector<8x8xf32>
    %cst_83 = arith.constant dense<0xFF800000> : vector<8xf32>
    %255 = vector.multi_reduction <maximumf>, %254, %cst_83 [1] : vector<8x8xf32> to vector<8xf32>
    %256 = vector.shape_cast %255 : vector<8xf32> to vector<8x1xf32>
    %257 = vector.broadcast %256 : vector<8x1xf32> to vector<8x8xf32>
    %258 = arith.subf %254, %257 : vector<8x8xf32>
    %259 = math.exp %258 : vector<8x8xf32>
    %cst_84 = arith.constant dense<0.000000e+00> : vector<8xf32>
    %260 = vector.multi_reduction <add>, %259, %cst_84 [1] : vector<8x8xf32> to vector<8xf32>
    %261 = vector.shape_cast %260 : vector<8xf32> to vector<8x1xf32>
    %262 = vector.broadcast %261 : vector<8x1xf32> to vector<8x8xf32>
    %263 = arith.divf %259, %262 : vector<8x8xf32>
    %264 = arith.truncf %263 : vector<8x8xf32> to vector<8x8xbf16>
    %cst_85 = arith.constant dense<0.000000e+00> : vector<8x32xf32>
    %265 = tpu.matmul %264, %252, %cst_85 {dimension_numbers = #tpu.dot_dimension_numbers<[1], [0], [0], [1], [0, 0, 1, 1], [], []>} : vector<8x8xbf16>, vector<8x32xbf16>, vector<8x32xf32> -> vector<8x32xf32>
    %266 = arith.truncf %265 : vector<8x32xf32> to vector<8x32xbf16>
    %267 = vector.extract_strided_slice %190 {offsets = [64, 0], sizes = [32, 128], strides = [1, 1]} : vector<128x128xbf16> to vector<32x128xbf16>
    %cst_86 = arith.constant dense<0.000000e+00> : vector<8x128xf32>
    %268 = tpu.matmul %266, %267, %cst_86 {dimension_numbers = #tpu.dot_dimension_numbers<[1], [0], [0], [1], [0, 0, 1, 1], [], []>} : vector<8x32xbf16>, vector<32x128xbf16>, vector<8x128xf32> -> vector<8x128xf32>
    %269 = arith.addf %246, %268 : vector<8x128xf32>
    %270 = vector.extract_strided_slice %182 {offsets = [0, 96], sizes = [8, 32], strides = [1, 1]} : vector<8x128xf32> to vector<8x32xf32>
    %271 = arith.truncf %270 : vector<8x32xf32> to vector<8x32xbf16>
    %272 = vector.extract_strided_slice %188 {offsets = [0, 96], sizes = [8, 32], strides = [1, 1]} : vector<8x128xf32> to vector<8x32xf32>
    %273 = arith.truncf %272 : vector<8x32xf32> to vector<8x32xbf16>
    %274 = vector.extract_strided_slice %189 {offsets = [0, 96], sizes = [8, 32], strides = [1, 1]} : vector<8x128xf32> to vector<8x32xf32>
    %275 = arith.truncf %274 : vector<8x32xf32> to vector<8x32xbf16>
    %cst_87 = arith.constant dense<0.000000e+00> : vector<8x8xf32>
    %276 = tpu.matmul %271, %273, %cst_87 {dimension_numbers = #tpu.dot_dimension_numbers<[1], [1], [0], [0], [0, 0, 1, 0], [], []>} : vector<8x32xbf16>, vector<8x32xbf16>, vector<8x8xf32> -> vector<8x8xf32>
    %277 = arith.addf %276, %199 : vector<8x8xf32>
    %cst_88 = arith.constant dense<0xFF800000> : vector<8xf32>
    %278 = vector.multi_reduction <maximumf>, %277, %cst_88 [1] : vector<8x8xf32> to vector<8xf32>
    %279 = vector.shape_cast %278 : vector<8xf32> to vector<8x1xf32>
    %280 = vector.broadcast %279 : vector<8x1xf32> to vector<8x8xf32>
    %281 = arith.subf %277, %280 : vector<8x8xf32>
    %282 = math.exp %281 : vector<8x8xf32>
    %cst_89 = arith.constant dense<0.000000e+00> : vector<8xf32>
    %283 = vector.multi_reduction <add>, %282, %cst_89 [1] : vector<8x8xf32> to vector<8xf32>
    %284 = vector.shape_cast %283 : vector<8xf32> to vector<8x1xf32>
    %285 = vector.broadcast %284 : vector<8x1xf32> to vector<8x8xf32>
    %286 = arith.divf %282, %285 : vector<8x8xf32>
    %287 = arith.truncf %286 : vector<8x8xf32> to vector<8x8xbf16>
    %cst_90 = arith.constant dense<0.000000e+00> : vector<8x32xf32>
    %288 = tpu.matmul %287, %275, %cst_90 {dimension_numbers = #tpu.dot_dimension_numbers<[1], [0], [0], [1], [0, 0, 1, 1], [], []>} : vector<8x8xbf16>, vector<8x32xbf16>, vector<8x32xf32> -> vector<8x32xf32>
    %289 = arith.truncf %288 : vector<8x32xf32> to vector<8x32xbf16>
    %290 = vector.extract_strided_slice %190 {offsets = [96, 0], sizes = [32, 128], strides = [1, 1]} : vector<128x128xbf16> to vector<32x128xbf16>
    %cst_91 = arith.constant dense<0.000000e+00> : vector<8x128xf32>
    %291 = tpu.matmul %289, %290, %cst_91 {dimension_numbers = #tpu.dot_dimension_numbers<[1], [0], [0], [1], [0, 0, 1, 1], [], []>} : vector<8x32xbf16>, vector<32x128xbf16>, vector<8x128xf32> -> vector<8x128xf32>
    %292 = arith.addf %269, %291 : vector<8x128xf32>
    %293 = arith.addf %150, %292 : vector<8x128xf32>
    %c0_92 = arith.constant 0 : index
    %c0_93 = arith.constant 0 : index
    %294 = vector.load %arg18[%c0_92, %c0_93] : memref<1x128xf32, #tpu.memory_space<vmem>>, vector<1x128xf32>
    %295 = vector.broadcast %294 : vector<1x128xf32> to vector<8x128xf32>
    %296 = arith.addf %293, %295 : vector<8x128xf32>
    %c0_94 = arith.constant 0 : index
    %c0_95 = arith.constant 0 : index
    %297 = vector.load %arg19[%c0_94, %c0_95] : memref<1x128xf32, #tpu.memory_space<vmem>>, vector<1x128xf32>
    %c0_96 = arith.constant 0 : index
    %c0_97 = arith.constant 0 : index
    %298 = vector.load %arg20[%c0_96, %c0_97] : memref<1x128xf32, #tpu.memory_space<vmem>>, vector<1x128xf32>
    %cst_98 = arith.constant dense<0.000000e+00> : vector<8xf32>
    %299 = vector.multi_reduction <add>, %296, %cst_98 [1] : vector<8x128xf32> to vector<8xf32>
    %300 = vector.shape_cast %299 : vector<8xf32> to vector<8x1xf32>
    %cst_99 = arith.constant 1.280000e+02 : f32
    %301 = vector.broadcast %cst_99 : f32 to vector<8x1xf32>
    %302 = arith.divf %300, %301 : vector<8x1xf32>
    %303 = vector.broadcast %302 : vector<8x1xf32> to vector<8x128xf32>
    %304 = arith.subf %296, %303 : vector<8x128xf32>
    %305 = arith.mulf %304, %304 : vector<8x128xf32>
    %cst_100 = arith.constant dense<0.000000e+00> : vector<8xf32>
    %306 = vector.multi_reduction <add>, %305, %cst_100 [1] : vector<8x128xf32> to vector<8xf32>
    %307 = vector.shape_cast %306 : vector<8xf32> to vector<8x1xf32>
    %cst_101 = arith.constant 1.280000e+02 : f32
    %308 = vector.broadcast %cst_101 : f32 to vector<8x1xf32>
    %309 = arith.divf %307, %308 : vector<8x1xf32>
    %310 = vector.broadcast %302 : vector<8x1xf32> to vector<8x128xf32>
    %311 = arith.subf %296, %310 : vector<8x128xf32>
    %cst_102 = arith.constant 9.99999974E-6 : f32
    %312 = vector.broadcast %cst_102 : f32 to vector<8x1xf32>
    %313 = arith.addf %309, %312 : vector<8x1xf32>
    %314 = math.rsqrt %313 : vector<8x1xf32>
    %315 = vector.broadcast %314 : vector<8x1xf32> to vector<8x128xf32>
    %316 = arith.mulf %311, %315 : vector<8x128xf32>
    %317 = vector.broadcast %297 : vector<1x128xf32> to vector<8x128xf32>
    %318 = arith.mulf %316, %317 : vector<8x128xf32>
    %319 = vector.broadcast %298 : vector<1x128xf32> to vector<8x128xf32>
    %320 = arith.addf %318, %319 : vector<8x128xf32>
    %321 = arith.truncf %320 : vector<8x128xf32> to vector<8x128xbf16>
    %c0_103 = arith.constant 0 : index
    %c0_104 = arith.constant 0 : index
    %322 = vector.load %arg21[%c0_103, %c0_104] : memref<128x256xbf16, #tpu.memory_space<vmem>>, vector<128x256xbf16>
    %cst_105 = arith.constant dense<0.000000e+00> : vector<8x256xf32>
    %323 = tpu.matmul %321, %322, %cst_105 {dimension_numbers = #tpu.dot_dimension_numbers<[1], [0], [0], [1], [0, 0, 1, 1], [], []>} : vector<8x128xbf16>, vector<128x256xbf16>, vector<8x256xf32> -> vector<8x256xf32>
    %c0_106 = arith.constant 0 : index
    %c0_107 = arith.constant 0 : index
    %324 = vector.load %arg22[%c0_106, %c0_107] : memref<1x256xf32, #tpu.memory_space<vmem>>, vector<1x256xf32>
    %325 = vector.broadcast %324 : vector<1x256xf32> to vector<8x256xf32>
    %326 = arith.addf %323, %325 : vector<8x256xf32>
    %cst_108 = arith.constant 0.000000e+00 : f32
    %327 = vector.broadcast %cst_108 : f32 to vector<8x256xf32>
    %328 = arith.maximumf %326, %327 : vector<8x256xf32>
    %329 = arith.truncf %328 : vector<8x256xf32> to vector<8x256xbf16>
    %c0_109 = arith.constant 0 : index
    %c0_110 = arith.constant 0 : index
    %330 = vector.load %arg23[%c0_109, %c0_110] : memref<256x128xbf16, #tpu.memory_space<vmem>>, vector<256x128xbf16>
    %cst_111 = arith.constant dense<0.000000e+00> : vector<8x128xf32>
    %331 = tpu.matmul %329, %330, %cst_111 {dimension_numbers = #tpu.dot_dimension_numbers<[1], [0], [0], [1], [0, 0, 1, 1], [], []>} : vector<8x256xbf16>, vector<256x128xbf16>, vector<8x128xf32> -> vector<8x128xf32>
    %c0_112 = arith.constant 0 : index
    %c0_113 = arith.constant 0 : index
    %332 = vector.load %arg24[%c0_112, %c0_113] : memref<1x128xf32, #tpu.memory_space<vmem>>, vector<1x128xf32>
    %333 = vector.broadcast %332 : vector<1x128xf32> to vector<8x128xf32>
    %334 = arith.addf %331, %333 : vector<8x128xf32>
    %335 = arith.addf %296, %334 : vector<8x128xf32>
    %c0_114 = arith.constant 0 : index
    %c0_115 = arith.constant 0 : index
    %336 = vector.load %arg25[%c0_114, %c0_115] : memref<1x128xf32, #tpu.memory_space<vmem>>, vector<1x128xf32>
    %c0_116 = arith.constant 0 : index
    %c0_117 = arith.constant 0 : index
    %337 = vector.load %arg26[%c0_116, %c0_117] : memref<1x128xf32, #tpu.memory_space<vmem>>, vector<1x128xf32>
    %cst_118 = arith.constant dense<0.000000e+00> : vector<8xf32>
    %338 = vector.multi_reduction <add>, %335, %cst_118 [1] : vector<8x128xf32> to vector<8xf32>
    %339 = vector.shape_cast %338 : vector<8xf32> to vector<8x1xf32>
    %cst_119 = arith.constant 1.280000e+02 : f32
    %340 = vector.broadcast %cst_119 : f32 to vector<8x1xf32>
    %341 = arith.divf %339, %340 : vector<8x1xf32>
    %342 = vector.broadcast %341 : vector<8x1xf32> to vector<8x128xf32>
    %343 = arith.subf %335, %342 : vector<8x128xf32>
    %344 = arith.mulf %343, %343 : vector<8x128xf32>
    %cst_120 = arith.constant dense<0.000000e+00> : vector<8xf32>
    %345 = vector.multi_reduction <add>, %344, %cst_120 [1] : vector<8x128xf32> to vector<8xf32>
    %346 = vector.shape_cast %345 : vector<8xf32> to vector<8x1xf32>
    %cst_121 = arith.constant 1.280000e+02 : f32
    %347 = vector.broadcast %cst_121 : f32 to vector<8x1xf32>
    %348 = arith.divf %346, %347 : vector<8x1xf32>
    %349 = vector.broadcast %341 : vector<8x1xf32> to vector<8x128xf32>
    %350 = arith.subf %335, %349 : vector<8x128xf32>
    %cst_122 = arith.constant 9.99999974E-6 : f32
    %351 = vector.broadcast %cst_122 : f32 to vector<8x1xf32>
    %352 = arith.addf %348, %351 : vector<8x1xf32>
    %353 = math.rsqrt %352 : vector<8x1xf32>
    %354 = vector.broadcast %353 : vector<8x1xf32> to vector<8x128xf32>
    %355 = arith.mulf %350, %354 : vector<8x128xf32>
    %356 = vector.broadcast %336 : vector<1x128xf32> to vector<8x128xf32>
    %357 = arith.mulf %355, %356 : vector<8x128xf32>
    %358 = vector.broadcast %337 : vector<1x128xf32> to vector<8x128xf32>
    %359 = arith.addf %357, %358 : vector<8x128xf32>
    %360 = vector.shape_cast %359 : vector<8x128xf32> to vector<1x8x128xf32>
    %c0_123 = arith.constant 0 : index
    %c0_124 = arith.constant 0 : index
    %c0_125 = arith.constant 0 : index
    %361 = vector.load %arg27[%c0_123, %c0_124, %c0_125] : memref<1x8x128xf32, #tpu.memory_space<vmem>>, vector<1x8x128xf32>
    tpu.vector_store %arg27[%c0_123, %c0_124, %c0_125], %360 {strides = array<i32>} : memref<1x8x128xf32, #tpu.memory_space<vmem>>, vector<1x8x128xf32>,
    return
  }
  func.func @transform_0(%arg0: i32, %arg1: memref<2xi32, #tpu.memory_space<smem>>, %arg2: memref<2xi32, #tpu.memory_space<smem>>) -> (i32, i32, i32) {
    %c0_i32 = arith.constant 0 : i32
    %c0_i32_0 = arith.constant 0 : i32
    %c0_i32_1 = arith.constant 0 : i32
    return %arg0, %c0_i32, %c0_i32_0 : i32, i32, i32
  }
  func.func @transform_1(%arg0: i32, %arg1: memref<2xi32, #tpu.memory_space<smem>>, %arg2: memref<2xi32, #tpu.memory_space<smem>>) -> (i32, i32, i32) {
    %c0_i32 = arith.constant 0 : i32
    %c0_i32_0 = arith.constant 0 : i32
    %c0_i32_1 = arith.constant 0 : i32
    return %arg0, %c0_i32, %c0_i32_0 : i32, i32, i32
  }
  func.func @transform_2(%arg0: i32, %arg1: memref<2xi32, #tpu.memory_space<smem>>, %arg2: memref<2xi32, #tpu.memory_space<smem>>) -> (i32, i32) {
    %c0_i32 = arith.constant 0 : i32
    %c0_i32_0 = arith.constant 0 : i32
    %c0_i32_1 = arith.constant 0 : i32
    return %c0_i32, %c0_i32_0 : i32, i32
  }
  func.func @transform_3(%arg0: i32, %arg1: memref<2xi32, #tpu.memory_space<smem>>, %arg2: memref<2xi32, #tpu.memory_space<smem>>) -> (i32, i32) {
    %c0_i32 = arith.constant 0 : i32
    %c0_i32_0 = arith.constant 0 : i32
    %c0_i32_1 = arith.constant 0 : i32
    return %c0_i32, %c0_i32_0 : i32, i32
  }
  func.func @transform_4(%arg0: i32, %arg1: memref<2xi32, #tpu.memory_space<smem>>, %arg2: memref<2xi32, #tpu.memory_space<smem>>) -> (i32, i32) {
    %c0_i32 = arith.constant 0 : i32
    %c0_i32_0 = arith.constant 0 : i32
    %c0_i32_1 = arith.constant 0 : i32
    return %c0_i32, %c0_i32_0 : i32, i32
  }
  func.func @transform_5(%arg0: i32, %arg1: memref<2xi32, #tpu.memory_space<smem>>, %arg2: memref<2xi32, #tpu.memory_space<smem>>) -> (i32, i32) {
    %c0_i32 = arith.constant 0 : i32
    %c0_i32_0 = arith.constant 0 : i32
    %c0_i32_1 = arith.constant 0 : i32
    return %c0_i32, %c0_i32_0 : i32, i32
  }
  func.func @transform_6(%arg0: i32, %arg1: memref<2xi32, #tpu.memory_space<smem>>, %arg2: memref<2xi32, #tpu.memory_space<smem>>) -> (i32, i32) {
    %c0_i32 = arith.constant 0 : i32
    %c0_i32_0 = arith.constant 0 : i32
    %c0_i32_1 = arith.constant 0 : i32
    return %c0_i32, %c0_i32_0 : i32, i32
  }
  func.func @transform_7(%arg0: i32, %arg1: memref<2xi32, #tpu.memory_space<smem>>, %arg2: memref<2xi32, #tpu.memory_space<smem>>) -> (i32, i32) {
    %c0_i32 = arith.constant 0 : i32
    %c0_i32_0 = arith.constant 0 : i32
    %c0_i32_1 = arith.constant 0 : i32
    return %c0_i32, %c0_i32_0 : i32, i32
  }
  func.func @transform_8(%arg0: i32, %arg1: memref<2xi32, #tpu.memory_space<smem>>, %arg2: memref<2xi32, #tpu.memory_space<smem>>) -> (i32, i32) {
    %c0_i32 = arith.constant 0 : i32
    %c0_i32_0 = arith.constant 0 : i32
    %c0_i32_1 = arith.constant 0 : i32
    return %c0_i32, %c0_i32_0 : i32, i32
  }
  func.func @transform_9(%arg0: i32, %arg1: memref<2xi32, #tpu.memory_space<smem>>, %arg2: memref<2xi32, #tpu.memory_space<smem>>) -> (i32, i32) {
    %c0_i32 = arith.constant 0 : i32
    %c0_i32_0 = arith.constant 0 : i32
    %c0_i32_1 = arith.constant 0 : i32
    return %c0_i32, %c0_i32_0 : i32, i32
  }
  func.func @transform_10(%arg0: i32, %arg1: memref<2xi32, #tpu.memory_space<smem>>, %arg2: memref<2xi32, #tpu.memory_space<smem>>) -> (i32, i32) {
    %c0_i32 = arith.constant 0 : i32
    %c0_i32_0 = arith.constant 0 : i32
    %c0_i32_1 = arith.constant 0 : i32
    return %c0_i32, %c0_i32_0 : i32, i32
  }
  func.func @transform_11(%arg0: i32, %arg1: memref<2xi32, #tpu.memory_space<smem>>, %arg2: memref<2xi32, #tpu.memory_space<smem>>) -> (i32, i32) {
    %c0_i32 = arith.constant 0 : i32
    %c0_i32_0 = arith.constant 0 : i32
    %c0_i32_1 = arith.constant 0 : i32
    return %c0_i32, %c0_i32_0 : i32, i32
  }
  func.func @transform_12(%arg0: i32, %arg1: memref<2xi32, #tpu.memory_space<smem>>, %arg2: memref<2xi32, #tpu.memory_space<smem>>) -> (i32, i32) {
    %c0_i32 = arith.constant 0 : i32
    %c0_i32_0 = arith.constant 0 : i32
    %c0_i32_1 = arith.constant 0 : i32
    return %c0_i32, %c0_i32_0 : i32, i32
  }
  func.func @transform_13(%arg0: i32, %arg1: memref<2xi32, #tpu.memory_space<smem>>, %arg2: memref<2xi32, #tpu.memory_space<smem>>) -> (i32, i32) {
    %c0_i32 = arith.constant 0 : i32
    %c0_i32_0 = arith.constant 0 : i32
    %c0_i32_1 = arith.constant 0 : i32
    return %c0_i32, %c0_i32_0 : i32, i32
  }
  func.func @transform_14(%arg0: i32, %arg1: memref<2xi32, #tpu.memory_space<smem>>, %arg2: memref<2xi32, #tpu.memory_space<smem>>) -> (i32, i32) {
    %c0_i32 = arith.constant 0 : i32
    %c0_i32_0 = arith.constant 0 : i32
    %c0_i32_1 = arith.constant 0 : i32
    return %c0_i32, %c0_i32_0 : i32, i32
  }
  func.func @transform_15(%arg0: i32, %arg1: memref<2xi32, #tpu.memory_space<smem>>, %arg2: memref<2xi32, #tpu.memory_space<smem>>) -> (i32, i32) {
    %c0_i32 = arith.constant 0 : i32
    %c0_i32_0 = arith.constant 0 : i32
    %c0_i32_1 = arith.constant 0 : i32
    return %c0_i32, %c0_i32_0 : i32, i32
  }
  func.func @transform_16(%arg0: i32, %arg1: memref<2xi32, #tpu.memory_space<smem>>, %arg2: memref<2xi32, #tpu.memory_space<smem>>) -> (i32, i32) {
    %c0_i32 = arith.constant 0 : i32
    %c0_i32_0 = arith.constant 0 : i32
    %c0_i32_1 = arith.constant 0 : i32
    return %c0_i32, %c0_i32_0 : i32, i32
  }
  func.func @transform_17(%arg0: i32, %arg1: memref<2xi32, #tpu.memory_space<smem>>, %arg2: memref<2xi32, #tpu.memory_space<smem>>) -> (i32, i32) {
    %c0_i32 = arith.constant 0 : i32
    %c0_i32_0 = arith.constant 0 : i32
    %c0_i32_1 = arith.constant 0 : i32
    return %c0_i32, %c0_i32_0 : i32, i32
  }
  func.func @transform_18(%arg0: i32, %arg1: memref<2xi32, #tpu.memory_space<smem>>, %arg2: memref<2xi32, #tpu.memory_space<smem>>) -> (i32, i32) {
    %c0_i32 = arith.constant 0 : i32
    %c0_i32_0 = arith.constant 0 : i32
    %c0_i32_1 = arith.constant 0 : i32
    return %c0_i32, %c0_i32_0 : i32, i32
  }
  func.func @transform_19(%arg0: i32, %arg1: memref<2xi32, #tpu.memory_space<smem>>, %arg2: memref<2xi32, #tpu.memory_space<smem>>) -> (i32, i32) {
    %c0_i32 = arith.constant 0 : i32
    %c0_i32_0 = arith.constant 0 : i32
    %c0_i32_1 = arith.constant 0 : i32
    return %c0_i32, %c0_i32_0 : i32, i32
  }
  func.func @transform_20(%arg0: i32, %arg1: memref<2xi32, #tpu.memory_space<smem>>, %arg2: memref<2xi32, #tpu.memory_space<smem>>) -> (i32, i32) {
    %c0_i32 = arith.constant 0 : i32
    %c0_i32_0 = arith.constant 0 : i32
    %c0_i32_1 = arith.constant 0 : i32
    return %c0_i32, %c0_i32_0 : i32, i32
  }
  func.func @transform_21(%arg0: i32, %arg1: memref<2xi32, #tpu.memory_space<smem>>, %arg2: memref<2xi32, #tpu.memory_space<smem>>) -> (i32, i32) {
    %c0_i32 = arith.constant 0 : i32
    %c0_i32_0 = arith.constant 0 : i32
    %c0_i32_1 = arith.constant 0 : i32
    return %c0_i32, %c0_i32_0 : i32, i32
  }
  func.func @transform_22(%arg0: i32, %arg1: memref<2xi32, #tpu.memory_space<smem>>, %arg2: memref<2xi32, #tpu.memory_space<smem>>) -> (i32, i32) {
    %c0_i32 = arith.constant 0 : i32
    %c0_i32_0 = arith.constant 0 : i32
    %c0_i32_1 = arith.constant 0 : i32
    return %c0_i32, %c0_i32_0 : i32, i32
  }
  func.func @transform_23(%arg0: i32, %arg1: memref<2xi32, #tpu.memory_space<smem>>, %arg2: memref<2xi32, #tpu.memory_space<smem>>) -> (i32, i32) {
    %c0_i32 = arith.constant 0 : i32
    %c0_i32_0 = arith.constant 0 : i32
    %c0_i32_1 = arith.constant 0 : i32
    return %c0_i32, %c0_i32_0 : i32, i32
  }
  func.func @transform_24(%arg0: i32, %arg1: memref<2xi32, #tpu.memory_space<smem>>, %arg2: memref<2xi32, #tpu.memory_space<smem>>) -> (i32, i32, i32) {
    %c0_i32 = arith.constant 0 : i32
    %c0_i32_0 = arith.constant 0 : i32
    %c0_i32_1 = arith.constant 0 : i32
    return %arg0, %c0_i32, %c0_i32_0 : i32, i32, i32
  }
}

module attributes {stable_mosaic.version = 11 : i64} {
  func.func @_encoder_layer_kernel(%arg0: i32, %arg1: memref<2xi32, #tpu.memory_space<smem>>, %arg2: memref<1x8x128xbf16, #tpu.memory_space<vmem>>, %arg3: memref<1x128xf32, #tpu.memory_space<vmem>>, %arg4: memref<1x128xf32, #tpu.memory_space<vmem>>, %arg5: memref<128x384xbf16, #tpu.memory_space<vmem>>, %arg6: memref<1x384xf32, #tpu.memory_space<vmem>>, %arg7: memref<128x128xbf16, #tpu.memory_space<vmem>>, %arg8: memref<1x128xf32, #tpu.memory_space<vmem>>, %arg9: memref<1x128xf32, #tpu.memory_space<vmem>>, %arg10: memref<1x128xf32, #tpu.memory_space<vmem>>, %arg11: memref<128x256xbf16, #tpu.memory_space<vmem>>, %arg12: memref<1x256xf32, #tpu.memory_space<vmem>>, %arg13: memref<256x128xbf16, #tpu.memory_space<vmem>>, %arg14: memref<1x128xf32, #tpu.memory_space<vmem>>, %arg15: memref<1x128xf32, #tpu.memory_space<vmem>>, %arg16: memref<1x128xf32, #tpu.memory_space<vmem>>, %arg17: memref<1x8x128xbf16, #tpu.memory_space<vmem>>) attributes {dimension_semantics = [#tpu.dimension_semantics<parallel>], iteration_bounds = array<i64: 2>, scalar_prefetch = 1 : i64, scratch_operands = 0 : i64, tpu.core_type = #tpu.core_type<tc>, window_params = [{transform_indices = @transform_0, window_bounds = array<i64: 1, 8, 128>}, {pipeline_mode = #tpu.pipeline_mode<synchronous>, transform_indices = @transform_1, window_bounds = array<i64: 1, 128>}, {pipeline_mode = #tpu.pipeline_mode<synchronous>, transform_indices = @transform_2, window_bounds = array<i64: 1, 128>}, {pipeline_mode = #tpu.pipeline_mode<synchronous>, transform_indices = @transform_3, window_bounds = array<i64: 128, 384>}, {pipeline_mode = #tpu.pipeline_mode<synchronous>, transform_indices = @transform_4, window_bounds = array<i64: 1, 384>}, {pipeline_mode = #tpu.pipeline_mode<synchronous>, transform_indices = @transform_5, window_bounds = array<i64: 128, 128>}, {pipeline_mode = #tpu.pipeline_mode<synchronous>, transform_indices = @transform_6, window_bounds = array<i64: 1, 128>}, {pipeline_mode = #tpu.pipeline_mode<synchronous>, transform_indices = @transform_7, window_bounds = array<i64: 1, 128>}, {pipeline_mode = #tpu.pipeline_mode<synchronous>, transform_indices = @transform_8, window_bounds = array<i64: 1, 128>}, {pipeline_mode = #tpu.pipeline_mode<synchronous>, transform_indices = @transform_9, window_bounds = array<i64: 128, 256>}, {pipeline_mode = #tpu.pipeline_mode<synchronous>, transform_indices = @transform_10, window_bounds = array<i64: 1, 256>}, {pipeline_mode = #tpu.pipeline_mode<synchronous>, transform_indices = @transform_11, window_bounds = array<i64: 256, 128>}, {pipeline_mode = #tpu.pipeline_mode<synchronous>, transform_indices = @transform_12, window_bounds = array<i64: 1, 128>}, {pipeline_mode = #tpu.pipeline_mode<synchronous>, transform_indices = @transform_13, window_bounds = array<i64: 1, 128>}, {pipeline_mode = #tpu.pipeline_mode<synchronous>, transform_indices = @transform_14, window_bounds = array<i64: 1, 128>}, {transform_indices = @transform_15, window_bounds = array<i64: 1, 8, 128>}]} {
    %c1_i32 = arith.constant 1 : i32
    %0 = arith.muli %arg0, %c1_i32 : i32
    %c0 = arith.constant 0 : index
    %c0_0 = arith.constant 0 : index
    %c0_1 = arith.constant 0 : index
    %1 = vector.load %arg2[%c0, %c0_0, %c0_1] : memref<1x8x128xbf16, #tpu.memory_space<vmem>>, vector<1x8x128xbf16>
    %2 = arith.extf %1 : vector<1x8x128xbf16> to vector<1x8x128xf32>
    %3 = vector.shape_cast %2 : vector<1x8x128xf32> to vector<8x128xf32>
    %c0_2 = arith.constant 0 : index
    %c0_3 = arith.constant 0 : index
    %4 = vector.load %arg3[%c0_2, %c0_3] : memref<1x128xf32, #tpu.memory_space<vmem>>, vector<1x128xf32>
    %c0_4 = arith.constant 0 : index
    %c0_5 = arith.constant 0 : index
    %5 = vector.load %arg4[%c0_4, %c0_5] : memref<1x128xf32, #tpu.memory_space<vmem>>, vector<1x128xf32>
    %cst = arith.constant dense<0.000000e+00> : vector<8xf32>
    %6 = vector.multi_reduction <add>, %3, %cst [1] : vector<8x128xf32> to vector<8xf32>
    %7 = vector.shape_cast %6 : vector<8xf32> to vector<8x1xf32>
    %cst_6 = arith.constant 1.280000e+02 : f32
    %8 = vector.broadcast %cst_6 : f32 to vector<8x1xf32>
    %9 = arith.divf %7, %8 : vector<8x1xf32>
    %10 = vector.broadcast %9 : vector<8x1xf32> to vector<8x128xf32>
    %11 = arith.subf %3, %10 : vector<8x128xf32>
    %12 = arith.mulf %11, %11 : vector<8x128xf32>
    %cst_7 = arith.constant dense<0.000000e+00> : vector<8xf32>
    %13 = vector.multi_reduction <add>, %12, %cst_7 [1] : vector<8x128xf32> to vector<8xf32>
    %14 = vector.shape_cast %13 : vector<8xf32> to vector<8x1xf32>
    %cst_8 = arith.constant 1.280000e+02 : f32
    %15 = vector.broadcast %cst_8 : f32 to vector<8x1xf32>
    %16 = arith.divf %14, %15 : vector<8x1xf32>
    %17 = vector.broadcast %9 : vector<8x1xf32> to vector<8x128xf32>
    %18 = arith.subf %3, %17 : vector<8x128xf32>
    %cst_9 = arith.constant 9.99999974E-6 : f32
    %19 = vector.broadcast %cst_9 : f32 to vector<8x1xf32>
    %20 = arith.addf %16, %19 : vector<8x1xf32>
    %21 = math.rsqrt %20 : vector<8x1xf32>
    %22 = vector.broadcast %21 : vector<8x1xf32> to vector<8x128xf32>
    %23 = arith.mulf %18, %22 : vector<8x128xf32>
    %24 = vector.broadcast %4 : vector<1x128xf32> to vector<8x128xf32>
    %25 = arith.mulf %23, %24 : vector<8x128xf32>
    %26 = vector.broadcast %5 : vector<1x128xf32> to vector<8x128xf32>
    %27 = arith.addf %25, %26 : vector<8x128xf32>
    %28 = arith.truncf %27 : vector<8x128xf32> to vector<8x128xbf16>
    %c0_10 = arith.constant 0 : index
    %c0_11 = arith.constant 0 : index
    %29 = vector.load %arg5[%c0_10, %c0_11] : memref<128x384xbf16, #tpu.memory_space<vmem>>, vector<128x384xbf16>
    %cst_12 = arith.constant dense<0.000000e+00> : vector<8x384xf32>
    %30 = tpu.matmul %28, %29, %cst_12 {dimension_numbers = #tpu.dot_dimension_numbers<[1], [0], [0], [1], [0, 0, 1, 1], [], []>} : vector<8x128xbf16>, vector<128x384xbf16>, vector<8x384xf32> -> vector<8x384xf32>
    %c0_13 = arith.constant 0 : index
    %c0_14 = arith.constant 0 : index
    %31 = vector.load %arg6[%c0_13, %c0_14] : memref<1x384xf32, #tpu.memory_space<vmem>>, vector<1x384xf32>
    %32 = vector.broadcast %31 : vector<1x384xf32> to vector<8x384xf32>
    %33 = arith.addf %30, %32 : vector<8x384xf32>
    %34 = vector.extract_strided_slice %33 {offsets = [0, 0], sizes = [8, 128], strides = [1, 1]} : vector<8x384xf32> to vector<8x128xf32>
    %cst_15 = arith.constant 0.176776692 : f32
    %35 = vector.broadcast %cst_15 : f32 to vector<8x128xf32>
    %36 = arith.mulf %34, %35 : vector<8x128xf32>
    %37 = vector.extract_strided_slice %33 {offsets = [0, 128], sizes = [8, 128], strides = [1, 1]} : vector<8x384xf32> to vector<8x128xf32>
    %38 = vector.extract_strided_slice %33 {offsets = [0, 256], sizes = [8, 128], strides = [1, 1]} : vector<8x384xf32> to vector<8x128xf32>
    %c0_16 = arith.constant 0 : index
    %c0_17 = arith.constant 0 : index
    %39 = vector.load %arg7[%c0_16, %c0_17] : memref<128x128xbf16, #tpu.memory_space<vmem>>, vector<128x128xbf16>
    %c0_i32 = arith.constant 0 : i32
    %40 = arith.addi %0, %c0_i32 : i32
    %41 = arith.index_cast %40 : i32 to index
    %42 = memref.load %arg1[%41] : memref<2xi32, #tpu.memory_space<smem>>
    %43 = tpu.iota {dimensions = array<i32: 1>} : vector<8x8xi32>
    %44 = vector.broadcast %42 : i32 to vector<8x8xi32>
    %45 = arith.cmpi slt, %43, %44 : vector<8x8xi32>
    %cst_18 = arith.constant 0.000000e+00 : f32
    %cst_19 = arith.constant -1.000000e+09 : f32
    %46 = vector.broadcast %cst_18 : f32 to vector<8x8xf32>
    %47 = vector.broadcast %cst_19 : f32 to vector<8x8xf32>
    %48 = arith.select %45, %46, %47 : vector<8x8xi1>, vector<8x8xf32>
    %cst_20 = arith.constant 0.000000e+00 : f32
    %49 = vector.broadcast %cst_20 : f32 to vector<8x128xf32>
    %50 = vector.extract_strided_slice %36 {offsets = [0, 0], sizes = [8, 32], strides = [1, 1]} : vector<8x128xf32> to vector<8x32xf32>
    %51 = arith.truncf %50 : vector<8x32xf32> to vector<8x32xbf16>
    %52 = vector.extract_strided_slice %37 {offsets = [0, 0], sizes = [8, 32], strides = [1, 1]} : vector<8x128xf32> to vector<8x32xf32>
    %53 = arith.truncf %52 : vector<8x32xf32> to vector<8x32xbf16>
    %54 = vector.extract_strided_slice %38 {offsets = [0, 0], sizes = [8, 32], strides = [1, 1]} : vector<8x128xf32> to vector<8x32xf32>
    %55 = arith.truncf %54 : vector<8x32xf32> to vector<8x32xbf16>
    %cst_21 = arith.constant dense<0.000000e+00> : vector<8x8xf32>
    %56 = tpu.matmul %51, %53, %cst_21 {dimension_numbers = #tpu.dot_dimension_numbers<[1], [1], [0], [0], [0, 0, 1, 0], [], []>} : vector<8x32xbf16>, vector<8x32xbf16>, vector<8x8xf32> -> vector<8x8xf32>
    %57 = arith.addf %56, %48 : vector<8x8xf32>
    %cst_22 = arith.constant dense<0xFF800000> : vector<8xf32>
    %58 = vector.multi_reduction <maximumf>, %57, %cst_22 [1] : vector<8x8xf32> to vector<8xf32>
    %59 = vector.shape_cast %58 : vector<8xf32> to vector<8x1xf32>
    %60 = vector.broadcast %59 : vector<8x1xf32> to vector<8x8xf32>
    %61 = arith.subf %57, %60 : vector<8x8xf32>
    %62 = math.exp %61 : vector<8x8xf32>
    %cst_23 = arith.constant dense<0.000000e+00> : vector<8xf32>
    %63 = vector.multi_reduction <add>, %62, %cst_23 [1] : vector<8x8xf32> to vector<8xf32>
    %64 = vector.shape_cast %63 : vector<8xf32> to vector<8x1xf32>
    %65 = vector.broadcast %64 : vector<8x1xf32> to vector<8x8xf32>
    %66 = arith.divf %62, %65 : vector<8x8xf32>
    %67 = arith.truncf %66 : vector<8x8xf32> to vector<8x8xbf16>
    %cst_24 = arith.constant dense<0.000000e+00> : vector<8x32xf32>
    %68 = tpu.matmul %67, %55, %cst_24 {dimension_numbers = #tpu.dot_dimension_numbers<[1], [0], [0], [1], [0, 0, 1, 1], [], []>} : vector<8x8xbf16>, vector<8x32xbf16>, vector<8x32xf32> -> vector<8x32xf32>
    %69 = arith.truncf %68 : vector<8x32xf32> to vector<8x32xbf16>
    %70 = vector.extract_strided_slice %39 {offsets = [0, 0], sizes = [32, 128], strides = [1, 1]} : vector<128x128xbf16> to vector<32x128xbf16>
    %cst_25 = arith.constant dense<0.000000e+00> : vector<8x128xf32>
    %71 = tpu.matmul %69, %70, %cst_25 {dimension_numbers = #tpu.dot_dimension_numbers<[1], [0], [0], [1], [0, 0, 1, 1], [], []>} : vector<8x32xbf16>, vector<32x128xbf16>, vector<8x128xf32> -> vector<8x128xf32>
    %72 = arith.addf %49, %71 : vector<8x128xf32>
    %73 = vector.extract_strided_slice %36 {offsets = [0, 32], sizes = [8, 32], strides = [1, 1]} : vector<8x128xf32> to vector<8x32xf32>
    %74 = arith.truncf %73 : vector<8x32xf32> to vector<8x32xbf16>
    %75 = vector.extract_strided_slice %37 {offsets = [0, 32], sizes = [8, 32], strides = [1, 1]} : vector<8x128xf32> to vector<8x32xf32>
    %76 = arith.truncf %75 : vector<8x32xf32> to vector<8x32xbf16>
    %77 = vector.extract_strided_slice %38 {offsets = [0, 32], sizes = [8, 32], strides = [1, 1]} : vector<8x128xf32> to vector<8x32xf32>
    %78 = arith.truncf %77 : vector<8x32xf32> to vector<8x32xbf16>
    %cst_26 = arith.constant dense<0.000000e+00> : vector<8x8xf32>
    %79 = tpu.matmul %74, %76, %cst_26 {dimension_numbers = #tpu.dot_dimension_numbers<[1], [1], [0], [0], [0, 0, 1, 0], [], []>} : vector<8x32xbf16>, vector<8x32xbf16>, vector<8x8xf32> -> vector<8x8xf32>
    %80 = arith.addf %79, %48 : vector<8x8xf32>
    %cst_27 = arith.constant dense<0xFF800000> : vector<8xf32>
    %81 = vector.multi_reduction <maximumf>, %80, %cst_27 [1] : vector<8x8xf32> to vector<8xf32>
    %82 = vector.shape_cast %81 : vector<8xf32> to vector<8x1xf32>
    %83 = vector.broadcast %82 : vector<8x1xf32> to vector<8x8xf32>
    %84 = arith.subf %80, %83 : vector<8x8xf32>
    %85 = math.exp %84 : vector<8x8xf32>
    %cst_28 = arith.constant dense<0.000000e+00> : vector<8xf32>
    %86 = vector.multi_reduction <add>, %85, %cst_28 [1] : vector<8x8xf32> to vector<8xf32>
    %87 = vector.shape_cast %86 : vector<8xf32> to vector<8x1xf32>
    %88 = vector.broadcast %87 : vector<8x1xf32> to vector<8x8xf32>
    %89 = arith.divf %85, %88 : vector<8x8xf32>
    %90 = arith.truncf %89 : vector<8x8xf32> to vector<8x8xbf16>
    %cst_29 = arith.constant dense<0.000000e+00> : vector<8x32xf32>
    %91 = tpu.matmul %90, %78, %cst_29 {dimension_numbers = #tpu.dot_dimension_numbers<[1], [0], [0], [1], [0, 0, 1, 1], [], []>} : vector<8x8xbf16>, vector<8x32xbf16>, vector<8x32xf32> -> vector<8x32xf32>
    %92 = arith.truncf %91 : vector<8x32xf32> to vector<8x32xbf16>
    %93 = vector.extract_strided_slice %39 {offsets = [32, 0], sizes = [32, 128], strides = [1, 1]} : vector<128x128xbf16> to vector<32x128xbf16>
    %cst_30 = arith.constant dense<0.000000e+00> : vector<8x128xf32>
    %94 = tpu.matmul %92, %93, %cst_30 {dimension_numbers = #tpu.dot_dimension_numbers<[1], [0], [0], [1], [0, 0, 1, 1], [], []>} : vector<8x32xbf16>, vector<32x128xbf16>, vector<8x128xf32> -> vector<8x128xf32>
    %95 = arith.addf %72, %94 : vector<8x128xf32>
    %96 = vector.extract_strided_slice %36 {offsets = [0, 64], sizes = [8, 32], strides = [1, 1]} : vector<8x128xf32> to vector<8x32xf32>
    %97 = arith.truncf %96 : vector<8x32xf32> to vector<8x32xbf16>
    %98 = vector.extract_strided_slice %37 {offsets = [0, 64], sizes = [8, 32], strides = [1, 1]} : vector<8x128xf32> to vector<8x32xf32>
    %99 = arith.truncf %98 : vector<8x32xf32> to vector<8x32xbf16>
    %100 = vector.extract_strided_slice %38 {offsets = [0, 64], sizes = [8, 32], strides = [1, 1]} : vector<8x128xf32> to vector<8x32xf32>
    %101 = arith.truncf %100 : vector<8x32xf32> to vector<8x32xbf16>
    %cst_31 = arith.constant dense<0.000000e+00> : vector<8x8xf32>
    %102 = tpu.matmul %97, %99, %cst_31 {dimension_numbers = #tpu.dot_dimension_numbers<[1], [1], [0], [0], [0, 0, 1, 0], [], []>} : vector<8x32xbf16>, vector<8x32xbf16>, vector<8x8xf32> -> vector<8x8xf32>
    %103 = arith.addf %102, %48 : vector<8x8xf32>
    %cst_32 = arith.constant dense<0xFF800000> : vector<8xf32>
    %104 = vector.multi_reduction <maximumf>, %103, %cst_32 [1] : vector<8x8xf32> to vector<8xf32>
    %105 = vector.shape_cast %104 : vector<8xf32> to vector<8x1xf32>
    %106 = vector.broadcast %105 : vector<8x1xf32> to vector<8x8xf32>
    %107 = arith.subf %103, %106 : vector<8x8xf32>
    %108 = math.exp %107 : vector<8x8xf32>
    %cst_33 = arith.constant dense<0.000000e+00> : vector<8xf32>
    %109 = vector.multi_reduction <add>, %108, %cst_33 [1] : vector<8x8xf32> to vector<8xf32>
    %110 = vector.shape_cast %109 : vector<8xf32> to vector<8x1xf32>
    %111 = vector.broadcast %110 : vector<8x1xf32> to vector<8x8xf32>
    %112 = arith.divf %108, %111 : vector<8x8xf32>
    %113 = arith.truncf %112 : vector<8x8xf32> to vector<8x8xbf16>
    %cst_34 = arith.constant dense<0.000000e+00> : vector<8x32xf32>
    %114 = tpu.matmul %113, %101, %cst_34 {dimension_numbers = #tpu.dot_dimension_numbers<[1], [0], [0], [1], [0, 0, 1, 1], [], []>} : vector<8x8xbf16>, vector<8x32xbf16>, vector<8x32xf32> -> vector<8x32xf32>
    %115 = arith.truncf %114 : vector<8x32xf32> to vector<8x32xbf16>
    %116 = vector.extract_strided_slice %39 {offsets = [64, 0], sizes = [32, 128], strides = [1, 1]} : vector<128x128xbf16> to vector<32x128xbf16>
    %cst_35 = arith.constant dense<0.000000e+00> : vector<8x128xf32>
    %117 = tpu.matmul %115, %116, %cst_35 {dimension_numbers = #tpu.dot_dimension_numbers<[1], [0], [0], [1], [0, 0, 1, 1], [], []>} : vector<8x32xbf16>, vector<32x128xbf16>, vector<8x128xf32> -> vector<8x128xf32>
    %118 = arith.addf %95, %117 : vector<8x128xf32>
    %119 = vector.extract_strided_slice %36 {offsets = [0, 96], sizes = [8, 32], strides = [1, 1]} : vector<8x128xf32> to vector<8x32xf32>
    %120 = arith.truncf %119 : vector<8x32xf32> to vector<8x32xbf16>
    %121 = vector.extract_strided_slice %37 {offsets = [0, 96], sizes = [8, 32], strides = [1, 1]} : vector<8x128xf32> to vector<8x32xf32>
    %122 = arith.truncf %121 : vector<8x32xf32> to vector<8x32xbf16>
    %123 = vector.extract_strided_slice %38 {offsets = [0, 96], sizes = [8, 32], strides = [1, 1]} : vector<8x128xf32> to vector<8x32xf32>
    %124 = arith.truncf %123 : vector<8x32xf32> to vector<8x32xbf16>
    %cst_36 = arith.constant dense<0.000000e+00> : vector<8x8xf32>
    %125 = tpu.matmul %120, %122, %cst_36 {dimension_numbers = #tpu.dot_dimension_numbers<[1], [1], [0], [0], [0, 0, 1, 0], [], []>} : vector<8x32xbf16>, vector<8x32xbf16>, vector<8x8xf32> -> vector<8x8xf32>
    %126 = arith.addf %125, %48 : vector<8x8xf32>
    %cst_37 = arith.constant dense<0xFF800000> : vector<8xf32>
    %127 = vector.multi_reduction <maximumf>, %126, %cst_37 [1] : vector<8x8xf32> to vector<8xf32>
    %128 = vector.shape_cast %127 : vector<8xf32> to vector<8x1xf32>
    %129 = vector.broadcast %128 : vector<8x1xf32> to vector<8x8xf32>
    %130 = arith.subf %126, %129 : vector<8x8xf32>
    %131 = math.exp %130 : vector<8x8xf32>
    %cst_38 = arith.constant dense<0.000000e+00> : vector<8xf32>
    %132 = vector.multi_reduction <add>, %131, %cst_38 [1] : vector<8x8xf32> to vector<8xf32>
    %133 = vector.shape_cast %132 : vector<8xf32> to vector<8x1xf32>
    %134 = vector.broadcast %133 : vector<8x1xf32> to vector<8x8xf32>
    %135 = arith.divf %131, %134 : vector<8x8xf32>
    %136 = arith.truncf %135 : vector<8x8xf32> to vector<8x8xbf16>
    %cst_39 = arith.constant dense<0.000000e+00> : vector<8x32xf32>
    %137 = tpu.matmul %136, %124, %cst_39 {dimension_numbers = #tpu.dot_dimension_numbers<[1], [0], [0], [1], [0, 0, 1, 1], [], []>} : vector<8x8xbf16>, vector<8x32xbf16>, vector<8x32xf32> -> vector<8x32xf32>
    %138 = arith.truncf %137 : vector<8x32xf32> to vector<8x32xbf16>
    %139 = vector.extract_strided_slice %39 {offsets = [96, 0], sizes = [32, 128], strides = [1, 1]} : vector<128x128xbf16> to vector<32x128xbf16>
    %cst_40 = arith.constant dense<0.000000e+00> : vector<8x128xf32>
    %140 = tpu.matmul %138, %139, %cst_40 {dimension_numbers = #tpu.dot_dimension_numbers<[1], [0], [0], [1], [0, 0, 1, 1], [], []>} : vector<8x32xbf16>, vector<32x128xbf16>, vector<8x128xf32> -> vector<8x128xf32>
    %141 = arith.addf %118, %140 : vector<8x128xf32>
    %142 = arith.addf %3, %141 : vector<8x128xf32>
    %c0_41 = arith.constant 0 : index
    %c0_42 = arith.constant 0 : index
    %143 = vector.load %arg8[%c0_41, %c0_42] : memref<1x128xf32, #tpu.memory_space<vmem>>, vector<1x128xf32>
    %144 = vector.broadcast %143 : vector<1x128xf32> to vector<8x128xf32>
    %145 = arith.addf %142, %144 : vector<8x128xf32>
    %c0_43 = arith.constant 0 : index
    %c0_44 = arith.constant 0 : index
    %146 = vector.load %arg9[%c0_43, %c0_44] : memref<1x128xf32, #tpu.memory_space<vmem>>, vector<1x128xf32>
    %c0_45 = arith.constant 0 : index
    %c0_46 = arith.constant 0 : index
    %147 = vector.load %arg10[%c0_45, %c0_46] : memref<1x128xf32, #tpu.memory_space<vmem>>, vector<1x128xf32>
    %cst_47 = arith.constant dense<0.000000e+00> : vector<8xf32>
    %148 = vector.multi_reduction <add>, %145, %cst_47 [1] : vector<8x128xf32> to vector<8xf32>
    %149 = vector.shape_cast %148 : vector<8xf32> to vector<8x1xf32>
    %cst_48 = arith.constant 1.280000e+02 : f32
    %150 = vector.broadcast %cst_48 : f32 to vector<8x1xf32>
    %151 = arith.divf %149, %150 : vector<8x1xf32>
    %152 = vector.broadcast %151 : vector<8x1xf32> to vector<8x128xf32>
    %153 = arith.subf %145, %152 : vector<8x128xf32>
    %154 = arith.mulf %153, %153 : vector<8x128xf32>
    %cst_49 = arith.constant dense<0.000000e+00> : vector<8xf32>
    %155 = vector.multi_reduction <add>, %154, %cst_49 [1] : vector<8x128xf32> to vector<8xf32>
    %156 = vector.shape_cast %155 : vector<8xf32> to vector<8x1xf32>
    %cst_50 = arith.constant 1.280000e+02 : f32
    %157 = vector.broadcast %cst_50 : f32 to vector<8x1xf32>
    %158 = arith.divf %156, %157 : vector<8x1xf32>
    %159 = vector.broadcast %151 : vector<8x1xf32> to vector<8x128xf32>
    %160 = arith.subf %145, %159 : vector<8x128xf32>
    %cst_51 = arith.constant 9.99999974E-6 : f32
    %161 = vector.broadcast %cst_51 : f32 to vector<8x1xf32>
    %162 = arith.addf %158, %161 : vector<8x1xf32>
    %163 = math.rsqrt %162 : vector<8x1xf32>
    %164 = vector.broadcast %163 : vector<8x1xf32> to vector<8x128xf32>
    %165 = arith.mulf %160, %164 : vector<8x128xf32>
    %166 = vector.broadcast %146 : vector<1x128xf32> to vector<8x128xf32>
    %167 = arith.mulf %165, %166 : vector<8x128xf32>
    %168 = vector.broadcast %147 : vector<1x128xf32> to vector<8x128xf32>
    %169 = arith.addf %167, %168 : vector<8x128xf32>
    %170 = arith.truncf %169 : vector<8x128xf32> to vector<8x128xbf16>
    %c0_52 = arith.constant 0 : index
    %c0_53 = arith.constant 0 : index
    %171 = vector.load %arg11[%c0_52, %c0_53] : memref<128x256xbf16, #tpu.memory_space<vmem>>, vector<128x256xbf16>
    %cst_54 = arith.constant dense<0.000000e+00> : vector<8x256xf32>
    %172 = tpu.matmul %170, %171, %cst_54 {dimension_numbers = #tpu.dot_dimension_numbers<[1], [0], [0], [1], [0, 0, 1, 1], [], []>} : vector<8x128xbf16>, vector<128x256xbf16>, vector<8x256xf32> -> vector<8x256xf32>
    %c0_55 = arith.constant 0 : index
    %c0_56 = arith.constant 0 : index
    %173 = vector.load %arg12[%c0_55, %c0_56] : memref<1x256xf32, #tpu.memory_space<vmem>>, vector<1x256xf32>
    %174 = vector.broadcast %173 : vector<1x256xf32> to vector<8x256xf32>
    %175 = arith.addf %172, %174 : vector<8x256xf32>
    %cst_57 = arith.constant 0.000000e+00 : f32
    %176 = vector.broadcast %cst_57 : f32 to vector<8x256xf32>
    %177 = arith.maximumf %175, %176 : vector<8x256xf32>
    %178 = arith.truncf %177 : vector<8x256xf32> to vector<8x256xbf16>
    %c0_58 = arith.constant 0 : index
    %c0_59 = arith.constant 0 : index
    %179 = vector.load %arg13[%c0_58, %c0_59] : memref<256x128xbf16, #tpu.memory_space<vmem>>, vector<256x128xbf16>
    %cst_60 = arith.constant dense<0.000000e+00> : vector<8x128xf32>
    %180 = tpu.matmul %178, %179, %cst_60 {dimension_numbers = #tpu.dot_dimension_numbers<[1], [0], [0], [1], [0, 0, 1, 1], [], []>} : vector<8x256xbf16>, vector<256x128xbf16>, vector<8x128xf32> -> vector<8x128xf32>
    %c0_61 = arith.constant 0 : index
    %c0_62 = arith.constant 0 : index
    %181 = vector.load %arg14[%c0_61, %c0_62] : memref<1x128xf32, #tpu.memory_space<vmem>>, vector<1x128xf32>
    %182 = vector.broadcast %181 : vector<1x128xf32> to vector<8x128xf32>
    %183 = arith.addf %180, %182 : vector<8x128xf32>
    %184 = arith.addf %145, %183 : vector<8x128xf32>
    %c0_63 = arith.constant 0 : index
    %c0_64 = arith.constant 0 : index
    %185 = vector.load %arg15[%c0_63, %c0_64] : memref<1x128xf32, #tpu.memory_space<vmem>>, vector<1x128xf32>
    %c0_65 = arith.constant 0 : index
    %c0_66 = arith.constant 0 : index
    %186 = vector.load %arg16[%c0_65, %c0_66] : memref<1x128xf32, #tpu.memory_space<vmem>>, vector<1x128xf32>
    %cst_67 = arith.constant dense<0.000000e+00> : vector<8xf32>
    %187 = vector.multi_reduction <add>, %184, %cst_67 [1] : vector<8x128xf32> to vector<8xf32>
    %188 = vector.shape_cast %187 : vector<8xf32> to vector<8x1xf32>
    %cst_68 = arith.constant 1.280000e+02 : f32
    %189 = vector.broadcast %cst_68 : f32 to vector<8x1xf32>
    %190 = arith.divf %188, %189 : vector<8x1xf32>
    %191 = vector.broadcast %190 : vector<8x1xf32> to vector<8x128xf32>
    %192 = arith.subf %184, %191 : vector<8x128xf32>
    %193 = arith.mulf %192, %192 : vector<8x128xf32>
    %cst_69 = arith.constant dense<0.000000e+00> : vector<8xf32>
    %194 = vector.multi_reduction <add>, %193, %cst_69 [1] : vector<8x128xf32> to vector<8xf32>
    %195 = vector.shape_cast %194 : vector<8xf32> to vector<8x1xf32>
    %cst_70 = arith.constant 1.280000e+02 : f32
    %196 = vector.broadcast %cst_70 : f32 to vector<8x1xf32>
    %197 = arith.divf %195, %196 : vector<8x1xf32>
    %198 = vector.broadcast %190 : vector<8x1xf32> to vector<8x128xf32>
    %199 = arith.subf %184, %198 : vector<8x128xf32>
    %cst_71 = arith.constant 9.99999974E-6 : f32
    %200 = vector.broadcast %cst_71 : f32 to vector<8x1xf32>
    %201 = arith.addf %197, %200 : vector<8x1xf32>
    %202 = math.rsqrt %201 : vector<8x1xf32>
    %203 = vector.broadcast %202 : vector<8x1xf32> to vector<8x128xf32>
    %204 = arith.mulf %199, %203 : vector<8x128xf32>
    %205 = vector.broadcast %185 : vector<1x128xf32> to vector<8x128xf32>
    %206 = arith.mulf %204, %205 : vector<8x128xf32>
    %207 = vector.broadcast %186 : vector<1x128xf32> to vector<8x128xf32>
    %208 = arith.addf %206, %207 : vector<8x128xf32>
    %209 = vector.shape_cast %208 : vector<8x128xf32> to vector<1x8x128xf32>
    %210 = arith.truncf %209 : vector<1x8x128xf32> to vector<1x8x128xbf16>
    %c0_72 = arith.constant 0 : index
    %c0_73 = arith.constant 0 : index
    %c0_74 = arith.constant 0 : index
    %211 = vector.load %arg17[%c0_72, %c0_73, %c0_74] : memref<1x8x128xbf16, #tpu.memory_space<vmem>>, vector<1x8x128xbf16>
    tpu.vector_store %arg17[%c0_72, %c0_73, %c0_74], %210 {strides = array<i32>} : memref<1x8x128xbf16, #tpu.memory_space<vmem>>, vector<1x8x128xbf16>,
    return
  }
  func.func @transform_0(%arg0: i32, %arg1: memref<2xi32, #tpu.memory_space<smem>>) -> (i32, i32, i32) {
    %c0_i32 = arith.constant 0 : i32
    %c0_i32_0 = arith.constant 0 : i32
    %c0_i32_1 = arith.constant 0 : i32
    return %arg0, %c0_i32, %c0_i32_0 : i32, i32, i32
  }
  func.func @transform_1(%arg0: i32, %arg1: memref<2xi32, #tpu.memory_space<smem>>) -> (i32, i32) {
    %c0_i32 = arith.constant 0 : i32
    %c0_i32_0 = arith.constant 0 : i32
    %c0_i32_1 = arith.constant 0 : i32
    return %c0_i32, %c0_i32_0 : i32, i32
  }
  func.func @transform_2(%arg0: i32, %arg1: memref<2xi32, #tpu.memory_space<smem>>) -> (i32, i32) {
    %c0_i32 = arith.constant 0 : i32
    %c0_i32_0 = arith.constant 0 : i32
    %c0_i32_1 = arith.constant 0 : i32
    return %c0_i32, %c0_i32_0 : i32, i32
  }
  func.func @transform_3(%arg0: i32, %arg1: memref<2xi32, #tpu.memory_space<smem>>) -> (i32, i32) {
    %c0_i32 = arith.constant 0 : i32
    %c0_i32_0 = arith.constant 0 : i32
    %c0_i32_1 = arith.constant 0 : i32
    return %c0_i32, %c0_i32_0 : i32, i32
  }
  func.func @transform_4(%arg0: i32, %arg1: memref<2xi32, #tpu.memory_space<smem>>) -> (i32, i32) {
    %c0_i32 = arith.constant 0 : i32
    %c0_i32_0 = arith.constant 0 : i32
    %c0_i32_1 = arith.constant 0 : i32
    return %c0_i32, %c0_i32_0 : i32, i32
  }
  func.func @transform_5(%arg0: i32, %arg1: memref<2xi32, #tpu.memory_space<smem>>) -> (i32, i32) {
    %c0_i32 = arith.constant 0 : i32
    %c0_i32_0 = arith.constant 0 : i32
    %c0_i32_1 = arith.constant 0 : i32
    return %c0_i32, %c0_i32_0 : i32, i32
  }
  func.func @transform_6(%arg0: i32, %arg1: memref<2xi32, #tpu.memory_space<smem>>) -> (i32, i32) {
    %c0_i32 = arith.constant 0 : i32
    %c0_i32_0 = arith.constant 0 : i32
    %c0_i32_1 = arith.constant 0 : i32
    return %c0_i32, %c0_i32_0 : i32, i32
  }
  func.func @transform_7(%arg0: i32, %arg1: memref<2xi32, #tpu.memory_space<smem>>) -> (i32, i32) {
    %c0_i32 = arith.constant 0 : i32
    %c0_i32_0 = arith.constant 0 : i32
    %c0_i32_1 = arith.constant 0 : i32
    return %c0_i32, %c0_i32_0 : i32, i32
  }
  func.func @transform_8(%arg0: i32, %arg1: memref<2xi32, #tpu.memory_space<smem>>) -> (i32, i32) {
    %c0_i32 = arith.constant 0 : i32
    %c0_i32_0 = arith.constant 0 : i32
    %c0_i32_1 = arith.constant 0 : i32
    return %c0_i32, %c0_i32_0 : i32, i32
  }
  func.func @transform_9(%arg0: i32, %arg1: memref<2xi32, #tpu.memory_space<smem>>) -> (i32, i32) {
    %c0_i32 = arith.constant 0 : i32
    %c0_i32_0 = arith.constant 0 : i32
    %c0_i32_1 = arith.constant 0 : i32
    return %c0_i32, %c0_i32_0 : i32, i32
  }
  func.func @transform_10(%arg0: i32, %arg1: memref<2xi32, #tpu.memory_space<smem>>) -> (i32, i32) {
    %c0_i32 = arith.constant 0 : i32
    %c0_i32_0 = arith.constant 0 : i32
    %c0_i32_1 = arith.constant 0 : i32
    return %c0_i32, %c0_i32_0 : i32, i32
  }
  func.func @transform_11(%arg0: i32, %arg1: memref<2xi32, #tpu.memory_space<smem>>) -> (i32, i32) {
    %c0_i32 = arith.constant 0 : i32
    %c0_i32_0 = arith.constant 0 : i32
    %c0_i32_1 = arith.constant 0 : i32
    return %c0_i32, %c0_i32_0 : i32, i32
  }
  func.func @transform_12(%arg0: i32, %arg1: memref<2xi32, #tpu.memory_space<smem>>) -> (i32, i32) {
    %c0_i32 = arith.constant 0 : i32
    %c0_i32_0 = arith.constant 0 : i32
    %c0_i32_1 = arith.constant 0 : i32
    return %c0_i32, %c0_i32_0 : i32, i32
  }
  func.func @transform_13(%arg0: i32, %arg1: memref<2xi32, #tpu.memory_space<smem>>) -> (i32, i32) {
    %c0_i32 = arith.constant 0 : i32
    %c0_i32_0 = arith.constant 0 : i32
    %c0_i32_1 = arith.constant 0 : i32
    return %c0_i32, %c0_i32_0 : i32, i32
  }
  func.func @transform_14(%arg0: i32, %arg1: memref<2xi32, #tpu.memory_space<smem>>) -> (i32, i32) {
    %c0_i32 = arith.constant 0 : i32
    %c0_i32_0 = arith.constant 0 : i32
    %c0_i32_1 = arith.constant 0 : i32
    return %c0_i32, %c0_i32_0 : i32, i32
  }
  func.func @transform_15(%arg0: i32, %arg1: memref<2xi32, #tpu.memory_space<smem>>) -> (i32, i32, i32) {
    %c0_i32 = arith.constant 0 : i32
    %c0_i32_0 = arith.constant 0 : i32
    %c0_i32_1 = arith.constant 0 : i32
    return %arg0, %c0_i32, %c0_i32_0 : i32, i32, i32
  }
}

</mosaic_0001>

<bundles_post_ra>
// kernel: seq2seq_forward.2
= control target key start
LH: loop header
LB: loop body
LE: loop exit
PB: predicated region body
PF: predicated region fallthrough
CT: control target
= control target key end

     0   :  { %s2211_s24 = smov [#allocation3]   ;;  %s2515_s0 = inlined_call_operand.vmem [shape: s32[2], index: 0, kind: input, shape index: {}]   ;;  %s2516_s1 = inlined_call_operand.vmem [shape: bf16[2,8,128], index: 1, kind: input, shape index: {}]   ;;  %s2517_s2 = inlined_call_operand.vmem [shape: f32[1,128], index: 2, kind: input, shape index: {}, may-alias: {2,8,14}]   ;;  %s2518_s3 = inlined_call_operand.vmem [shape: f32[1,128], index: 3, kind: input, shape index: {}, may-alias: {3,7,9,13,15}]   ;;  %s2519_s4 = inlined_call_operand.hbm [shape: bf16[128,384], index: 4, kind: input, shape index: {}]   ;;  %s2520_s5 = inlined_call_operand.vmem [shape: f32[1,384], index: 5, kind: input, shape index: {}]   ;;  %s2521_s6 = inlined_call_operand.vmem [shape: bf16[128,128], index: 6, kind: input, shape index: {}]   ;;  %s2522_s7 = inlined_call_operand.vmem [shape: f32[1,128], index: 7, kind: input, shape index: {}, may-alias: {3,7,9,13,15}]   ;;  %s2523_s8 = inlined_call_operand.vmem [shape: f32[1,128], index: 8, kind: input, shape index: {}, may-alias: {2,8,14}]   ;;  %s2524_s9 = inlined_call_operand.vmem [shape: f32[1,128], index: 9, kind: input, shape index: {}, may-alias: {3,7,9,13,15}]   ;;  %s2525_s10 = inlined_call_operand.hbm [shape: bf16[128,256], index: 10, kind: input, shape index: {}]   ;;  %s2526_s11 = inlined_call_operand.vmem [shape: f32[1,256], index: 11, kind: input, shape index: {}]   ;;  %s2527_s12 = inlined_call_operand.hbm [shape: bf16[256,128], index: 12, kind: input, shape index: {}]   ;;  %s2528_s13 = inlined_call_operand.vmem [shape: f32[1,128], index: 13, kind: input, shape index: {}, may-alias: {3,7,9,13,15}]   ;;  %s2529_s14 = inlined_call_operand.vmem [shape: f32[1,128], index: 14, kind: input, shape index: {}, may-alias: {2,8,14}]   ;;  %s2530_s15 = inlined_call_operand.vmem [shape: f32[1,128], index: 15, kind: input, shape index: {}, may-alias: {3,7,9,13,15}]   ;;  %s2531_s16 = inlined_call_operand.vmem [shape: bf16[2,8,128], index: 16, kind: output, shape index: {}]  }
   0x1   :  { %2533 = sst [smem:[#allocation13_spill]] %s2515_s0 }
   0x2   :  { %2534 = sst [smem:[#allocation14_spill]] %s2519_s4 }
   0x3   :  { %2535 = sst [smem:[#allocation15_spill]] %s2524_s9 }
   0x4   :  { %2536 = sst [smem:[#allocation16_spill]] %s2525_s10 }
   0x5   :  { %2537 = sst [smem:[#allocation17_spill]] %s2531_s16 }
   0x6   :  { %s2538_s23 = sld [smem:[#allocation13_spill]] }
   0xc   :  { %s22_s9 = sshll.u32 %s2538_s23, 4  ;;  %s23_s9 = int_to_ptr.vmem [resolvable:$true] %s22_s9 }
   0xd   :  { %25 = dma.vmem_to_smem %s23_s9, 16, %s2211_s24, [#allocation2] }
   0xe   :  { %2197 = dma.done.wait [#allocation2], 16 }
   0xf   :  { %2198 = vsyncadd [#allocation2], 4294967280 }
  0x10   :  { %28 = sfence }
  0x11   :  { %29 = vsyncpa [#allocation5], 0 }
  0x12   :  { %30 = vsyncpa [#allocation7], 0  ;;  %s2314_s25 = smov 0  }
  0x13 LB: > { %2539 = sst [smem:[#allocation12_spill]] %s2209_s25  ;;  %s2323_s9 = sadd.s32 4294967295, %s2209_s25   ;;  %s2209_s25 = sphi %s2314_s25, %s36_s25  }
  0x14   : > { %s2540_s10 = sld [smem:[#allocation16_spill]]  ;;  %p1663_p0 = scmp.ge.s32.totalorder %s2209_s25, 1 }
  0x15   : > { %p387_p1 = scmp.lt.s32.totalorder %s2209_s25, 3  ;;  %p2030_p2 = scmp.eq.s32.totalorder %s2323_s9, 0 }
  0x16   : > { %s2212_s30 = smov [#allocation6]   ;;  %s2542_s4 = sld [smem:[#allocation14_spill]] }
  0x17   : > { %p2328_p3 = pnand %p1663_p0, %p387_p1  ;;  %s435_s0 = sshll.u32 %s2212_s30, 4  ;;  %s436_s0 = int_to_ptr.vmem [resolvable:$true] %s435_s0 }
  0x18   : > { %s2213_s21 = smov [#allocation4]   ;;  %s2214_s23 = smov 128  }
  0x19   : > { %p2020_p4 = pneg %p2328_p3  ;;  %s406_s22 = sshll.u32 %s2213_s21, 4  ;;  %s407_s22 = int_to_ptr.vmem [resolvable:$true] %s406_s22 }
  0x1a   : > { %s433_s28 = sshll.u32 %s2540_s10, 4  ;;  %s2215_s24 = smov 8   ;;  %s434_s28 = int_to_ptr.hbm [resolvable:$true] %s433_s28 }
  0x1b   : > { %p2339_p5 = pnand %p2030_p2, %p2020_p4  ;;  %s450_s30 = sshll.u32 %s2527_s12, 4  ;;  %s451_s30 = int_to_ptr.hbm [resolvable:$true] %s450_s30 }
  0x1c   : > { %s404_s19 = sshll.u32 %s2542_s4, 4  ;;  %s2216_s17 = smov 192   ;;  %s405_s19 = int_to_ptr.hbm [resolvable:$true] %s404_s19 }
  0x1d   : > { %2026 = dma.hbm_to_vmem [thread:$0]  (!%p2339_p5), %s434_s28, 2048, %s436_s0, [#allocation7], %s2214_s23, %s2214_s23, %s2215_s24  }
  0x1e   : > { %s2217_s18 = smov 12   ;;  %s2218_s4 = smov [#allocation8]  }
  0x1f   : > { %2023 = dma.hbm_to_vmem [thread:$0]  (!%p2339_p5), %s405_s19, 3072, %s407_s22, [#allocation5], %s2216_s17, %s2216_s17, %s2217_s18  }
  0x20   : > { %s452_s10 = sshll.u32 %s2218_s4, 4  ;;  %s2219_s25 = smov 64   ;;  %s453_s10 = int_to_ptr.vmem [resolvable:$true] %s452_s10 }
  0x21   : > { %s2220_s16 = smov 4   ;;  %484 = sbr.rel (%p2328_p3) target bundleno = 2481 (0x9b1), region = 80 }
  0x22   : > { %2029 = dma.hbm_to_vmem [thread:$0]  (!%p2339_p5), %s451_s30, 2048, %s453_s10, [#allocation7], %s2219_s25, %s2219_s25, %s2220_s16  }
  0x26   : > { %2200 = dma.done.wait (%p2030_p2), [#allocation5], 3072  }
  0x27   : > { %2202 = vsyncadd (%p2030_p2), [#allocation5], 4294964224 }
  0x28   : > { %2204 = dma.done.wait (%p2030_p2), [#allocation7], 4096  }
  0x29   : > { %2206 = vsyncadd (%p2030_p2), [#allocation7], 4294963200  ;;  %p541_p6 = scmp.lt.s32.totalorder %s2323_s9, 1  ;;  %v2221_v2 = vmov 128.0   ;;  %v1760_v3 = vld [vmem:[#allocation4 + $0xa8] sm:$0xf] }
  0x2a   : > { %2067 = vrcp.f32 %v2221_v2  ;;  %v1966_v4 = vld [vmem:[#allocation4 + $0xb0] sm:$0xf0]  ;;  %v1965_v5 = vld [vmem:[#allocation4 + $0xac] sm:$0xf]  ;;  %v1762_v7 = vld [vmem:[#allocation4 + $0xb4] sm:$0xf0] }
  0x2b   : > { %s2364_s4 = scalar_select %p541_p6, %s2323_s9, 1  ;;  %v1761_v6 = vor.u32 %v1966_v4, %v1760_v3  ;;  %v1768_v8 = vld [vmem:[#allocation4 + $0xb0] sm:$0xf]  ;;  %v1967_v9 = vld [vmem:[#allocation4 + $0xb8] sm:$0xf0]  ;;  %v1765_v10 = vor.u32 %v1965_v5, %v1762_v7  ;;  %vm823_vm4 = vcmask 261120  }
  0x2c   : > { %v1769_v11 = vor.u32 %v1967_v9, %v1768_v8  ;;  %v1748_v22 = vld [vmem:[#allocation4 + $0x90] sm:$0xf]  ;;  %v1963_v23 = vld [vmem:[#allocation4 + $0x98] sm:$0xf0]  ;;  %v1962_v24 = vld [vmem:[#allocation4 + $0x94] sm:$0xf] }
  0x2d   : > { %s1672_s10 = sshll.u32 %s2364_s4, 2  ;;  %758 = vmatpush.bf16.msra.mxu0 %v1761_v6  ;;  %771 = vmatpush.bf16.msra.mxu1 %v1765_v10  ;;  %v1749_v25 = vor.u32 %v1963_v23, %v1748_v22  ;;  %v1750_v26 = vld [vmem:[#allocation4 + $0x9c] sm:$0xf0]  ;;  %v1756_v27 = vld [vmem:[#allocation4 + $0x98] sm:$0xf]  ;;  %s2222_s23 = smov 32  }
  0x2e   : > { %s544_s28 = scalar_lea.vmem %s2516_s1, %s1672_s10  ;;  %784 = vmatpush.bf16.msra.mxu2 %v1769_v11  ;;  %v1964_v28 = vld [vmem:[#allocation4 + $0xa0] sm:$0xf0]  ;;  %v1753_v29 = vor.u32 %v1962_v24, %v1750_v26  ;;  %v1736_v31 = vld [vmem:[#allocation4 + $0x78] sm:$0xf]  ;;  %v1959_v33 = vld [vmem:[#allocation4 + $0x7c] sm:$0xf] }
  0x2f   : > { %v550_v0 = vld [vmem:[%s544_s28] sm:$0xf]  ;;  %v1757_v30 = vor.u32 %v1964_v28, %v1756_v27  ;;  %v1960_v32 = vld [vmem:[#allocation4 + $0x80] sm:$0xf0]  ;;  %v1738_v35 = vld [vmem:[#allocation4 + $0x84] sm:$0xf0] }
  0x30   : > { %v2372_v1 = vunpack.c.l.bf16 %v550_v0  ;;  %v2068_v12 = vpop.eup %2067  ;;  %v1737_v34 = vor.u32 %v1960_v32, %v1736_v31  ;;  %v1744_v36 = vld [vmem:[#allocation4 + $0x80] sm:$0xf]  ;;  %v1961_v37 = vld [vmem:[#allocation4 + $0x88] sm:$0xf0]  ;;  %v1741_v38 = vor.u32 %v1959_v33, %v1738_v35  ;;  %v1956_v42 = vld [vmem:[#allocation4 + $0x64] sm:$0xf] }
  0x31   : > { %v557_v13 = vmul.f32 128.0, %v2068_v12  ;;  %vm561_vm0 = vweird.f32 %v2068_v12  ;;  %759 = vmatpush.bf16.msra.mxu0 %v1749_v25  ;;  %772 = vmatpush.bf16.msra.mxu1 %v1753_v29  ;;  %v1745_v39 = vor.u32 %v1961_v37, %v1744_v36  ;;  %v1724_v40 = vld [vmem:[#allocation4 + $0x60] sm:$0xf]  ;;  %v1957_v41 = vld [vmem:[#allocation4 + $0x68] sm:$0xf0]  ;;  %s2223_s24 = smov 96  }
  0x32   : > { %554 = vadd.xlane.f32.xlu0 %v2372_v1  ;;  %785 = vmatpush.bf16.msra.mxu2 %v1757_v30  ;;  %v1725_v43 = vor.u32 %v1957_v41, %v1724_v40  ;;  %v1726_v44 = vld [vmem:[#allocation4 + $0x6c] sm:$0xf0]  ;;  %v1732_v45 = vld [vmem:[#allocation4 + $0x68] sm:$0xf]  ;;  %v1958_v46 = vld [vmem:[#allocation4 + $0x70] sm:$0xf0] }
  0x33   : > { %v558_v14 = vsub.f32 1.0, %v557_v13  ;;  %v1729_v47 = vor.u32 %v1956_v42, %v1726_v44  ;;  %v1733_v48 = vor.u32 %v1958_v46, %v1732_v45  ;;  %v1712_v49 = vld [vmem:[#allocation4 + $0x48] sm:$0xf]  ;;  %v1954_v50 = vld [vmem:[#allocation4 + $0x50] sm:$0xf0]  ;;  %vm872_vm5 = vcmask 1043456  }
  0x34   : > { %v1953_v51 = vld [vmem:[#allocation4 + $0x4c] sm:$0xf]  ;;  %v1713_v52 = vor.u32 %v1954_v50, %v1712_v49  ;;  %v1714_v53 = vld [vmem:[#allocation4 + $0x54] sm:$0xf0]  ;;  %v1720_v54 = vld [vmem:[#allocation4 + $0x50] sm:$0xf] }
  0x35   : > { %v559_v15 = vmul.f32 %v2068_v12, %v558_v14  ;;  %760 = vmatpush.bf16.msra.mxu0 %v1737_v34  ;;  %773 = vmatpush.bf16.msra.mxu1 %v1741_v38  ;;  %v1955_v55 = vld [vmem:[#allocation4 + $0x58] sm:$0xf0]  ;;  %v1717_v56 = vor.u32 %v1953_v51, %v1714_v53  ;;  %v1700_v58 = vld [vmem:[#allocation4 + $0x30] sm:$0xf]  ;;  %v1950_v60 = vld [vmem:[#allocation4 + $0x34] sm:$0xf] }
  0x36   : > { %786 = vmatpush.bf16.msra.mxu2 %v1745_v39  ;;  %v1721_v57 = vor.u32 %v1955_v55, %v1720_v54  ;;  %v1951_v59 = vld [vmem:[#allocation4 + $0x38] sm:$0xf0]  ;;  %v1702_v62 = vld [vmem:[#allocation4 + $0x3c] sm:$0xf0]  ;;  %v1708_v63 = vld [vmem:[#allocation4 + $0x38] sm:$0xf] }
  0x37   : > { %v560_v16 = vadd.f32 %v2068_v12, %v559_v15  ;;  %v1701_v61 = vor.u32 %v1951_v59, %v1700_v58  ;;  %v1952_v0 = vld [vmem:[#allocation4 + $0x40] sm:$0xf0]  ;;  %v1705_v2 = vor.u32 %v1950_v60, %v1702_v62  ;;  %v1688_v4 = vld [vmem:[#allocation4 + $0x18] sm:$0xf]  ;;  %v1947_v6 = vld [vmem:[#allocation4 + $0x1c] sm:$0xf] }
  0x38   : > { %v1709_v3 = vor.u32 %v1952_v0, %v1708_v63  ;;  %v1948_v5 = vld [vmem:[#allocation4 + $0x20] sm:$0xf0]  ;;  %v1690_v8 = vld [vmem:[#allocation4 + $0x24] sm:$0xf0]  ;;  %v1696_v9 = vld [vmem:[#allocation4 + $0x20] sm:$0xf]  ;;  %v815_v0 = vlaneseq }
  0x39   : > { %v2375_v17 = vsel %vm561_vm0, %v2068_v12, %v560_v16  ;;  %761 = vmatpush.bf16.msra.mxu0 %v1725_v43  ;;  %774 = vmatpush.bf16.msra.mxu1 %v1729_v47  ;;  %v1689_v7 = vor.u32 %v1948_v5, %v1688_v4  ;;  %v1949_v10 = vld [vmem:[#allocation4 + $0x28] sm:$0xf0]  ;;  %v1693_v11 = vor.u32 %v1947_v6, %v1690_v8  ;;  %v1676_v13 = vld [vmem:[#allocation4] sm:$0xf]  ;;  %v1944_v15 = vld [vmem:[#allocation4 + $0x4] sm:$0xf] }
  0x3a   : > { %787 = vmatpush.bf16.msra.mxu2 %v1733_v48  ;;  %v1697_v12 = vor.u32 %v1949_v10, %v1696_v9  ;;  %v1945_v14 = vld [vmem:[#allocation4 + $0x8] sm:$0xf0]  ;;  %v2059_v33 = vld [vmem:[%s2517_s2] ss:$0 sm:$0xff]  ;;  %s2224_s26 = smov 64   ;;  %s814_s16 = sld [smem:[#allocation3 + %s2323_s9]] }
  0x3b   : > { %v1677_v16 = vor.u32 %v1945_v14, %v1676_v13  ;;  %v2060_v36 = vld [vmem:[%s2518_s3] ss:$0 sm:$0xff]  ;;  %v1969_v58 = vld [vmem:[%s2521_s6 + $0x8] sm:$0xff]  ;;  %v2225_v4 = vmov -1e+09   ;;  %vm843_vm7 = vcmask 64512  }
  0x3c   : > { %v622_v40 = vld [vmem:[%s2520_s5] sm:$0x7]  ;;  %s2544_s25 = sld [smem:[#allocation15_spill]] }
  0x3d   : > { %762 = vmatpush.bf16.msra.mxu0 %v1713_v52  ;;  %775 = vmatpush.bf16.msra.mxu1 %v1717_v56  ;;  %v625_v41 = vperm.slane %v622_v40, 1  ;;  %v624_v42 = vperm.slane %v622_v40, 0  ;;  %v626_v47 = vperm.slane %v622_v40, 2  ;;  %v1968_v59 = vld [vmem:[%s2521_s6] sm:$0xff]  ;;  %s2545_s27 = sld [smem:[#allocation17_spill]] }
  0x3e   : > { %788 = vmatpush.bf16.msra.mxu2 %v1721_v57 }
  0x41   : > { %763 = vmatpush.bf16.msra.mxu0 %v1701_v61  ;;  %776 = vmatpush.bf16.msra.mxu1 %v1705_v2  ;;  %v816_v2 = vand.u32 127, %v815_v0 }
  0x42   : > { %789 = vmatpush.bf16.msra.mxu2 %v1709_v3  ;;  %v817_v3 = vstv %s814_s16 }
  0x43   : > { %vm818_vm6 = vcmp.lt.s32.totalorder %v816_v2, %v817_v3  ;;  %s548_s30 = scalar_lea.vmem %s2545_s27, %s1672_s10 }
  0x44   : > { %v2414_v5 = vsel %vm818_vm6, 0.0, %v2225_v4 }
  0x45   : > { %764 = vmatpush.bf16.msra.mxu0 %v1689_v7  ;;  %777 = vmatpush.bf16.msra.mxu1 %v1693_v11 }
  0x46   : > { %790 = vmatpush.bf16.msra.mxu2 %v1697_v12 }
  0x49   : > { %765 = vmatpush.bf16.msra.mxu0 %v1677_v16 }
  0xa5   : > { %v555_v18 = vpop.xlane.xlu0 %554 }
  0xa6   : > { %v563_v19 = vmul.f32 %v2375_v17, %v555_v18  ;;  %v1678_v18 = vld [vmem:[#allocation4 + $0xc] sm:$0xf0] }
  0xa7   : > { %v1681_v22 = vor.u32 %v1944_v15, %v1678_v18 }
  0xa8   : > { %v2379_v20 = vsub.f32 %v2372_v1, %v563_v19  ;;  %v1684_v19 = vld [vmem:[#allocation4 + $0x8] sm:$0xf] }
  0xa9   : > { %778 = vmatpush.bf16.msra.mxu1 %v1681_v22 }
  0xaa   : > { %v565_v21 = vmul.f32 %v2379_v20, %v2379_v20 }
  0xac   : > { %566 = vadd.xlane.f32.xlu0 %v565_v21  ;;  %v1946_v21 = vld [vmem:[#allocation4 + $0x10] sm:$0xf0] }
  0xad   : > { %v1685_v23 = vor.u32 %v1946_v21, %v1684_v19 }
  0xaf   : > { %791 = vmatpush.bf16.msra.mxu2 %v1685_v23 }
  0xb3   : > { %1012 = vmatpush.bf16.msrb.mxu2 %v1969_v58 }
  0xb7   : > { %1013 = vmatpush.bf16.msrb.mxu2 %v1968_v59 }
 0x11f   : > { %v567_v24 = vpop.xlane.xlu0 %566 }
 0x120   : > { %v568_v25 = vmul.f32 %v567_v24, %v2375_v17 }
 0x122   : > { %v569_v26 = vadd.f32 1e-05, %v568_v25 }
 0x124   : > { %2069 = vrsqrt.f32 %v569_v26  ;;  %vm576_vm2 = vweird.f32 %v569_v26 }
 0x12a   : > { %v2070_v27 = vpop.eup %2069 }
 0x12b   : > { %v571_v28 = vmul.f32 %v2070_v27, %v569_v26  ;;  %vm577_vm1 = vweird.f32 %v2070_v27 }
 0x12c   : > { %vm578_vm3 = vmor %vm576_vm2, %vm577_vm1 }
 0x12d   : > { %v572_v29 = vmul.f32 %v2070_v27, %v571_v28 }
 0x12f   : > { %v573_v30 = vmul.f32 0.5, %v572_v29 }
 0x131   : > { %v574_v31 = vsub.f32 1.5, %v573_v30 }
 0x133   : > { %v575_v32 = vmul.f32 %v2070_v27, %v574_v31 }
 0x135   : > { %v579_v34 = vsel %vm578_vm3, %v2070_v27, %v575_v32 }
 0x136   : > { %v580_v35 = vmul.f32 %v579_v34, %v2379_v20 }
 0x138   : > { %v584_v37 = vmul.f32 %v2059_v33, %v580_v35 }
 0x13a   : > { %v588_v38 = vadd.f32 %v2060_v36, %v584_v37 }
 0x13c   : > { %v589_v39 = vpack.c.bf16 %v588_v38, %v588_v38 }
 0x13e   : > { %766 = vmatmul.bf16.vlgmr.msra.gmra.mxu0 %v589_v39  ;;  %779 = vmatmul.bf16.vlgmr.msra.gmra.mxu1 %v589_v39 }
 0x13f   : > { %792 = vmatmul.bf16.vlgmr.msra.gmra.mxu2 %v589_v39 }
 0x1bb   : > { %v767_v43 = vpop.f32.mrf.mxu0  ;;  %v780_v44 = vpop.f32.mrf.mxu1 }
 0x1bc   : > { %v781_v45 = vadd.f32 %v780_v44, %v625_v41  ;;  %v768_v20 = vadd.f32 %v767_v43, %v624_v42 }
 0x1be   : > { %v821_v46 = vpack.c.bf16 %v781_v45, %v781_v45  ;;  %v797_v49 = vmul.f32 0.17677669, %v768_v20 }
 0x1c0   : > { %1120 = vrot.lane.b32.xlu0 %v821_v46, %s2222_s23  ;;  %894 = vrot.lane.b32.xlu2 %v821_v46, %s2223_s24  ;;  %v828_v48 = vsel %vm823_vm4, %v821_v46, 0  ;;  %v820_v55 = vpack.c.bf16 %v797_v49, %v797_v49 }
 0x1c1   : > { %837 = vmatpush.bf16.xpose.msra.mxu3 %v828_v48 }
 0x1c2   : > { %v793_v50 = vpop.f32.mrf.mxu2 }
 0x1c3   : > { %v794_v51 = vadd.f32 %v793_v50, %v626_v47  ;;  %v769_v52 = vpop.f32.mrf.mxu0  ;;  %v782_v53 = vpop.f32.mrf.mxu1 }
 0x1c5   : > { %v2397_v54 = vpack.c.bf16 %v794_v51, %v794_v51 }
 0x1c7   : > { %v874_v56 = vsel %vm872_vm5, %v2397_v54, 0 }
 0x1c8   : > { %891 = vrot.lane.b32.xlu2 %v820_v55, %s2223_s24  ;;  %1770 = vmatmul.msk.bf16.vlgmr.msra.gmra.mxu3 %vm823_vm4, %v820_v55 }
 0x1c9   : > { %883 = vmatpush.bf16.msrb.mxu3 %v874_v56 }
 0x1ca   : > { %v795_v57 = vpop.f32.mrf.mxu2 }
 0x1d0   : > { %1118 = vrot.lane.b32.xlu2 %v820_v55, %s2222_s23 }
 0x1d8   : > { %1019 = vrot.lane.b32.xlu2 %v820_v55, %s2224_s26 }
 0x21a   : > { %v895_v60 = vpop.permute.xlu2 %894 }
 0x21b   : > { %v900_v61 = vsel %vm823_vm4, %v895_v60, 0 }
 0x21c   : > { %909 = vmatpush.bf16.xpose.msra.mxu3 %v900_v61 }
 0x222   : > { %v892_v32 = vpop.permute.xlu2 %891 }
 0x22a   : > { %v1119_v33 = vpop.permute.xlu2 %1118 }
 0x232   : > { %v1121_v62 = vpop.permute.xlu0 %1120  ;;  %v1020_v34 = vpop.permute.xlu2 %1019 }
 0x233   : > { %v1126_v63 = vsel %vm823_vm4, %v1121_v62, 0 }
 0x234   : > { %1135 = vmatpush.bf16.xpose.msra.mxu2 %v1126_v63 }
 0x24b   : > { %v839_v6 = vpop.f32.mrf.mxu3 }
 0x24c   : > { %v840_v7 = vadd.f32 %v839_v6, %v2414_v5 }
 0x24e   : > { %v844_v8 = vsel %vm843_vm7, %v840_v7, -inf }
 0x24f   : > { %845 = vmax.xlane.f32.xlu1 %v844_v8 }
 0x253   : > { %v841_v9 = vpop.f32.mrf.mxu3 }
 0x2c2   : > { %v846_v10 = vpop.xlane.xlu1 %845 }
 0x2c3   : > { %v847_v11 = vsub.f32 %v840_v7, %v846_v10 }
 0x2c5   : > { %v848_v12 = vmul.f32 1.442695, %v847_v11 }
 0x2c7   : > { %2071 = vpow2.f32 %v848_v12 }
 0x2cd   : > { %v2072_v13 = vpop.eup %2071 }
 0x2ce   : > { %v850_v14 = vsel %vm843_vm7, %v2072_v13, 0.0 }
 0x2cf   : > { %851 = vadd.xlane.f32.xlu1 %v850_v14 }
 0x2e8   : > { %1021 = vrot.lane.b32.xlu1 %v821_v46, %s2224_s26 }
 0x342   : > { %v852_v15 = vpop.xlane.xlu1 %851 }
 0x343   : > { %2073 = vrcp.f32 %v852_v15  ;;  %v864_v21 = vand.u32 2147483648, %v852_v15  ;;  %v862_v23 = vand.u32 2147483647, %v852_v15  ;;  %vm858_vm9 = vweird.f32 %v852_v15 }
 0x345   : > { %v865_v25 = vor.u32 1.1754944e-38, %v864_v21  ;;  %vm863_vm11 = vcmp.eq.f32.partialorder %v862_v23, 8.507059e+37 }
 0x349   : > { %v2074_v16 = vpop.eup %2073 }
 0x34a   : > { %v854_v18 = vmul.f32 %v2074_v16, %v852_v15  ;;  %vm859_vm8 = vweird.f32 %v2074_v16 }
 0x34b   : > { %vm860_vm10 = vmor %vm858_vm9, %vm859_vm8 }
 0x34c   : > { %v855_v19 = vsub.f32 1.0, %v854_v18 }
 0x34e   : > { %v856_v22 = vmul.f32 %v2074_v16, %v855_v19 }
 0x350   : > { %v857_v24 = vadd.f32 %v2074_v16, %v856_v22 }
 0x352   : > { %v861_v26 = vsel %vm860_vm10, %v2074_v16, %v857_v24 }
 0x353   : > { %v866_v27 = vsel %vm863_vm11, %v865_v25, %v861_v26 }
 0x354   : > { %v867_v28 = vmul.f32 %v2072_v13, %v866_v27 }
 0x356   : > { %v868_v29 = vpack.c.bf16 %v867_v28, %v867_v28 }
 0x358   : > { %1771 = vmatmul.msk.bf16.vlgmr.msrb.gmra.mxu3 %vm843_vm7, %v868_v29 }
 0x35a   : > { %v1022_v30 = vpop.permute.xlu1 %1021 }
 0x35b   : > { %v1027_v31 = vsel %vm823_vm4, %v1022_v30, 0 }
 0x35c   : > { %1036 = vmatpush.bf16.xpose.msrb.mxu3 %v1027_v31 }
 0x368   : > { %1772 = vmatmul.msk.bf16.vlgmr.msra.gmra.mxu3 %vm823_vm4, %v892_v32 }
 0x378   : > { %1792 = vmatmul.msk.bf16.vlgmr.msrb.gmra.mxu3 %vm823_vm4, %v1020_v34 }
 0x3db   : > { %v885_v35 = vpop.f32.mrf.mxu3 }
 0x3dc   : > { %v889_v36 = vpack.c.bf16 %v885_v35, %v885_v35 }
 0x3de   : > { %1791 = vmatmul.msk.bf16.vlgmr.msrb.gmra.mxu2 %vm823_vm4, %v889_v36  ;;  %v1971_v36 = vld [vmem:[%s2521_s6 + $0x18] sm:$0xff] }
 0x3df   : > { %984 = vmatpush.bf16.msrb.mxu1 %v1971_v36 }
 0x3e3   : > { %v887_v37 = vpop.f32.mrf.mxu3 }
 0x3e4   : > { %v1970_v37 = vld [vmem:[%s2521_s6 + $0x10] sm:$0xff] }
 0x3e5   : > { %985 = vmatpush.bf16.msrb.mxu1 %v1970_v37  ;;  %v1848_v37 = vld [vmem:[#allocation6 + $0x40] sm:$0xf] }
 0x3eb   : > { %v911_v38 = vpop.f32.mrf.mxu3 }
 0x3ec   : > { %v912_v39 = vadd.f32 %v911_v38, %v2414_v5  ;;  %v1973_v38 = vld [vmem:[%s2521_s6 + $0x28] sm:$0xff] }
 0x3ed   : > { %1110 = vmatpush.bf16.msra.mxu1 %v1973_v38  ;;  %v1985_v38 = vld [vmem:[#allocation6 + $0x44] sm:$0xf0] }
 0x3ee   : > { %1803 = vmatmul.msk.bf16.vlgmr.msra.gmra.mxu2 %vm823_vm4, %v1119_v33  ;;  %v915_v40 = vsel %vm843_vm7, %v912_v39, -inf }
 0x3ef   : > { %916 = vmax.xlane.f32.xlu2 %v915_v40 }
 0x3f3   : > { %v913_v41 = vpop.f32.mrf.mxu3 }
 0x3fb   : > { %v1038_v42 = vpop.f32.mrf.mxu3 }
 0x3fc   : > { %v1039_v43 = vadd.f32 %v1038_v42, %v2414_v5 }
 0x3fe   : > { %v1042_v44 = vsel %vm843_vm7, %v1039_v43, -inf }
 0x3ff   : > { %1043 = vmax.xlane.f32.xlu1 %v1042_v44 }
 0x403   : > { %v1040_v45 = vpop.f32.mrf.mxu3 }
 0x418   : > { %941 = vrot.lane.b32.xlu1 %v2397_v54, %s2223_s24 }
 0x461   : > { %v2432_v20 = vpop.f32.mrf.mxu2 }
 0x462   : > { %v917_v46 = vpop.xlane.xlu2 %916 }
 0x463   : > { %v918_v47 = vsub.f32 %v912_v39, %v917_v46  ;;  %v1972_v39 = vld [vmem:[%s2521_s6 + $0x20] sm:$0xff] }
 0x464   : > { %1111 = vmatpush.bf16.msra.mxu1 %v1972_v39  ;;  %v1984_v39 = vld [vmem:[#allocation6 + $0x44] sm:$0xf] }
 0x465   : > { %v919_v48 = vmul.f32 1.442695, %v918_v47 }
 0x467   : > { %2075 = vpow2.f32 %v919_v48 }
 0x469   : > { %v1017_v49 = vpop.f32.mrf.mxu2 }
 0x46d   : > { %v2076_v50 = vpop.eup %2075 }
 0x46e   : > { %v921_v51 = vsel %vm843_vm7, %v2076_v50, 0.0 }
 0x46f   : > { %922 = vadd.xlane.f32.xlu2 %v921_v51 }
 0x471   : > { %v1137_v52 = vpop.f32.mrf.mxu2 }
 0x472   : > { %v1138_v53 = vadd.f32 %v1137_v52, %v2414_v5  ;;  %v1044_v55 = vpop.xlane.xlu1 %1043 }
 0x473   : > { %v1045_v56 = vsub.f32 %v1039_v43, %v1044_v55 }
 0x474   : > { %v1141_v57 = vsel %vm843_vm7, %v1138_v53, -inf }
 0x475   : > { %v1046_v58 = vmul.f32 1.442695, %v1045_v56  ;;  %1142 = vmax.xlane.f32.xlu0 %v1141_v57 }
 0x477   : > { %2077 = vpow2.f32 %v1046_v58 }
 0x479   : > { %v1139_v59 = vpop.f32.mrf.mxu2 }
 0x47d   : > { %v2078_v60 = vpop.eup %2077 }
 0x47e   : > { %v1048_v61 = vsel %vm843_vm7, %v2078_v60, 0.0 }
 0x47f   : > { %1049 = vadd.xlane.f32.xlu2 %v1048_v61  ;;  %v1975_v61 = vld [vmem:[%s2521_s6 + $0x38] sm:$0xff] }
 0x48a   : > { %v942_v62 = vpop.permute.xlu1 %941 }
 0x48b   : > { %v947_v63 = vsel %vm872_vm5, %v942_v62, 0  ;;  %v1974_v62 = vld [vmem:[%s2521_s6 + $0x30] sm:$0xff] }
 0x48c   : > { %956 = vmatpush.bf16.msrb.mxu0 %v947_v63 }
 0x497   : > { %1067 = vrot.lane.b32.xlu2 %v2397_v54, %s2224_s26 }
 0x4e2   : > { %v923_v0 = vpop.xlane.xlu2 %922 }
 0x4e3   : > { %2079 = vrcp.f32 %v923_v0  ;;  %v935_v9 = vand.u32 2147483648, %v923_v0  ;;  %v933_v10 = vand.u32 2147483647, %v923_v0  ;;  %vm929_vm13 = vweird.f32 %v923_v0 }
 0x4e5   : > { %v936_v12 = vor.u32 1.1754944e-38, %v935_v9  ;;  %vm934_vm15 = vcmp.eq.f32.partialorder %v933_v10, 8.507059e+37 }
 0x4e8   : > { %v1143_v2 = vpop.xlane.xlu0 %1142 }
 0x4e9   : > { %v2080_v3 = vpop.eup %2079  ;;  %v1144_v4 = vsub.f32 %v1138_v53, %v1143_v2 }
 0x4ea   : > { %v925_v5 = vmul.f32 %v2080_v3, %v923_v0  ;;  %vm930_vm12 = vweird.f32 %v2080_v3 }
 0x4eb   : > { %v1145_v6 = vmul.f32 1.442695, %v1144_v4  ;;  %vm931_vm14 = vmor %vm929_vm13, %vm930_vm12 }
 0x4ec   : > { %v926_v7 = vsub.f32 1.0, %v925_v5 }
 0x4ed   : > { %2081 = vpow2.f32 %v1145_v6 }
 0x4ee   : > { %v927_v8 = vmul.f32 %v2080_v3, %v926_v7 }
 0x4f0   : > { %v928_v11 = vadd.f32 %v2080_v3, %v927_v8 }
 0x4f2   : > { %v1050_v13 = vpop.xlane.xlu2 %1049  ;;  %v932_v14 = vsel %vm931_vm14, %v2080_v3, %v928_v11  ;;  %v2061_v11 = vld [vmem:[%s2522_s7] ss:$0 sm:$0xff] }
 0x4f3   : > { %v2082_v15 = vpop.eup %2081  ;;  %2083 = vrcp.f32 %v1050_v13  ;;  %v937_v18 = vsel %vm934_vm15, %v936_v12, %v932_v14  ;;  %v1062_v27 = vand.u32 2147483648, %v1050_v13  ;;  %v1060_v29 = vand.u32 2147483647, %v1050_v13 }
 0x4f4   : > { %v1147_v16 = vsel %vm843_vm7, %v2082_v15, 0.0  ;;  %v938_v19 = vmul.f32 %v2076_v50, %v937_v18  ;;  %vm1056_vm1 = vweird.f32 %v1050_v13 }
 0x4f5   : > { %1148 = vadd.xlane.f32.xlu0 %v1147_v16  ;;  %v1063_v31 = vor.u32 1.1754944e-38, %v1062_v27  ;;  %vm1061_vm3 = vcmp.eq.f32.partialorder %v1060_v29, 8.507059e+37  ;;  %v1990_v16 = vld [vmem:[#allocation6 + $0x74] sm:$0xf]  ;;  %v1988_v27 = vld [vmem:[#allocation6 + $0x64] sm:$0xf] }
 0x4f6   : > { %v939_v21 = vpack.c.bf16 %v938_v19, %v938_v19  ;;  %v1874_v19 = vld [vmem:[#allocation6 + $0x78] sm:$0xf0]  ;;  %v1866_v29 = vld [vmem:[#allocation6 + $0x68] sm:$0xf0] }
 0x4f8   : > { %1773 = vmatmul.msk.bf16.vlgmr.msrb.gmra.mxu0 %vm843_vm7, %v939_v21  ;;  %v1877_v21 = vor.u32 %v1990_v16, %v1874_v19  ;;  %v2003_v19 = vld [vmem:[#allocation8 + $0x58] sm:$0xff] }
 0x4f9   : > { %v2084_v22 = vpop.eup %2083 }
 0x4fa   : > { %v1052_v23 = vmul.f32 %v2084_v22, %v1050_v13  ;;  %v1068_v24 = vpop.permute.xlu2 %1067  ;;  %vm1057_vm0 = vweird.f32 %v2084_v22  ;;  %1369 = vmatpush.bf16.msrb.mxu2 %v1877_v21 }
 0x4fb   : > { %v1073_v25 = vsel %vm872_vm5, %v1068_v24, 0  ;;  %vm1058_vm2 = vmor %vm1056_vm1, %vm1057_vm0 }
 0x4fc   : > { %v1053_v26 = vsub.f32 1.0, %v1052_v23  ;;  %1082 = vmatpush.bf16.msra.mxu0 %v1073_v25  ;;  %v1864_v25 = vld [vmem:[#allocation6 + $0x60] sm:$0xf] }
 0x4fe   : > { %v1054_v28 = vmul.f32 %v2084_v22, %v1053_v26  ;;  %v1989_v26 = vld [vmem:[#allocation6 + $0x64] sm:$0xf0] }
 0x500   : > { %v1055_v30 = vadd.f32 %v2084_v22, %v1054_v28  ;;  %1209 = vmatpush.bf16.msrb.mxu0 %v1975_v61  ;;  %v1865_v28 = vor.u32 %v1989_v26, %v1864_v25  ;;  %v1977_v61 = vld [vmem:[#allocation6 + $0x4] sm:$0xf0]  ;;  %v2062_v26 = vld [vmem:[%s2523_s8] ss:$0 sm:$0xff] }
 0x502   : > { %v1059_v32 = vsel %vm1058_vm2, %v2084_v22, %v1055_v30  ;;  %v1869_v30 = vor.u32 %v1988_v27, %v1866_v29  ;;  %v2063_v29 = vld [vmem:[%s2544_s25] ss:$0 sm:$0xff] }
 0x503   : > { %v1064_v33 = vsel %vm1061_vm3, %v1063_v31, %v1059_v32  ;;  %v1856_v31 = vld [vmem:[#allocation6 + $0x50] sm:$0xf]  ;;  %v1987_v32 = vld [vmem:[#allocation6 + $0x54] sm:$0xf0] }
 0x504   : > { %v1065_v34 = vmul.f32 %v2078_v60, %v1064_v33  ;;  %1210 = vmatpush.bf16.msrb.mxu0 %v1974_v62  ;;  %1370 = vmatpush.bf16.msrb.mxu2 %v1869_v30  ;;  %v1986_v33 = vld [vmem:[#allocation6 + $0x54] sm:$0xf] }
 0x506   : > { %v1066_v35 = vpack.c.bf16 %v1065_v34, %v1065_v34  ;;  %v1857_v34 = vor.u32 %v1987_v32, %v1856_v31 }
 0x508   : > { %1793 = vmatmul.msk.bf16.vlgmr.msra.gmra.mxu0 %vm843_vm7, %v1066_v35  ;;  %v1858_v35 = vld [vmem:[#allocation6 + $0x58] sm:$0xf0] }
 0x509   : > { %1166 = vrot.lane.b32.xlu0 %v2397_v54, %s2222_s23  ;;  %v1861_v36 = vor.u32 %v1986_v33, %v1858_v35  ;;  %v1993_v33 = vld [vmem:[#allocation8 + $0x8] sm:$0xff]  ;;  %v1992_v35 = vld [vmem:[#allocation8] sm:$0xff] }
 0x50b   : > { %1371 = vmatpush.bf16.msrb.mxu2 %v1861_v36  ;;  %v2001_v36 = vld [vmem:[#allocation8 + $0x48] sm:$0xff] }
 0x568   : > { %v1149_v54 = vpop.xlane.xlu0 %1148 }
 0x569   : > { %2085 = vrcp.f32 %v1149_v54  ;;  %v1161_v43 = vand.u32 2147483648, %v1149_v54  ;;  %v1159_v45 = vand.u32 2147483647, %v1149_v54  ;;  %vm1155_vm8 = vweird.f32 %v1149_v54 }
 0x56b   : > { %v1162_v48 = vor.u32 1.1754944e-38, %v1161_v43  ;;  %vm1160_vm10 = vcmp.eq.f32.partialorder %v1159_v45, 8.507059e+37  ;;  %v1983_v43 = vld [vmem:[#allocation6 + $0x34] sm:$0xf0] }
 0x56f   : > { %v2086_v40 = vpop.eup %2085 }
 0x570   : > { %v1151_v41 = vmul.f32 %v2086_v40, %v1149_v54  ;;  %vm1156_vm6 = vweird.f32 %v2086_v40  ;;  %v1849_v54 = vor.u32 %v1985_v38, %v1848_v37  ;;  %v2000_v37 = vld [vmem:[#allocation8 + $0x40] sm:$0xff] }
 0x571   : > { %vm1157_vm9 = vmor %vm1155_vm8, %vm1156_vm6 }
 0x572   : > { %v1152_v42 = vsub.f32 1.0, %v1151_v41 }
 0x574   : > { %v1153_v44 = vmul.f32 %v2086_v40, %v1152_v42  ;;  %v1840_v42 = vld [vmem:[#allocation6 + $0x30] sm:$0xf] }
 0x575   : > { %v958_v47 = vpop.f32.mrf.mxu0  ;;  %v1841_v45 = vor.u32 %v1983_v43, %v1840_v42 }
 0x576   : > { %v1154_v46 = vadd.f32 %v2086_v40, %v1153_v44  ;;  %v962_v49 = vpack.c.bf16 %v958_v47, %v958_v47  ;;  %v1982_v44 = vld [vmem:[#allocation6 + $0x34] sm:$0xf] }
 0x578   : > { %v1158_v50 = vsel %vm1157_vm9, %v2086_v40, %v1154_v46  ;;  %1782 = vmatmul.msk.bf16.vlgmr.msrb.gmra.mxu1 %vm823_vm4, %v962_v49  ;;  %v1850_v40 = vld [vmem:[#allocation6 + $0x48] sm:$0xf0]  ;;  %v1842_v46 = vld [vmem:[#allocation6 + $0x38] sm:$0xf0]  ;;  %v1981_v49 = vld [vmem:[#allocation6 + $0x24] sm:$0xf0] }
 0x579   : > { %v1163_v51 = vsel %vm1160_vm10, %v1162_v48, %v1158_v50  ;;  %v1853_v41 = vor.u32 %v1984_v39, %v1850_v40  ;;  %v1845_v47 = vor.u32 %v1982_v44, %v1842_v46  ;;  %v1832_v48 = vld [vmem:[#allocation6 + $0x20] sm:$0xf]  ;;  %v1980_v50 = vld [vmem:[#allocation6 + $0x24] sm:$0xf] }
 0x57a   : > { %v1164_v52 = vmul.f32 %v2082_v15, %v1163_v51  ;;  %v1991_v15 = vld [vmem:[#allocation6 + $0x74] sm:$0xf0]  ;;  %v1833_v51 = vor.u32 %v1981_v49, %v1832_v48  ;;  %v2064_v49 = vld [vmem:[%s2528_s13] ss:$0 sm:$0xff] }
 0x57b   : > { %v1167_v53 = vpop.permute.xlu0 %1166  ;;  %1372 = vmatpush.bf16.msrb.mxu2 %v1853_v41 }
 0x57c   : > { %v1172_v55 = vsel %vm872_vm5, %v1167_v53, 0  ;;  %v1165_v57 = vpack.c.bf16 %v1164_v52, %v1164_v52  ;;  %v1834_v52 = vld [vmem:[#allocation6 + $0x28] sm:$0xf0] }
 0x57d   : > { %1181 = vmatpush.bf16.msra.mxu3 %v1172_v55  ;;  %v960_v56 = vpop.f32.mrf.mxu0  ;;  %v1837_v53 = vor.u32 %v1980_v50, %v1834_v52  ;;  %v1824_v55 = vld [vmem:[#allocation6 + $0x10] sm:$0xf] }
 0x57e   : > { %v1979_v56 = vld [vmem:[#allocation6 + $0x14] sm:$0xf0] }
 0x57f   : > { %1373 = vmatpush.bf16.msrb.mxu2 %v1845_v47 }
 0x580   : > { %1804 = vmatmul.msk.bf16.vlgmr.msra.gmra.mxu3 %vm843_vm7, %v1165_v57  ;;  %v1978_v57 = vld [vmem:[#allocation6 + $0x14] sm:$0xf] }
 0x583   : > { %1374 = vmatpush.bf16.msrb.mxu2 %v1837_v53 }
 0x585   : > { %v1084_v58 = vpop.f32.mrf.mxu0 }
 0x586   : > { %v1088_v59 = vpack.c.bf16 %v1084_v58, %v1084_v58  ;;  %v1825_v58 = vor.u32 %v1979_v56, %v1824_v55 }
 0x588   : > { %1802 = vmatmul.msk.bf16.vlgmr.msra.gmra.mxu1 %vm823_vm4, %v1088_v59  ;;  %v1826_v59 = vld [vmem:[#allocation6 + $0x18] sm:$0xf0] }
 0x589   : > { %v1829_v62 = vor.u32 %v1978_v57, %v1826_v59 }
 0x58b   : > { %1375 = vmatpush.bf16.msrb.mxu2 %v1829_v62 }
 0x58d   : > { %v1086_v60 = vpop.f32.mrf.mxu0 }
 0x58e   : > { %v1816_v60 = vld [vmem:[#allocation6] sm:$0xf] }
 0x5f5   : > { %v987_v63 = vpop.f32.mrf.mxu1 }
 0x5f6   : > { %v1016_v4 = vadd.f32 %v2432_v20, %v987_v63  ;;  %v1872_v20 = vld [vmem:[#allocation6 + $0x70] sm:$0xf]  ;;  %v1976_v63 = vld [vmem:[#allocation6 + $0x4] sm:$0xf] }
 0x5f7   : > { %v1873_v18 = vor.u32 %v1991_v15, %v1872_v20  ;;  %v2004_v20 = vld [vmem:[#allocation8 + $0x60] sm:$0xff] }
 0x5f9   : > { %1356 = vmatpush.bf16.msrb.mxu1 %v1873_v18  ;;  %v1995_v18 = vld [vmem:[#allocation8 + $0x18] sm:$0xff] }
 0x5fd   : > { %v989_v0 = vpop.f32.mrf.mxu1  ;;  %1357 = vmatpush.bf16.msrb.mxu1 %v1865_v28 }
 0x5fe   : > { %v1818_v0 = vld [vmem:[#allocation6 + $0x8] sm:$0xf0] }
 0x601   : > { %1358 = vmatpush.bf16.msrb.mxu1 %v1857_v34  ;;  %v2002_v34 = vld [vmem:[#allocation8 + $0x50] sm:$0xff] }
 0x603   : > { %v1183_v2 = vpop.f32.mrf.mxu3 }
 0x604   : > { %v1187_v3 = vpack.c.bf16 %v1183_v2, %v1183_v2  ;;  %v1817_v2 = vor.u32 %v1977_v61, %v1816_v60 }
 0x605   : > { %v1113_v5 = vpop.f32.mrf.mxu1  ;;  %1359 = vmatpush.bf16.msrb.mxu1 %v1849_v54 }
 0x606   : > { %1813 = vmatmul.msk.bf16.vlgmr.msrb.gmra.mxu0 %vm823_vm4, %v1187_v3  ;;  %v1117_v6 = vadd.f32 %v1113_v5, %v1016_v4  ;;  %v1821_v3 = vor.u32 %v1976_v63, %v1818_v0  ;;  %v1999_v4 = vld [vmem:[#allocation8 + $0x38] sm:$0xff] }
 0x607   : > { %v2007_v5 = vld [vmem:[#allocation8 + $0x78] sm:$0xff]  ;;  %1518 = vmatpush.bf16.msrb.mxu3 %v1999_v4 }
 0x608   : > { %1376 = vmatpush.bf16.msrb.mxu2 %v1821_v3  ;;  %1531 = vmatpush.bf16.msra.mxu0 %v2007_v5 }
 0x609   : > { %1360 = vmatpush.bf16.msrb.mxu1 %v1841_v45 }
 0x60b   : > { %v1185_v7 = vpop.f32.mrf.mxu3 }
 0x60d   : > { %v1115_v8 = vpop.f32.mrf.mxu1  ;;  %1361 = vmatpush.bf16.msrb.mxu1 %v1833_v51 }
 0x60e   : > { %v1998_v8 = vld [vmem:[#allocation8 + $0x30] sm:$0xff] }
 0x60f   : > { %1519 = vmatpush.bf16.msrb.mxu3 %v1998_v8 }
 0x611   : > { %1362 = vmatpush.bf16.msrb.mxu1 %v1825_v58 }
 0x615   : > { %1363 = vmatpush.bf16.msrb.mxu1 %v1817_v2 }
 0x683   : > { %v1212_v9 = vpop.f32.mrf.mxu0 }
 0x684   : > { %v1216_v10 = vadd.f32 %v1212_v9, %v1117_v6  ;;  %v2006_v9 = vld [vmem:[#allocation8 + $0x70] sm:$0xff] }
 0x685   : > { %1532 = vmatpush.bf16.msra.mxu0 %v2006_v9 }
 0x686   : > { %v1217_v12 = vadd.f32 %v1216_v10, %v2372_v1 }
 0x688   : > { %v2475_v13 = vadd.f32 %v2061_v11, %v1217_v12  ;;  %v1997_v11 = vld [vmem:[#allocation8 + $0x28] sm:$0xff] }
 0x689   : > { %v2005_v12 = vld [vmem:[#allocation8 + $0x68] sm:$0xff]  ;;  %1520 = vmatpush.bf16.msrb.mxu3 %v1997_v11 }
 0x68a   : > { %1225 = vadd.xlane.f32.xlu0 %v2475_v13  ;;  %1533 = vmatpush.bf16.msra.mxu0 %v2005_v12 }
 0x68b   : > { %v1214_v14 = vpop.f32.mrf.mxu0 }
 0x68c   : > { %v1996_v14 = vld [vmem:[#allocation8 + $0x20] sm:$0xff] }
 0x68d   : > { %1521 = vmatpush.bf16.msrb.mxu3 %v1996_v14 }
 0x68e   : > { %1534 = vmatpush.bf16.msra.mxu0 %v2004_v20 }
 0x691   : > { %1522 = vmatpush.bf16.msrb.mxu3 %v1995_v18 }
 0x692   : > { %1535 = vmatpush.bf16.msra.mxu0 %v2003_v19 }
 0x696   : > { %1536 = vmatpush.bf16.msra.mxu0 %v2002_v34 }
 0x69a   : > { %1537 = vmatpush.bf16.msra.mxu0 %v2001_v36 }
 0x69e   : > { %1538 = vmatpush.bf16.msra.mxu0 %v2000_v37 }
 0x6fd   : > { %v1226_v22 = vpop.xlane.xlu0 %1225 }
 0x6fe   : > { %v1227_v23 = vmul.f32 %v1226_v22, %v2375_v17 }
 0x700   : > { %v2480_v24 = vsub.f32 %v2475_v13, %v1227_v23  ;;  %v1994_v23 = vld [vmem:[#allocation8 + $0x10] sm:$0xff] }
 0x701   : > { %1523 = vmatpush.bf16.msrb.mxu3 %v1994_v23 }
 0x702   : > { %v1229_v1 = vmul.f32 %v2480_v24, %v2480_v24 }
 0x704   : > { %1230 = vadd.xlane.f32.xlu1 %v1229_v1 }
 0x705   : > { %1524 = vmatpush.bf16.msrb.mxu3 %v1993_v33 }
 0x709   : > { %1525 = vmatpush.bf16.msrb.mxu3 %v1992_v35 }
 0x777   : > { %v1231_v6 = vpop.xlane.xlu1 %1230 }
 0x778   : > { %v1232_v7 = vmul.f32 %v1231_v6, %v2375_v17 }
 0x77a   : > { %v1233_v10 = vadd.f32 1e-05, %v1232_v7  ;;  %v2065_v7 = vld [vmem:[%s2529_s14] ss:$0 sm:$0xff] }
 0x77c   : > { %2087 = vrsqrt.f32 %v1233_v10  ;;  %vm1240_vm5 = vweird.f32 %v1233_v10 }
 0x782   : > { %v2088_v15 = vpop.eup %2087 }
 0x783   : > { %v1235_v16 = vmul.f32 %v2088_v15, %v1233_v10  ;;  %vm1241_vm4 = vweird.f32 %v2088_v15 }
 0x784   : > { %vm1242_vm7 = vmor %vm1240_vm5, %vm1241_vm4 }
 0x785   : > { %v1236_v21 = vmul.f32 %v2088_v15, %v1235_v16 }
 0x787   : > { %v1237_v22 = vmul.f32 0.5, %v1236_v21 }
 0x789   : > { %v1238_v1 = vsub.f32 1.5, %v1237_v22 }
 0x78b   : > { %v1239_v25 = vmul.f32 %v2088_v15, %v1238_v1 }
 0x78d   : > { %v1243_v27 = vsel %vm1242_vm7, %v2088_v15, %v1239_v25 }
 0x78e   : > { %v1244_v28 = vmul.f32 %v1243_v27, %v2480_v24  ;;  %v1270_v24 = vld [vmem:[%s2526_s11] sm:$0x3] }
 0x78f   : > { %v1272_v38 = vperm.slane %v1270_v24, 0  ;;  %v1273_v41 = vperm.slane %v1270_v24, 1 }
 0x790   : > { %v1248_v30 = vmul.f32 %v2062_v26, %v1244_v28 }
 0x792   : > { %v1252_v31 = vadd.f32 %v2063_v29, %v1248_v30 }
 0x794   : > { %v1253_v32 = vpack.c.bf16 %v1252_v31, %v1252_v31 }
 0x796   : > { %1364 = vmatmul.bf16.vlgmr.msrb.gmra.mxu1 %v1253_v32  ;;  %1377 = vmatmul.bf16.vlgmr.msrb.gmra.mxu2 %v1253_v32 }
 0x813   : > { %v1365_v39 = vpop.f32.mrf.mxu1 }
 0x814   : > { %v1366_v54 = vadd.f32 %v1365_v39, %v1272_v38 }
 0x816   : > { %v1382_v40 = vmax.f32 %v1366_v54, 0.0 }
 0x818   : > { %v1384_v42 = vpack.c.bf16 %v1382_v40, %v1382_v40 }
 0x819   : > { %v1378_v43 = vpop.f32.mrf.mxu2 }
 0x81a   : > { %v1379_v44 = vadd.f32 %v1378_v43, %v1273_v41  ;;  %1526 = vmatmul.bf16.vlgmr.msrb.gmra.mxu3 %v1384_v42 }
 0x81b   : > { %v1367_v45 = vpop.f32.mrf.mxu1 }
 0x81c   : > { %v1383_v46 = vmax.f32 %v1379_v44, 0.0 }
 0x81e   : > { %v1385_v47 = vpack.c.bf16 %v1383_v46, %v1383_v46 }
 0x820   : > { %1539 = vmatmul.bf16.vlgmr.msra.gmra.mxu0 %v1385_v47 }
 0x821   : > { %v1380_v48 = vpop.f32.mrf.mxu2 }
 0x89d   : > { %v1527_v50 = vpop.f32.mrf.mxu3  ;;  %v1540_v51 = vpop.f32.mrf.mxu0 }
 0x89e   : > { %v1528_v52 = vadd.f32 %v2064_v49, %v1527_v50 }
 0x8a0   : > { %v1541_v53 = vadd.f32 %v1540_v51, %v1528_v52 }
 0x8a2   : > { %v1544_v55 = vadd.f32 %v1541_v53, %v2475_v13 }
 0x8a4   : > { %1547 = vadd.xlane.f32.xlu2 %v1544_v55 }
 0x8a5   : > { %v1529_v56 = vpop.f32.mrf.mxu3  ;;  %v1542_v57 = vpop.f32.mrf.mxu0 }
 0x917   : > { %v1548_v58 = vpop.xlane.xlu2 %1547 }
 0x918   : > { %v1549_v59 = vmul.f32 %v1548_v58, %v2375_v17 }
 0x91a   : > { %v1550_v60 = vsub.f32 %v1544_v55, %v1549_v59 }
 0x91c   : > { %v1551_v61 = vmul.f32 %v1550_v60, %v1550_v60 }
 0x91e   : > { %1552 = vadd.xlane.f32.xlu0 %v1551_v61 }
 0x991   : > { %v1553_v62 = vpop.xlane.xlu0 %1552 }
 0x992   : > { %v1554_v63 = vmul.f32 %v1553_v62, %v2375_v17  ;;  %v2066_v17 = vld [vmem:[%s2530_s15] ss:$0 sm:$0xff] }
 0x994   : > { %v1555_v0 = vadd.f32 1e-05, %v1554_v63 }
 0x996   : > { %2089 = vrsqrt.f32 %v1555_v0  ;;  %vm1562_vm12 = vweird.f32 %v1555_v0 }
 0x99c   : > { %v2090_v2 = vpop.eup %2089 }
 0x99d   : > { %v1557_v3 = vmul.f32 %v2090_v2, %v1555_v0  ;;  %vm1563_vm11 = vweird.f32 %v2090_v2 }
 0x99e   : > { %vm1564_vm13 = vmor %vm1562_vm12, %vm1563_vm11 }
 0x99f   : > { %v1558_v4 = vmul.f32 %v2090_v2, %v1557_v3 }
 0x9a1   : > { %v1559_v5 = vmul.f32 0.5, %v1558_v4 }
 0x9a3   : > { %v1560_v13 = vsub.f32 1.5, %v1559_v5 }
 0x9a5   : > { %v1561_v6 = vmul.f32 %v2090_v2, %v1560_v13 }
 0x9a7   : > { %v1565_v8 = vsel %vm1564_vm13, %v2090_v2, %v1561_v6 }
 0x9a8   : > { %v1566_v9 = vmul.f32 %v1565_v8, %v1550_v60 }
 0x9aa   : > { %v1570_v10 = vmul.f32 %v2065_v7, %v1566_v9 }
 0x9ac   : > { %v1574_v11 = vadd.f32 %v2066_v17, %v1570_v10 }
 0x9ae   : > { %v1575_v12 = vpack.c.bf16 %v1574_v11, %v1574_v11 }
 0x9b0   : > { %1576 = vst [vmem:[%s548_s30] sm:$0xf] %v1575_v12 }
 0x9b1 PF: > { %s2546_s17 = sld [smem:[#allocation12_spill]] }
 0x9b7   : > { %s36_s25 = sadd.s32 1, %s2546_s17  }
 0x9b8   : > { %p33_p7 = scmp.ge.s32.totalorder %s36_s25, 4  }
 0x9ba   :  { %35 = sbr.rel (!%p33_p7) target bundleno = 19 (0x13), region = 123 }
 0x9bf   :  { %1596 = vsyncpa [#allocation5], 1 }
 0x9c0   :  { %1598 = vsyncpa [#allocation5 + $0x1], 1 }
 0x9c1   :  { %1599 = vsyncpa [#allocation7], 1 }

// kernel: seq2seq_forward.3
= control target key start
LH: loop header
LB: loop body
LE: loop exit
PB: predicated region body
PF: predicated region fallthrough
CT: control target
= control target key end

     0   :  { %s3685_s29 = smov [#allocation3]   ;;  %s4241_s0 = inlined_call_operand.vmem [shape: s32[2], index: 0, kind: input, shape index: {}]   ;;  %s4242_s2 = inlined_call_operand.vmem [shape: bf16[2,8,128], index: 2, kind: input, shape index: {}]   ;;  %s4243_s3 = inlined_call_operand.vmem [shape: bf16[2,8,128], index: 3, kind: input, shape index: {}]   ;;  %s4244_s4 = inlined_call_operand.vmem [shape: f32[1,128], index: 4, kind: input, shape index: {}, may-alias: {4,10,18,24}]   ;;  %s4245_s5 = inlined_call_operand.vmem [shape: f32[1,128], index: 5, kind: input, shape index: {}, may-alias: {5,9,11,13,17,19,23,25}]   ;;  %s4246_s6 = inlined_call_operand.hbm [shape: bf16[128,384], index: 6, kind: input, shape index: {}]   ;;  %s4247_s7 = inlined_call_operand.vmem [shape: f32[1,384], index: 7, kind: input, shape index: {}]   ;;  %s4248_s8 = inlined_call_operand.hbm [shape: bf16[128,128], index: 8, kind: input, shape index: {}]   ;;  %s4249_s9 = inlined_call_operand.vmem [shape: f32[1,128], index: 9, kind: input, shape index: {}, may-alias: {5,9,11,13,17,19,23,25}]   ;;  %s4250_s10 = inlined_call_operand.vmem [shape: f32[1,128], index: 10, kind: input, shape index: {}, may-alias: {4,10,18,24}]   ;;  %s4251_s11 = inlined_call_operand.vmem [shape: f32[1,128], index: 11, kind: input, shape index: {}, may-alias: {5,9,11,13,17,19,23,25}]   ;;  %s4252_s12 = inlined_call_operand.hbm [shape: bf16[128,128], index: 12, kind: input, shape index: {}]   ;;  %s4253_s13 = inlined_call_operand.vmem [shape: f32[1,128], index: 13, kind: input, shape index: {}, may-alias: {5,9,11,13,17,19,23,25}]   ;;  %s4254_s14 = inlined_call_operand.hbm [shape: bf16[128,256], index: 14, kind: input, shape index: {}]   ;;  %s4255_s15 = inlined_call_operand.vmem [shape: f32[1,256], index: 15, kind: input, shape index: {}, may-alias: {15,21}]   ;;  %s4256_s16 = inlined_call_operand.vmem [shape: bf16[128,128], index: 16, kind: input, shape index: {}]   ;;  %s4257_s17 = inlined_call_operand.vmem [shape: f32[1,128], index: 17, kind: input, shape index: {}, may-alias: {5,9,11,13,17,19,23,25}]   ;;  %s4258_s18 = inlined_call_operand.vmem [shape: f32[1,128], index: 18, kind: input, shape index: {}, may-alias: {4,10,18,24}]   ;;  %s4259_s19 = inlined_call_operand.vmem [shape: f32[1,128], index: 19, kind: input, shape index: {}, may-alias: {5,9,11,13,17,19,23,25}]   ;;  %s4260_s20 = inlined_call_operand.hbm [shape: bf16[128,256], index: 20, kind: input, shape index: {}]   ;;  %s4261_s21 = inlined_call_operand.vmem [shape: f32[1,256], index: 21, kind: input, shape index: {}, may-alias: {15,21}]   ;;  %s4262_s22 = inlined_call_operand.hbm [shape: bf16[256,128], index: 22, kind: input, shape index: {}]   ;;  %s4263_s23 = inlined_call_operand.vmem [shape: f32[1,128], index: 23, kind: input, shape index: {}, may-alias: {5,9,11,13,17,19,23,25}]   ;;  %s4264_s24 = inlined_call_operand.vmem [shape: f32[1,128], index: 24, kind: input, shape index: {}, may-alias: {4,10,18,24}]   ;;  %s4265_s25 = inlined_call_operand.vmem [shape: f32[1,128], index: 25, kind: input, shape index: {}, may-alias: {5,9,11,13,17,19,23,25}]   ;;  %s4266_s26 = inlined_call_operand.hbm [shape: f32[2,8,128], index: 26, kind: output, shape index: {}]   ;;  %s4267_s1 = inlined_call_operand.vmem [shape: s32[2], index: 1, kind: input, shape index: {}]  }
   0x1   :  { %4277 = sst [smem:[#allocation30_spill]] %s4241_s0  ;;  %s3686_s0 = smov [#allocation4]  }
   0x2   :  { %4278 = sst [smem:[#allocation31_spill]] %s4242_s2 }
   0x3   :  { %4279 = sst [smem:[#allocation32_spill]] %s4243_s3 }
   0x4   :  { %4280 = sst [smem:[#allocation33_spill]] %s4244_s4 }
   0x5   :  { %4281 = sst [smem:[#allocation34_spill]] %s4245_s5  ;;  %s37_s5 = sshll.u32 %s4267_s1, 4  ;;  %s38_s5 = int_to_ptr.vmem [resolvable:$true] %s37_s5 }
   0x6   :  { %4282 = sst [smem:[#allocation35_spill]] %s4246_s6 }
   0x7   :  { %4283 = sst [smem:[#allocation36_spill]] %s4247_s7 }
   0x8   :  { %4284 = sst [smem:[#allocation37_spill]] %s4248_s8 }
   0x9   :  { %4285 = sst [smem:[#allocation38_spill]] %s4249_s9 }
   0xa   :  { %4286 = sst [smem:[#allocation39_spill]] %s4250_s10 }
   0xb   :  { %4287 = sst [smem:[#allocation40_spill]] %s4251_s11 }
   0xc   :  { %4288 = sst [smem:[#allocation41_spill]] %s4254_s14 }
   0xd   :  { %4289 = sst [smem:[#allocation42_spill]] %s4261_s21 }
   0xe   :  { %4290 = sst [smem:[#allocation43_spill]] %s4264_s24 }
   0xf   :  { %4291 = sst [smem:[#allocation44_spill]] %s4265_s25 }
  0x10   :  { %4292 = sst [smem:[#allocation45_spill]] %s4266_s26 }
  0x11   :  { %s4293_s8 = sld [smem:[#allocation30_spill]] }
  0x17   :  { %s32_s21 = sshll.u32 %s4293_s8, 4  ;;  %s33_s21 = int_to_ptr.vmem [resolvable:$true] %s32_s21 }
  0x18   :  { %35 = dma.vmem_to_smem %s33_s21, 16, %s3685_s29, [#allocation2] }
  0x19   :  { %40 = dma.vmem_to_smem %s38_s5, 16, %s3686_s0, [#allocation2] }
  0x1a   :  { %3647 = dma.done.wait [#allocation2], 32 }
  0x1b   :  { %3648 = vsyncadd [#allocation2], 4294967264 }
  0x1c   :  { %43 = sfence }
  0x1d   :  { %44 = vsyncpa [#allocation6], 0 }
  0x1e   :  { %45 = vsyncpa [#allocation9], 0 }
  0x1f   :  { %46 = vsyncpa [#allocation12], 0 }
  0x20   :  { %47 = vsyncpa [#allocation15], 0 }
  0x21   :  { %48 = vsyncpa [#allocation7], 0 }
  0x22   :  { %50 = vsyncpa [#allocation7 + $0x1], 0  ;;  %s3845_s10 = smov 0   ;;  %s3847_s30 = smov 0  }
  0x23   :  { %s3849_s1 = smov 0   ;;  %s3851_s3 = smov 0  }
  0x24 LB: > { %4294 = sst [smem:[#allocation23_spill]] %s3671_s10  ;;  %s3866_s21 = sadd.s32 4294967295, %s3683_s3   ;;  %s3683_s3 = sphi %s3851_s3, %s4324_s3   ;;  %s3679_s1 = sphi %s3849_s1, %s4326_s1   ;;  %s3675_s30 = sphi %s3847_s30, %s4328_s30   ;;  %s3671_s10 = sphi %s3845_s10, %s4327_s10  }
  0x25   : > { %4295 = sst [smem:[#allocation24_spill]] %s3679_s1  ;;  %s2705_s6 = sadd.s32 4294967294, %s3683_s3  }
  0x26   : > { %4296 = sst [smem:[#allocation25_spill]] %s3683_s3  ;;  %s3870_s11 = sadd.s32 1, %s3683_s3  }
  0x27   : > { %4297 = sst [smem:[#allocation26_spill]] %s3870_s11  ;;  %s577_s7 = sadd.s32 1, %s3679_s1 }
  0x28   : > { %s574_s2 = ssub.s32 %s3683_s3, %s3870_s11  ;;  %p587_p0 = scmp.ne.s32.totalorder %s3679_s1, %s3675_s30 }
  0x29   : > { %p575_p1 = scmp.eq.s32.totalorder %s574_s2, 0  ;;  %p588_p2 = scmp.eq.s32.totalorder %s3866_s21, 1 }
  0x2a   : > { %p593_p3 = scmp.ne.s32.totalorder %s3675_s30, %s3671_s10  ;;  %p594_p4 = scmp.eq.s32.totalorder %s2705_s6, 1 }
  0x2b   : > { %s3881_s27 = scalar_select %p575_p1, %s3679_s1, %s577_s7  }
  0x2c   : > { %p3883_p5 = por %p588_p2, %p587_p0  ;;  %p3887_p6 = por %p594_p4, %p593_p3 }
  0x2d   : > { %4298 = sst [smem:[#allocation27_spill]] %s3881_s27  ;;  %p2706_p7 = scmp.ge.s32.totalorder %s3683_s3, 1 }
  0x2e   : > { %s4299_s4 = scalar_select %p3883_p5, 1, 0 }
  0x2f   : > { %s4301_s8 = scalar_select %p3887_p6, 1, 0 }
  0x30   : > { %4300 = sst [smem:[#allocation28_spill]] %s4299_s4  ;;  %p601_p8 = scmp.lt.s32.totalorder %s3683_s3, 3 }
  0x31   : > { %4302 = sst [smem:[#allocation29_spill]] %s4301_s8  ;;  %p3281_p9 = scmp.eq.s32.totalorder %s3866_s21, 0 }
  0x32   : > { %p3894_p10 = pnand %p2706_p7, %p601_p8  ;;  %s4304_s29 = sld [smem:[#allocation37_spill]] }
  0x33   : > { %s3687_s6 = smov [#allocation8]   ;;  %s4306_s14 = sld [smem:[#allocation41_spill]] }
  0x34   : > { %p3258_p11 = pneg %p3894_p10  ;;  %s637_s7 = sshll.u32 %s3687_s6, 4  ;;  %s638_s7 = int_to_ptr.vmem [resolvable:$true] %s637_s7 }
  0x35   : > { %s3688_s9 = smov 64   ;;  %s3689_s5 = smov 4  }
  0x36   : > { %p3905_p12 = pnand %p3281_p9, %p3258_p11  ;;  %s3691_s8 = smov 128  }
  0x37   : > { %s3692_s10 = smov 8   ;;  %s4307_s3 = sld [smem:[#allocation35_spill]] }
  0x38   : > { %s635_s0 = sshll.u32 %s4304_s29, 4  ;;  %s3690_s29 = smov [#allocation11]   ;;  %s636_s0 = int_to_ptr.hbm [resolvable:$true] %s635_s0 }
  0x39   : > { %s675_s11 = sshll.u32 %s4306_s14, 4  ;;  %s677_s6 = sshll.u32 %s3690_s29, 4  ;;  %s676_s11 = int_to_ptr.hbm [resolvable:$true] %s675_s11  ;;  %s678_s6 = int_to_ptr.vmem [resolvable:$true] %s677_s6 }
  0x3a   : > { %3264 = dma.hbm_to_vmem [thread:$0]  (!%p3905_p12), %s636_s0, 1024, %s638_s7, [#allocation9], %s3688_s9, %s3688_s9, %s3689_s5  }
  0x3b   : > { %3270 = dma.hbm_to_vmem [thread:$0]  (!%p3905_p12), %s676_s11, 2048, %s678_s6, [#allocation12], %s3691_s8, %s3691_s8, %s3692_s10  }
  0x3c   : > { %s3693_s25 = smov [#allocation5]   ;;  %s658_s0 = sshll.u32 %s4252_s12, 4  ;;  %s659_s0 = int_to_ptr.hbm [resolvable:$true] %s658_s0 }
  0x3d   : > { %s618_s14 = sshll.u32 %s4307_s3, 4  ;;  %s620_s4 = sshll.u32 %s3693_s25, 4  ;;  %s619_s14 = int_to_ptr.hbm [resolvable:$true] %s618_s14  ;;  %s621_s4 = int_to_ptr.vmem [resolvable:$true] %s620_s4 }
  0x3e   : > { %s3694_s7 = smov 192   ;;  %s3695_s29 = smov 12  }
  0x3f   : > { %3261 = dma.hbm_to_vmem [thread:$0]  (!%p3905_p12), %s619_s14, 3072, %s621_s4, [#allocation6], %s3694_s7, %s3694_s7, %s3695_s29  }
  0x40   : > { %s3696_s11 = smov [#allocation10]   ;;  %s704_s3 = sshll.u32 %s4260_s20, 4  ;;  %s705_s3 = int_to_ptr.hbm [resolvable:$true] %s704_s3 }
  0x41   : > { %s660_s6 = sshll.u32 %s3696_s11, 4  ;;  %s721_s26 = sshll.u32 %s4262_s22, 4  ;;  %s661_s6 = int_to_ptr.vmem [resolvable:$true] %s660_s6  ;;  %s722_s26 = int_to_ptr.hbm [resolvable:$true] %s721_s26 }
  0x42   : > { %3267 = dma.hbm_to_vmem [thread:$0]  (!%p3905_p12), %s659_s0, 1024, %s661_s6, [#allocation9], %s3688_s9, %s3688_s9, %s3689_s5  }
  0x43   : > { %s3697_s14 = smov [#allocation13]   ;;  %s3698_s7 = smov [#allocation14]  }
  0x44   : > { %s706_s4 = sshll.u32 %s3697_s14, 4  ;;  %s723_s29 = sshll.u32 %s3698_s7, 4  ;;  %s707_s4 = int_to_ptr.vmem [resolvable:$true] %s706_s4  ;;  %s724_s29 = int_to_ptr.vmem [resolvable:$true] %s723_s29 }
  0x45   : > { %3273 = dma.hbm_to_vmem [thread:$0]  (!%p3905_p12), %s705_s3, 2048, %s707_s4, [#allocation12], %s3691_s8, %s3691_s8, %s3692_s10  }
  0x46   : > { %3276 = dma.hbm_to_vmem [thread:$0]  (!%p3905_p12), %s722_s26, 2048, %s724_s29, [#allocation15], %s3688_s9, %s3688_s9, %s3689_s5  }
  0x47   : > { %762 = sbr.rel (%p3894_p10) target bundleno = 4129 (0x1021), region = 116 }
  0x4c   : > { %3650 = dma.done.wait (%p3281_p9), [#allocation6], 3072  }
  0x4d   : > { %3652 = vsyncadd (%p3281_p9), [#allocation6], 4294964224 }
  0x4e   : > { %3654 = dma.done.wait (%p3281_p9), [#allocation9], 2048  }
  0x4f   : > { %3656 = vsyncadd (%p3281_p9), [#allocation9], 4294965248 }
  0x50   : > { %3658 = dma.done.wait (%p3281_p9), [#allocation12], 4096  }
  0x51   : > { %3660 = vsyncadd (%p3281_p9), [#allocation12], 4294963200 }
  0x52   : > { %3662 = dma.done.wait (%p3281_p9), [#allocation15], 2048  }
  0x53   : > { %3664 = vsyncadd (%p3281_p9), [#allocation15], 4294965248  ;;  %p857_p13 = scmp.lt.s32.totalorder %s3866_s21, 1  ;;  %s4308_s9 = sld [smem:[#allocation31_spill]]  ;;  %v3699_v2 = vmov 128.0   ;;  %vm1144_vm4 = vcmask 261120  }
  0x54   : > { %3357 = vrcp.f32 %v3699_v2  ;;  %v2810_v3 = vld [vmem:[#allocation5 + $0xa8] sm:$0xf]  ;;  %v3158_v4 = vld [vmem:[#allocation5 + $0xb0] sm:$0xf0]  ;;  %v3157_v5 = vld [vmem:[#allocation5 + $0xac] sm:$0xf] }
  0x55   : > { %s3965_s10 = scalar_select %p857_p13, %s3866_s21, 1  ;;  %v2811_v6 = vor.u32 %v3158_v4, %v2810_v3  ;;  %v2812_v7 = vld [vmem:[#allocation5 + $0xb4] sm:$0xf0]  ;;  %v2818_v8 = vld [vmem:[#allocation5 + $0xb0] sm:$0xf]  ;;  %vm1193_vm5 = vcmask 1043456  }
  0x56   : > { %v3159_v9 = vld [vmem:[#allocation5 + $0xb8] sm:$0xf0]  ;;  %v2815_v10 = vor.u32 %v3157_v5, %v2812_v7  ;;  %v2798_v22 = vld [vmem:[#allocation5 + $0x90] sm:$0xf]  ;;  %v3154_v24 = vld [vmem:[#allocation5 + $0x94] sm:$0xf] }
  0x57   : > { %s2722_s8 = sshll.u32 %s3965_s10, 2  ;;  %v2819_v11 = vor.u32 %v3159_v9, %v2818_v8  ;;  %1075 = vmatpush.bf16.msra.mxu0 %v2811_v6  ;;  %v3155_v23 = vld [vmem:[#allocation5 + $0x98] sm:$0xf0]  ;;  %v2800_v26 = vld [vmem:[#allocation5 + $0x9c] sm:$0xf0]  ;;  %s4309_s6 = sld [smem:[#allocation33_spill]] }
  0x58   : > { %1088 = vmatpush.bf16.msra.mxu1 %v2815_v10  ;;  %v2799_v25 = vor.u32 %v3155_v23, %v2798_v22  ;;  %v2806_v27 = vld [vmem:[#allocation5 + $0x98] sm:$0xf]  ;;  %v3156_v28 = vld [vmem:[#allocation5 + $0xa0] sm:$0xf0]  ;;  %v2803_v29 = vor.u32 %v3154_v24, %v2800_v26  ;;  %v3151_v33 = vld [vmem:[#allocation5 + $0x7c] sm:$0xf] }
  0x59   : > { %s860_s5 = scalar_lea.vmem %s4308_s9, %s2722_s8  ;;  %1101 = vmatpush.bf16.msra.mxu2 %v2819_v11  ;;  %v2807_v30 = vor.u32 %v3156_v28, %v2806_v27  ;;  %v2786_v31 = vld [vmem:[#allocation5 + $0x78] sm:$0xf]  ;;  %v3152_v32 = vld [vmem:[#allocation5 + $0x80] sm:$0xf0]  ;;  %v2788_v35 = vld [vmem:[#allocation5 + $0x84] sm:$0xf0] }
  0x5a   : > { %v866_v0 = vld [vmem:[%s860_s5] sm:$0xf]  ;;  %v3358_v12 = vpop.eup %3357  ;;  %v2787_v34 = vor.u32 %v3152_v32, %v2786_v31  ;;  %v3153_v37 = vld [vmem:[#allocation5 + $0x88] sm:$0xf0]  ;;  %v2791_v38 = vor.u32 %v3151_v33, %v2788_v35  ;;  %v3148_v42 = vld [vmem:[#allocation5 + $0x64] sm:$0xf] }
  0x5b   : > { %v3973_v1 = vunpack.c.l.bf16 %v866_v0  ;;  %v874_v13 = vmul.f32 128.0, %v3358_v12  ;;  %vm878_vm0 = vweird.f32 %v3358_v12  ;;  %1076 = vmatpush.bf16.msra.mxu0 %v2799_v25  ;;  %v2794_v36 = vld [vmem:[#allocation5 + $0x80] sm:$0xf]  ;;  %v3149_v41 = vld [vmem:[#allocation5 + $0x68] sm:$0xf0]  ;;  %s4310_s3 = sld [smem:[#allocation34_spill]] }
  0x5c   : > { %1089 = vmatpush.bf16.msra.mxu1 %v2803_v29  ;;  %v2795_v39 = vor.u32 %v3153_v37, %v2794_v36  ;;  %v2774_v40 = vld [vmem:[#allocation5 + $0x60] sm:$0xf]  ;;  %v2776_v44 = vld [vmem:[#allocation5 + $0x6c] sm:$0xf0]  ;;  %v2782_v45 = vld [vmem:[#allocation5 + $0x68] sm:$0xf] }
  0x5d   : > { %871 = vadd.xlane.f32.xlu0 %v3973_v1  ;;  %v875_v14 = vsub.f32 1.0, %v874_v13  ;;  %1102 = vmatpush.bf16.msra.mxu2 %v2807_v30  ;;  %v2775_v43 = vor.u32 %v3149_v41, %v2774_v40  ;;  %v3150_v46 = vld [vmem:[#allocation5 + $0x70] sm:$0xf0]  ;;  %v2779_v47 = vor.u32 %v3148_v42, %v2776_v44  ;;  %v2762_v49 = vld [vmem:[#allocation5 + $0x48] sm:$0xf]  ;;  %s4311_s26 = sld [smem:[#allocation36_spill]] }
  0x5e   : > { %v2783_v48 = vor.u32 %v3150_v46, %v2782_v45  ;;  %v3146_v50 = vld [vmem:[#allocation5 + $0x50] sm:$0xf0]  ;;  %v3145_v51 = vld [vmem:[#allocation5 + $0x4c] sm:$0xf]  ;;  %v2764_v53 = vld [vmem:[#allocation5 + $0x54] sm:$0xf0] }
  0x5f   : > { %v876_v15 = vmul.f32 %v3358_v12, %v875_v14  ;;  %1077 = vmatpush.bf16.msra.mxu0 %v2787_v34  ;;  %v2763_v52 = vor.u32 %v3146_v50, %v2762_v49  ;;  %v2770_v54 = vld [vmem:[#allocation5 + $0x50] sm:$0xf]  ;;  %v3147_v55 = vld [vmem:[#allocation5 + $0x58] sm:$0xf0]  ;;  %v2767_v56 = vor.u32 %v3145_v51, %v2764_v53  ;;  %v3142_v60 = vld [vmem:[#allocation5 + $0x34] sm:$0xf] }
  0x60   : > { %1090 = vmatpush.bf16.msra.mxu1 %v2791_v38  ;;  %v2771_v57 = vor.u32 %v3147_v55, %v2770_v54  ;;  %v2750_v58 = vld [vmem:[#allocation5 + $0x30] sm:$0xf]  ;;  %v3143_v59 = vld [vmem:[#allocation5 + $0x38] sm:$0xf0]  ;;  %v2752_v62 = vld [vmem:[#allocation5 + $0x3c] sm:$0xf0] }
  0x61   : > { %v877_v16 = vadd.f32 %v3358_v12, %v876_v15  ;;  %1103 = vmatpush.bf16.msra.mxu2 %v2795_v39  ;;  %v2751_v61 = vor.u32 %v3143_v59, %v2750_v58  ;;  %v2758_v63 = vld [vmem:[#allocation5 + $0x38] sm:$0xf]  ;;  %v3144_v0 = vld [vmem:[#allocation5 + $0x40] sm:$0xf0]  ;;  %v2755_v2 = vor.u32 %v3142_v60, %v2752_v62  ;;  %v3139_v6 = vld [vmem:[#allocation5 + $0x1c] sm:$0xf] }
  0x62   : > { %v2759_v3 = vor.u32 %v3144_v0, %v2758_v63  ;;  %v2738_v4 = vld [vmem:[#allocation5 + $0x18] sm:$0xf]  ;;  %v3140_v5 = vld [vmem:[#allocation5 + $0x20] sm:$0xf0]  ;;  %v2740_v8 = vld [vmem:[#allocation5 + $0x24] sm:$0xf0]  ;;  %v1132_v0 = vlaneseq }
  0x63   : > { %v3976_v17 = vsel %vm878_vm0, %v3358_v12, %v877_v16  ;;  %1078 = vmatpush.bf16.msra.mxu0 %v2775_v43  ;;  %v2739_v7 = vor.u32 %v3140_v5, %v2738_v4  ;;  %v2746_v9 = vld [vmem:[#allocation5 + $0x20] sm:$0xf]  ;;  %v3141_v10 = vld [vmem:[#allocation5 + $0x28] sm:$0xf0]  ;;  %v2743_v11 = vor.u32 %v3139_v6, %v2740_v8  ;;  %v3136_v15 = vld [vmem:[#allocation5 + $0x4] sm:$0xf] }
  0x64   : > { %1091 = vmatpush.bf16.msra.mxu1 %v2779_v47  ;;  %v2747_v12 = vor.u32 %v3141_v10, %v2746_v9  ;;  %v2726_v13 = vld [vmem:[#allocation5] sm:$0xf]  ;;  %v3137_v14 = vld [vmem:[#allocation5 + $0x8] sm:$0xf0]  ;;  %s3700_s14 = smov 32   ;;  %s3701_s4 = smov 96  }
  0x65   : > { %1104 = vmatpush.bf16.msra.mxu2 %v2783_v48  ;;  %v2727_v16 = vor.u32 %v3137_v14, %v2726_v13  ;;  %v3345_v33 = vld [vmem:[%s4309_s6] ss:$0 sm:$0xff]  ;;  %s3702_s7 = smov 64   ;;  %v3161_v58 = vld [vmem:[#allocation8 + $0x8] sm:$0xff]  ;;  %s1131_s29 = sld [smem:[#allocation4 + %s3866_s21]]  ;;  %vm1164_vm9 = vcmask 64512  }
  0x66   : > { %v3346_v36 = vld [vmem:[%s4310_s3] ss:$0 sm:$0xff]  ;;  %v3703_v5 = vmov -1e+09   ;;  %s4312_s9 = sld [smem:[#allocation38_spill]]  ;;  %s3133_s27 = sshll.u32 %s3866_s21, 3 }
  0x67   : > { %1079 = vmatpush.bf16.msra.mxu0 %v2763_v52  ;;  %v939_v40 = vld [vmem:[%s4311_s26] sm:$0x7]  ;;  %s4313_s11 = sld [smem:[#allocation32_spill]] }
  0x68   : > { %1092 = vmatpush.bf16.msra.mxu1 %v2767_v56  ;;  %v942_v41 = vperm.slane %v939_v40, 1  ;;  %v941_v42 = vperm.slane %v939_v40, 0  ;;  %v943_v47 = vperm.slane %v939_v40, 2  ;;  %v3160_v59 = vld [vmem:[#allocation8] sm:$0xff]  ;;  %s4314_s1 = sld [smem:[#allocation39_spill]] }
  0x69   : > { %1105 = vmatpush.bf16.msra.mxu2 %v2771_v57  ;;  %s4315_s24 = sld [smem:[#allocation40_spill]] }
  0x6a   : > { %s1801_s2 = sld [smem:[#allocation3 + %s3866_s21]] }
  0x6b   : > { %1080 = vmatpush.bf16.msra.mxu0 %v2751_v61  ;;  %v1136_v4 = vstv %s1131_s29  ;;  %s4318_s29 = sld [smem:[#allocation45_spill]] }
  0x6c   : > { %1093 = vmatpush.bf16.msra.mxu1 %v2755_v2  ;;  %v4009_v2 = vand.u32 127, %v1132_v0  ;;  %s4320_s0 = sld [smem:[#allocation44_spill]] }
  0x6d   : > { %1106 = vmatpush.bf16.msra.mxu2 %v2759_v3  ;;  %v1135_v3 = vshrl.u32 %v1132_v0, 7  ;;  %s864_s6 = scalar_lea.vmem %s4313_s11, %s2722_s8  ;;  %s854_s8 = sand.u32 1, %s3675_s30  }
  0x6e   : > { %vm1137_vm6 = vcmp.lt.s32.totalorder %v4009_v2, %v1136_v4 }
  0x6f   : > { %1081 = vmatpush.bf16.msra.mxu0 %v2739_v7  ;;  %vm1138_vm7 = vcmp.ge.s32.totalorder %v1135_v3, %v4009_v2 }
  0x70   : > { %1094 = vmatpush.bf16.msra.mxu1 %v2743_v11  ;;  %vm1139_vm8 = vmand %vm1137_vm6, %vm1138_vm7 }
  0x71   : > { %1107 = vmatpush.bf16.msra.mxu2 %v2747_v12  ;;  %v4014_v6 = vsel %vm1139_vm8, 0.0, %v3703_v5  ;;  %s2569_s28 = scalar_lea.hbm %s4318_s29, %s3133_s27 }
  0x73   : > { %1082 = vmatpush.bf16.msra.mxu0 %v2727_v16 }
  0xd0   : > { %v872_v18 = vpop.xlane.xlu0 %871 }
  0xd1   : > { %v880_v19 = vmul.f32 %v3976_v17, %v872_v18  ;;  %v2728_v18 = vld [vmem:[#allocation5 + $0xc] sm:$0xf0] }
  0xd2   : > { %v2731_v22 = vor.u32 %v3136_v15, %v2728_v18 }
  0xd3   : > { %v3980_v20 = vsub.f32 %v3973_v1, %v880_v19  ;;  %v2734_v19 = vld [vmem:[#allocation5 + $0x8] sm:$0xf] }
  0xd4   : > { %1095 = vmatpush.bf16.msra.mxu1 %v2731_v22 }
  0xd5   : > { %v882_v21 = vmul.f32 %v3980_v20, %v3980_v20 }
  0xd7   : > { %883 = vadd.xlane.f32.xlu0 %v882_v21  ;;  %v3138_v21 = vld [vmem:[#allocation5 + $0x10] sm:$0xf0] }
  0xd8   : > { %v2735_v23 = vor.u32 %v3138_v21, %v2734_v19 }
  0xda   : > { %1108 = vmatpush.bf16.msra.mxu2 %v2735_v23 }
  0xde   : > { %1333 = vmatpush.bf16.msrb.mxu2 %v3161_v58 }
  0xe2   : > { %1334 = vmatpush.bf16.msrb.mxu2 %v3160_v59 }
 0x14a   : > { %v884_v24 = vpop.xlane.xlu0 %883 }
 0x14b   : > { %v885_v25 = vmul.f32 %v884_v24, %v3976_v17 }
 0x14d   : > { %v886_v26 = vadd.f32 1e-05, %v885_v25 }
 0x14f   : > { %3359 = vrsqrt.f32 %v886_v26  ;;  %vm893_vm2 = vweird.f32 %v886_v26 }
 0x155   : > { %v3360_v27 = vpop.eup %3359 }
 0x156   : > { %v888_v28 = vmul.f32 %v3360_v27, %v886_v26  ;;  %vm894_vm1 = vweird.f32 %v3360_v27 }
 0x157   : > { %vm895_vm3 = vmor %vm893_vm2, %vm894_vm1 }
 0x158   : > { %v889_v29 = vmul.f32 %v3360_v27, %v888_v28 }
 0x15a   : > { %v890_v30 = vmul.f32 0.5, %v889_v29 }
 0x15c   : > { %v891_v31 = vsub.f32 1.5, %v890_v30 }
 0x15e   : > { %v892_v32 = vmul.f32 %v3360_v27, %v891_v31 }
 0x160   : > { %v896_v34 = vsel %vm895_vm3, %v3360_v27, %v892_v32 }
 0x161   : > { %v897_v35 = vmul.f32 %v896_v34, %v3980_v20 }
 0x163   : > { %v901_v37 = vmul.f32 %v3345_v33, %v897_v35 }
 0x165   : > { %v905_v38 = vadd.f32 %v3346_v36, %v901_v37 }
 0x167   : > { %v906_v39 = vpack.c.bf16 %v905_v38, %v905_v38 }
 0x169   : > { %1083 = vmatmul.bf16.vlgmr.msra.gmra.mxu0 %v906_v39  ;;  %1096 = vmatmul.bf16.vlgmr.msra.gmra.mxu1 %v906_v39 }
 0x16a   : > { %1109 = vmatmul.bf16.vlgmr.msra.gmra.mxu2 %v906_v39 }
 0x1e6   : > { %v1084_v43 = vpop.f32.mrf.mxu0  ;;  %v1097_v44 = vpop.f32.mrf.mxu1 }
 0x1e7   : > { %v1098_v45 = vadd.f32 %v1097_v44, %v942_v41  ;;  %v1085_v20 = vadd.f32 %v1084_v43, %v941_v42 }
 0x1e9   : > { %v1142_v46 = vpack.c.bf16 %v1098_v45, %v1098_v45  ;;  %v1114_v49 = vmul.f32 0.17677669, %v1085_v20 }
 0x1eb   : > { %1441 = vrot.lane.b32.xlu0 %v1142_v46, %s3700_s14  ;;  %1215 = vrot.lane.b32.xlu2 %v1142_v46, %s3701_s4  ;;  %v1149_v48 = vsel %vm1144_vm4, %v1142_v46, 0  ;;  %v1141_v55 = vpack.c.bf16 %v1114_v49, %v1114_v49 }
 0x1ec   : > { %1158 = vmatpush.bf16.xpose.msra.mxu3 %v1149_v48 }
 0x1ed   : > { %v1110_v50 = vpop.f32.mrf.mxu2 }
 0x1ee   : > { %v1111_v51 = vadd.f32 %v1110_v50, %v943_v47  ;;  %v1086_v52 = vpop.f32.mrf.mxu0  ;;  %v1099_v53 = vpop.f32.mrf.mxu1 }
 0x1f0   : > { %v3998_v54 = vpack.c.bf16 %v1111_v51, %v1111_v51 }
 0x1f2   : > { %v1195_v56 = vsel %vm1193_vm5, %v3998_v54, 0 }
 0x1f3   : > { %1212 = vrot.lane.b32.xlu2 %v1141_v55, %s3701_s4  ;;  %2820 = vmatmul.msk.bf16.vlgmr.msra.gmra.mxu3 %vm1144_vm4, %v1141_v55 }
 0x1f4   : > { %1204 = vmatpush.bf16.msrb.mxu3 %v1195_v56 }
 0x1f5   : > { %v1112_v57 = vpop.f32.mrf.mxu2 }
 0x1fb   : > { %1439 = vrot.lane.b32.xlu2 %v1141_v55, %s3700_s14 }
 0x203   : > { %1340 = vrot.lane.b32.xlu2 %v1141_v55, %s3702_s7 }
 0x245   : > { %v1216_v60 = vpop.permute.xlu2 %1215 }
 0x246   : > { %v1221_v61 = vsel %vm1144_vm4, %v1216_v60, 0 }
 0x247   : > { %1230 = vmatpush.bf16.xpose.msra.mxu3 %v1221_v61 }
 0x24d   : > { %v1213_v33 = vpop.permute.xlu2 %1212 }
 0x255   : > { %v1440_v34 = vpop.permute.xlu2 %1439 }
 0x25d   : > { %v1442_v62 = vpop.permute.xlu0 %1441  ;;  %v1341_v35 = vpop.permute.xlu2 %1340 }
 0x25e   : > { %v1447_v63 = vsel %vm1144_vm4, %v1442_v62, 0 }
 0x25f   : > { %1456 = vmatpush.bf16.xpose.msra.mxu2 %v1447_v63 }
 0x276   : > { %v1160_v7 = vpop.f32.mrf.mxu3 }
 0x277   : > { %v1161_v8 = vadd.f32 %v1160_v7, %v4014_v6 }
 0x279   : > { %v1165_v9 = vsel %vm1164_vm9, %v1161_v8, -inf }
 0x27a   : > { %1166 = vmax.xlane.f32.xlu1 %v1165_v9 }
 0x27e   : > { %v1162_v10 = vpop.f32.mrf.mxu3 }
 0x2ed   : > { %v1167_v11 = vpop.xlane.xlu1 %1166 }
 0x2ee   : > { %v1168_v12 = vsub.f32 %v1161_v8, %v1167_v11 }
 0x2f0   : > { %v1169_v13 = vmul.f32 1.442695, %v1168_v12 }
 0x2f2   : > { %3361 = vpow2.f32 %v1169_v13 }
 0x2f8   : > { %v3362_v14 = vpop.eup %3361 }
 0x2f9   : > { %v1171_v15 = vsel %vm1164_vm9, %v3362_v14, 0.0 }
 0x2fa   : > { %1172 = vadd.xlane.f32.xlu1 %v1171_v15 }
 0x313   : > { %1342 = vrot.lane.b32.xlu1 %v1142_v46, %s3702_s7 }
 0x36d   : > { %v1173_v16 = vpop.xlane.xlu1 %1172 }
 0x36e   : > { %3363 = vrcp.f32 %v1173_v16  ;;  %v1185_v22 = vand.u32 2147483648, %v1173_v16  ;;  %v1183_v24 = vand.u32 2147483647, %v1173_v16  ;;  %vm1179_vm11 = vweird.f32 %v1173_v16 }
 0x370   : > { %v1186_v26 = vor.u32 1.1754944e-38, %v1185_v22  ;;  %vm1184_vm13 = vcmp.eq.f32.partialorder %v1183_v24, 8.507059e+37 }
 0x374   : > { %v3364_v18 = vpop.eup %3363 }
 0x375   : > { %v1175_v19 = vmul.f32 %v3364_v18, %v1173_v16  ;;  %vm1180_vm10 = vweird.f32 %v3364_v18 }
 0x376   : > { %vm1181_vm12 = vmor %vm1179_vm11, %vm1180_vm10 }
 0x377   : > { %v1176_v21 = vsub.f32 1.0, %v1175_v19 }
 0x379   : > { %v1177_v23 = vmul.f32 %v3364_v18, %v1176_v21 }
 0x37b   : > { %v1178_v25 = vadd.f32 %v3364_v18, %v1177_v23 }
 0x37d   : > { %v1182_v27 = vsel %vm1181_vm12, %v3364_v18, %v1178_v25 }
 0x37e   : > { %v1187_v28 = vsel %vm1184_vm13, %v1186_v26, %v1182_v27 }
 0x37f   : > { %v1188_v29 = vmul.f32 %v3362_v14, %v1187_v28 }
 0x381   : > { %v1189_v30 = vpack.c.bf16 %v1188_v29, %v1188_v29 }
 0x383   : > { %2821 = vmatmul.msk.bf16.vlgmr.msrb.gmra.mxu3 %vm1164_vm9, %v1189_v30 }
 0x385   : > { %v1343_v31 = vpop.permute.xlu1 %1342 }
 0x386   : > { %v1348_v32 = vsel %vm1144_vm4, %v1343_v31, 0 }
 0x387   : > { %1357 = vmatpush.bf16.xpose.msrb.mxu3 %v1348_v32 }
 0x393   : > { %2822 = vmatmul.msk.bf16.vlgmr.msra.gmra.mxu3 %vm1144_vm4, %v1213_v33 }
 0x3a3   : > { %2842 = vmatmul.msk.bf16.vlgmr.msrb.gmra.mxu3 %vm1144_vm4, %v1341_v35 }
 0x406   : > { %v1206_v36 = vpop.f32.mrf.mxu3 }
 0x407   : > { %v1210_v37 = vpack.c.bf16 %v1206_v36, %v1206_v36 }
 0x409   : > { %2841 = vmatmul.msk.bf16.vlgmr.msrb.gmra.mxu2 %vm1144_vm4, %v1210_v37 }
 0x40e   : > { %v1208_v38 = vpop.f32.mrf.mxu3 }
 0x416   : > { %v1232_v39 = vpop.f32.mrf.mxu3 }
 0x417   : > { %v1233_v40 = vadd.f32 %v1232_v39, %v4014_v6  ;;  %v3163_v39 = vld [vmem:[#allocation8 + $0x18] sm:$0xff] }
 0x418   : > { %1305 = vmatpush.bf16.msrb.mxu1 %v3163_v39 }
 0x419   : > { %2853 = vmatmul.msk.bf16.vlgmr.msra.gmra.mxu2 %vm1144_vm4, %v1440_v34  ;;  %v1236_v41 = vsel %vm1164_vm9, %v1233_v40, -inf }
 0x41a   : > { %1237 = vmax.xlane.f32.xlu2 %v1236_v41  ;;  %v3165_v41 = vld [vmem:[#allocation8 + $0x28] sm:$0xff] }
 0x41e   : > { %v1234_v42 = vpop.f32.mrf.mxu3 }
 0x41f   : > { %v3164_v42 = vld [vmem:[#allocation8 + $0x20] sm:$0xff] }
 0x426   : > { %v1359_v43 = vpop.f32.mrf.mxu3 }
 0x427   : > { %v1360_v44 = vadd.f32 %v1359_v43, %v4014_v6 }
 0x429   : > { %v1363_v45 = vsel %vm1164_vm9, %v1360_v44, -inf }
 0x42a   : > { %1364 = vmax.xlane.f32.xlu1 %v1363_v45 }
 0x42e   : > { %v1361_v20 = vpop.f32.mrf.mxu3 }
 0x443   : > { %1262 = vrot.lane.b32.xlu1 %v3998_v54, %s3701_s4 }
 0x48c   : > { %v4032_v46 = vpop.f32.mrf.mxu2 }
 0x48d   : > { %v1238_v47 = vpop.xlane.xlu2 %1237 }
 0x48e   : > { %v1239_v48 = vsub.f32 %v1233_v40, %v1238_v47  ;;  %v3162_v40 = vld [vmem:[#allocation8 + $0x10] sm:$0xff] }
 0x48f   : > { %1306 = vmatpush.bf16.msrb.mxu1 %v3162_v40 }
 0x490   : > { %v1240_v49 = vmul.f32 1.442695, %v1239_v48 }
 0x492   : > { %3365 = vpow2.f32 %v1240_v49 }
 0x493   : > { %1431 = vmatpush.bf16.msra.mxu1 %v3165_v41 }
 0x494   : > { %v1338_v50 = vpop.f32.mrf.mxu2 }
 0x497   : > { %1432 = vmatpush.bf16.msra.mxu1 %v3164_v42 }
 0x498   : > { %v3366_v51 = vpop.eup %3365 }
 0x499   : > { %v1242_v52 = vsel %vm1164_vm9, %v3366_v51, 0.0 }
 0x49a   : > { %1243 = vadd.xlane.f32.xlu2 %v1242_v52 }
 0x49c   : > { %v1458_v53 = vpop.f32.mrf.mxu2 }
 0x49d   : > { %v1459_v55 = vadd.f32 %v1458_v53, %v4014_v6  ;;  %v1365_v56 = vpop.xlane.xlu1 %1364 }
 0x49e   : > { %v1366_v57 = vsub.f32 %v1360_v44, %v1365_v56 }
 0x49f   : > { %v1462_v58 = vsel %vm1164_vm9, %v1459_v55, -inf }
 0x4a0   : > { %v1367_v59 = vmul.f32 1.442695, %v1366_v57  ;;  %1463 = vmax.xlane.f32.xlu0 %v1462_v58 }
 0x4a2   : > { %3367 = vpow2.f32 %v1367_v59 }
 0x4a4   : > { %v1460_v60 = vpop.f32.mrf.mxu2 }
 0x4a8   : > { %v3368_v61 = vpop.eup %3367 }
 0x4a9   : > { %v1369_v62 = vsel %vm1164_vm9, %v3368_v61, 0.0 }
 0x4aa   : > { %1370 = vadd.xlane.f32.xlu2 %v1369_v62 }
 0x4b5   : > { %v1263_v63 = vpop.permute.xlu1 %1262 }
 0x4b6   : > { %v1268_v0 = vsel %vm1193_vm5, %v1263_v63, 0 }
 0x4b7   : > { %1277 = vmatpush.bf16.msrb.mxu0 %v1268_v0  ;;  %v3167_v0 = vld [vmem:[#allocation8 + $0x38] sm:$0xff] }
 0x4c2   : > { %1388 = vrot.lane.b32.xlu2 %v3998_v54, %s3702_s7 }
 0x50d   : > { %v1244_v3 = vpop.xlane.xlu2 %1243 }
 0x50e   : > { %3369 = vrcp.f32 %v1244_v3  ;;  %v1256_v12 = vand.u32 2147483648, %v1244_v3  ;;  %v1254_v13 = vand.u32 2147483647, %v1244_v3  ;;  %vm1250_vm15 = vweird.f32 %v1244_v3 }
 0x510   : > { %v1257_v15 = vor.u32 1.1754944e-38, %v1256_v12  ;;  %vm1255_vm1 = vcmp.eq.f32.partialorder %v1254_v13, 8.507059e+37 }
 0x513   : > { %v1464_v4 = vpop.xlane.xlu0 %1463 }
 0x514   : > { %v3370_v6 = vpop.eup %3369  ;;  %v1465_v7 = vsub.f32 %v1459_v55, %v1464_v4 }
 0x515   : > { %v1246_v8 = vmul.f32 %v3370_v6, %v1244_v3  ;;  %vm1251_vm14 = vweird.f32 %v3370_v6  ;;  %v3166_v3 = vld [vmem:[#allocation8 + $0x30] sm:$0xff] }
 0x516   : > { %v1466_v9 = vmul.f32 1.442695, %v1465_v7  ;;  %vm1252_vm0 = vmor %vm1250_vm15, %vm1251_vm14 }
 0x517   : > { %v1247_v10 = vsub.f32 1.0, %v1246_v8 }
 0x518   : > { %3371 = vpow2.f32 %v1466_v9 }
 0x519   : > { %v1248_v11 = vmul.f32 %v3370_v6, %v1247_v10 }
 0x51b   : > { %v1249_v14 = vadd.f32 %v3370_v6, %v1248_v11 }
 0x51d   : > { %v1371_v16 = vpop.xlane.xlu2 %1370  ;;  %v1253_v18 = vsel %vm1252_vm0, %v3370_v6, %v1249_v14 }
 0x51e   : > { %v3372_v19 = vpop.eup %3371  ;;  %3373 = vrcp.f32 %v1371_v16  ;;  %v1258_v22 = vsel %vm1255_vm1, %v1257_v15, %v1253_v18  ;;  %v1383_v30 = vand.u32 2147483648, %v1371_v16  ;;  %v1381_v32 = vand.u32 2147483647, %v1371_v16 }
 0x51f   : > { %v1468_v21 = vsel %vm1164_vm9, %v3372_v19, 0.0  ;;  %v1259_v23 = vmul.f32 %v3366_v51, %v1258_v22  ;;  %vm1377_vm3 = vweird.f32 %v1371_v16  ;;  %v3191_v22 = vld [vmem:[#allocation11 + $0x74] sm:$0xf0] }
 0x520   : > { %1469 = vadd.xlane.f32.xlu0 %v1468_v21  ;;  %v1384_v34 = vor.u32 1.1754944e-38, %v1383_v30  ;;  %vm1382_vm7 = vcmp.eq.f32.partialorder %v1381_v32, 8.507059e+37 }
 0x521   : > { %v1260_v24 = vpack.c.bf16 %v1259_v23, %v1259_v23  ;;  %v2946_v23 = vld [vmem:[#allocation11 + $0x60] sm:$0xf] }
 0x523   : > { %2823 = vmatmul.msk.bf16.vlgmr.msrb.gmra.mxu0 %vm1164_vm9, %v1260_v24 }
 0x524   : > { %v3374_v25 = vpop.eup %3373 }
 0x525   : > { %v1373_v26 = vmul.f32 %v3374_v25, %v1371_v16  ;;  %v1389_v27 = vpop.permute.xlu2 %1388  ;;  %vm1378_vm2 = vweird.f32 %v3374_v25  ;;  %v3347_v16 = vld [vmem:[%s4312_s9] ss:$0 sm:$0xff] }
 0x526   : > { %v1394_v28 = vsel %vm1193_vm5, %v1389_v27, 0  ;;  %vm1379_vm6 = vmor %vm1377_vm3, %vm1378_vm2  ;;  %v3175_v27 = vld [vmem:[#allocation10 + $0x38] sm:$0xff] }
 0x527   : > { %v1374_v29 = vsub.f32 1.0, %v1373_v26  ;;  %1403 = vmatpush.bf16.msra.mxu0 %v1394_v28  ;;  %v2938_v28 = vld [vmem:[#allocation11 + $0x50] sm:$0xf] }
 0x529   : > { %v1375_v31 = vmul.f32 %v3374_v25, %v1374_v29  ;;  %v3187_v29 = vld [vmem:[#allocation11 + $0x54] sm:$0xf0] }
 0x52a   : > { %v2939_v30 = vor.u32 %v3187_v29, %v2938_v28  ;;  %v1802_v29 = vstv %s1801_s2 }
 0x52b   : > { %v1376_v33 = vadd.f32 %v3374_v25, %v1375_v31  ;;  %1530 = vmatpush.bf16.msrb.mxu0 %v3167_v0  ;;  %v2930_v31 = vld [vmem:[#allocation11 + $0x40] sm:$0xf]  ;;  %vm1803_vm0 = vcmp.lt.s32.totalorder %v4009_v2, %v1802_v29 }
 0x52d   : > { %v1380_v35 = vsel %vm1379_vm6, %v3374_v25, %v1376_v33  ;;  %v3189_v25 = vld [vmem:[#allocation11 + $0x64] sm:$0xf0]  ;;  %v2922_v33 = vld [vmem:[#allocation11 + $0x30] sm:$0xf] }
 0x52e   : > { %v1385_v36 = vsel %vm1382_vm7, %v1384_v34, %v1380_v35  ;;  %v2947_v26 = vor.u32 %v3189_v25, %v2946_v23  ;;  %v3183_v34 = vld [vmem:[#allocation11 + $0x34] sm:$0xf0] }
 0x52f   : > { %v1386_v37 = vmul.f32 %v3368_v61, %v1385_v36  ;;  %1531 = vmatpush.bf16.msrb.mxu0 %v3166_v3  ;;  %v2923_v35 = vor.u32 %v3183_v34, %v2922_v33  ;;  %v2914_v36 = vld [vmem:[#allocation11 + $0x20] sm:$0xf]  ;;  %v3190_v33 = vld [vmem:[#allocation11 + $0x74] sm:$0xf]  ;;  %v2956_v34 = vld [vmem:[#allocation11 + $0x78] sm:$0xf0] }
 0x531   : > { %v1387_v38 = vpack.c.bf16 %v1386_v37, %v1386_v37  ;;  %v3181_v37 = vld [vmem:[#allocation11 + $0x24] sm:$0xf0] }
 0x533   : > { %2843 = vmatmul.msk.bf16.vlgmr.msra.gmra.mxu0 %vm1164_vm9, %v1387_v38  ;;  %v2915_v38 = vor.u32 %v3181_v37, %v2914_v36  ;;  %v2959_v36 = vor.u32 %v3190_v33, %v2956_v34  ;;  %v2948_v37 = vld [vmem:[#allocation11 + $0x68] sm:$0xf0] }
 0x534   : > { %1487 = vrot.lane.b32.xlu0 %v3998_v54, %s3700_s14 }
 0x593   : > { %v1470_v43 = vpop.xlane.xlu0 %1469 }
 0x594   : > { %3375 = vrcp.f32 %v1470_v43  ;;  %v1482_v47 = vand.u32 2147483648, %v1470_v43  ;;  %v1480_v49 = vand.u32 2147483647, %v1470_v43  ;;  %vm1476_vm10 = vweird.f32 %v1470_v43 }
 0x596   : > { %v1483_v51 = vor.u32 1.1754944e-38, %v1482_v47  ;;  %vm1481_vm12 = vcmp.eq.f32.partialorder %v1480_v49, 8.507059e+37  ;;  %v2898_v47 = vld [vmem:[#allocation11] sm:$0xf]  ;;  %v3173_v49 = vld [vmem:[#allocation10 + $0x28] sm:$0xff] }
 0x59a   : > { %v3376_v44 = vpop.eup %3375 }
 0x59b   : > { %v1472_v45 = vmul.f32 %v3376_v44, %v1470_v43  ;;  %vm1477_vm8 = vweird.f32 %v3376_v44  ;;  %v2906_v43 = vld [vmem:[#allocation11 + $0x10] sm:$0xf] }
 0x59c   : > { %vm1478_vm11 = vmor %vm1476_vm10, %vm1477_vm8 }
 0x59d   : > { %v1473_v20 = vsub.f32 1.0, %v1472_v45  ;;  %v3174_v45 = vld [vmem:[#allocation10 + $0x30] sm:$0xff] }
 0x59f   : > { %v1474_v48 = vmul.f32 %v3376_v44, %v1473_v20 }
 0x5a0   : > { %v1279_v54 = vpop.f32.mrf.mxu0 }
 0x5a1   : > { %v1475_v50 = vadd.f32 %v3376_v44, %v1474_v48  ;;  %v1283_v52 = vpack.c.bf16 %v1279_v54, %v1279_v54  ;;  %v3177_v48 = vld [vmem:[#allocation11 + $0x4] sm:$0xf0]  ;;  %v4067_v54 = vld [vmem:[%s864_s6] sm:$0xf] }
 0x5a3   : > { %v1479_v53 = vsel %vm1478_vm11, %v3376_v44, %v1475_v50  ;;  %2832 = vmatmul.msk.bf16.vlgmr.msrb.gmra.mxu1 %vm1144_vm4, %v1283_v52  ;;  %v3179_v44 = vld [vmem:[#allocation11 + $0x14] sm:$0xf0]  ;;  %v2899_v50 = vor.u32 %v3177_v48, %v2898_v47  ;;  %v3180_v47 = vld [vmem:[#allocation11 + $0x24] sm:$0xf]  ;;  %v2916_v48 = vld [vmem:[#allocation11 + $0x28] sm:$0xf0] }
 0x5a4   : > { %v1484_v55 = vsel %vm1481_vm12, %v1483_v51, %v1479_v53  ;;  %1643 = vmatpush.bf16.msrb.mxu1 %v3175_v27  ;;  %v2907_v20 = vor.u32 %v3179_v44, %v2906_v43  ;;  %v3172_v51 = vld [vmem:[#allocation10 + $0x20] sm:$0xff]  ;;  %v3171_v52 = vld [vmem:[#allocation10 + $0x18] sm:$0xff]  ;;  %v3170_v53 = vld [vmem:[#allocation10 + $0x10] sm:$0xff] }
 0x5a5   : > { %v1485_v56 = vmul.f32 %v3372_v19, %v1484_v55  ;;  %v3169_v55 = vld [vmem:[#allocation10 + $0x8] sm:$0xff]  ;;  %v3182_v44 = vld [vmem:[#allocation11 + $0x34] sm:$0xf] }
 0x5a6   : > { %v1488_v57 = vpop.permute.xlu0 %1487 }
 0x5a7   : > { %v1493_v58 = vsel %vm1193_vm5, %v1488_v57, 0  ;;  %v1486_v60 = vpack.c.bf16 %v1485_v56, %v1485_v56  ;;  %v3168_v56 = vld [vmem:[#allocation10] sm:$0xff] }
 0x5a8   : > { %1502 = vmatpush.bf16.msra.mxu3 %v1493_v58  ;;  %v1281_v59 = vpop.f32.mrf.mxu0  ;;  %1644 = vmatpush.bf16.msrb.mxu1 %v3174_v45  ;;  %v2924_v45 = vld [vmem:[#allocation11 + $0x38] sm:$0xf0] }
 0x5ab   : > { %2854 = vmatmul.msk.bf16.vlgmr.msra.gmra.mxu3 %vm1164_vm9, %v1486_v60 }
 0x5ac   : > { %1645 = vmatpush.bf16.msrb.mxu1 %v3173_v49  ;;  %1772 = vmatpush.bf16.msrb.mxu3 %v2959_v36  ;;  %v2919_v49 = vor.u32 %v3180_v47, %v2916_v48 }
 0x5b0   : > { %v1405_v61 = vpop.f32.mrf.mxu0  ;;  %1646 = vmatpush.bf16.msrb.mxu1 %v3172_v51  ;;  %v2908_v51 = vld [vmem:[#allocation11 + $0x18] sm:$0xf0] }
 0x5b1   : > { %v1409_v62 = vpack.c.bf16 %v1405_v61, %v1405_v61 }
 0x5b3   : > { %2852 = vmatmul.msk.bf16.vlgmr.msra.gmra.mxu1 %vm1144_vm4, %v1409_v62 }
 0x5b4   : > { %1647 = vmatpush.bf16.msrb.mxu1 %v3171_v52 }
 0x5b8   : > { %v1407_v63 = vpop.f32.mrf.mxu0  ;;  %1648 = vmatpush.bf16.msrb.mxu1 %v3170_v53  ;;  %v3176_v53 = vld [vmem:[#allocation11 + $0x4] sm:$0xf] }
 0x5bc   : > { %1649 = vmatpush.bf16.msrb.mxu1 %v3169_v55  ;;  %v2900_v55 = vld [vmem:[#allocation11 + $0x8] sm:$0xf0] }
 0x5c0   : > { %1650 = vmatpush.bf16.msrb.mxu1 %v3168_v56  ;;  %v2903_v56 = vor.u32 %v3176_v53, %v2900_v55 }
 0x620   : > { %v1308_v4 = vpop.f32.mrf.mxu1 }
 0x621   : > { %v1337_v9 = vadd.f32 %v4032_v46, %v1308_v4  ;;  %v2954_v46 = vld [vmem:[#allocation11 + $0x70] sm:$0xf]  ;;  %v3348_v4 = vld [vmem:[%s4314_s1] ss:$0 sm:$0xff]  ;;  %s2721_s1 = sshll.u32 %s854_s8, 3 }
 0x622   : > { %v2955_v24 = vor.u32 %v3191_v22, %v2954_v46  ;;  %v3350_v46 = vld [vmem:[%s4253_s13] ss:$0 sm:$0xff]  ;;  %s856_s11 = scalar_lea.vmem [#allocation16], %s2721_s1 }
 0x623   : > { %s2571_s21 = sshll.u32 %s856_s11, 4  ;;  %s2572_s21 = int_to_ptr.vmem [resolvable:$true] %s2571_s21 }
 0x624   : > { %1759 = vmatpush.bf16.msrb.mxu2 %v2955_v24 }
 0x628   : > { %v1310_v6 = vpop.f32.mrf.mxu1  ;;  %1760 = vmatpush.bf16.msrb.mxu2 %v2947_v26 }
 0x62c   : > { %1761 = vmatpush.bf16.msrb.mxu2 %v2939_v30  ;;  %v4098_v30 = vsel %vm1803_vm0, 0.0, %v3703_v5  ;;  %v3184_v5 = vld [vmem:[#allocation11 + $0x44] sm:$0xf] }
 0x62e   : > { %v1504_v7 = vpop.f32.mrf.mxu3 }
 0x62f   : > { %v1508_v8 = vpack.c.bf16 %v1504_v7, %v1504_v7 }
 0x630   : > { %v1434_v10 = vpop.f32.mrf.mxu1 }
 0x631   : > { %2863 = vmatmul.msk.bf16.vlgmr.msrb.gmra.mxu0 %vm1144_vm4, %v1508_v8  ;;  %v1438_v11 = vadd.f32 %v1434_v10, %v1337_v9  ;;  %v3349_v8 = vld [vmem:[%s4315_s24] ss:$0 sm:$0xff]  ;;  %s4317_s24 = sld [smem:[#allocation43_spill]] }
 0x636   : > { %v1506_v12 = vpop.f32.mrf.mxu3 }
 0x637   : > { %v4080_v12 = vld [vmem:[%s4255_s15] sm:$0x3] }
 0x638   : > { %v1436_v13 = vpop.f32.mrf.mxu1 }
 0x639   : > { %v1675_v13 = vperm.slane %v4080_v12, 0 }
 0x6ae   : > { %v1533_v14 = vpop.f32.mrf.mxu0 }
 0x6af   : > { %v1537_v15 = vadd.f32 %v1533_v14, %v1438_v11 }
 0x6b1   : > { %v1538_v18 = vadd.f32 %v1537_v15, %v3973_v1  ;;  %v3185_v1 = vld [vmem:[#allocation11 + $0x44] sm:$0xf0] }
 0x6b2   : > { %v2931_v32 = vor.u32 %v3185_v1, %v2930_v31 }
 0x6b3   : > { %v4057_v19 = vadd.f32 %v3347_v16, %v1538_v18 }
 0x6b4   : > { %1762 = vmatpush.bf16.msrb.mxu2 %v2931_v32 }
 0x6b5   : > { %1546 = vadd.xlane.f32.xlu0 %v4057_v19 }
 0x6b6   : > { %v1535_v21 = vpop.f32.mrf.mxu0 }
 0x6b8   : > { %1763 = vmatpush.bf16.msrb.mxu2 %v2923_v35  ;;  %v3188_v35 = vld [vmem:[#allocation11 + $0x64] sm:$0xf] }
 0x6bc   : > { %1764 = vmatpush.bf16.msrb.mxu2 %v2915_v38  ;;  %v2951_v38 = vor.u32 %v3188_v35, %v2948_v37 }
 0x6be   : > { %1773 = vmatpush.bf16.msrb.mxu3 %v2951_v38 }
 0x6c0   : > { %1765 = vmatpush.bf16.msrb.mxu2 %v2907_v20  ;;  %v2927_v20 = vor.u32 %v3182_v44, %v2924_v45 }
 0x6c4   : > { %1766 = vmatpush.bf16.msrb.mxu2 %v2899_v50  ;;  %v3178_v50 = vld [vmem:[#allocation11 + $0x14] sm:$0xf] }
 0x6c5   : > { %v2911_v52 = vor.u32 %v3178_v50, %v2908_v51 }
 0x6c7   : > { %1767 = vmatmul.bf16.vlgmr.msrb.gmra.mxu2 %v4067_v54 }
 0x728   : > { %v1547_v39 = vpop.xlane.xlu0 %1546 }
 0x729   : > { %v1548_v40 = vmul.f32 %v1547_v39, %v3976_v17 }
 0x72b   : > { %v1549_v41 = vsub.f32 %v4057_v19, %v1548_v40  ;;  %v3186_v40 = vld [vmem:[#allocation11 + $0x54] sm:$0xf] }
 0x72d   : > { %v1550_v42 = vmul.f32 %v1549_v41, %v1549_v41 }
 0x72f   : > { %1551 = vadd.xlane.f32.xlu1 %v1550_v42  ;;  %v2932_v42 = vld [vmem:[#allocation11 + $0x48] sm:$0xf0] }
 0x730   : > { %v2935_v43 = vor.u32 %v3184_v5, %v2932_v42 }
 0x74a   : > { %v1768_v14 = vpop.f32.mrf.mxu2 }
 0x74b   : > { %v1769_v15 = vadd.f32 %v1768_v14, %v1675_v13 }
 0x74d   : > { %v4083_v16 = vpack.c.bf16 %v1769_v15, %v1769_v15 }
 0x74f   : > { %1876 = vrot.lane.b32.xlu1 %v4083_v16, %s3701_s4  ;;  %v1812_v21 = vsel %vm1144_vm4, %v4083_v16, 0 }
 0x750   : > { %1821 = vmatpush.bf16.xpose.msra.mxu0 %v1812_v21 }
 0x752   : > { %v1770_v18 = vpop.f32.mrf.mxu2 }
 0x7a2   : > { %v1552_v57 = vpop.xlane.xlu1 %1551 }
 0x7a3   : > { %v1553_v58 = vmul.f32 %v1552_v57, %v3976_v17 }
 0x7a5   : > { %v1554_v59 = vadd.f32 1e-05, %v1553_v58 }
 0x7a7   : > { %3377 = vrsqrt.f32 %v1554_v59  ;;  %vm1561_vm14 = vweird.f32 %v1554_v59 }
 0x7ad   : > { %v3378_v60 = vpop.eup %3377 }
 0x7ae   : > { %v1556_v61 = vmul.f32 %v3378_v60, %v1554_v59  ;;  %vm1562_vm13 = vweird.f32 %v3378_v60 }
 0x7af   : > { %vm1563_vm15 = vmor %vm1561_vm14, %vm1562_vm13 }
 0x7b0   : > { %v1557_v62 = vmul.f32 %v3378_v60, %v1556_v61 }
 0x7b2   : > { %v1558_v63 = vmul.f32 0.5, %v1557_v62 }
 0x7b4   : > { %v1559_v0 = vsub.f32 1.5, %v1558_v63 }
 0x7b6   : > { %v1560_v3 = vmul.f32 %v3378_v60, %v1559_v0 }
 0x7b8   : > { %v1564_v6 = vsel %vm1563_vm15, %v3378_v60, %v1560_v3 }
 0x7b9   : > { %v1565_v7 = vmul.f32 %v1564_v6, %v1549_v41  ;;  %v2940_v41 = vld [vmem:[#allocation11 + $0x58] sm:$0xf0] }
 0x7ba   : > { %v2943_v2 = vor.u32 %v3186_v40, %v2940_v41 }
 0x7bb   : > { %v1569_v9 = vmul.f32 %v3348_v4, %v1565_v7  ;;  %v3193_v7 = vld [vmem:[%s4256_s16 + $0x8] sm:$0xff] }
 0x7bc   : > { %1774 = vmatpush.bf16.msrb.mxu3 %v2943_v2 }
 0x7bd   : > { %v1573_v10 = vadd.f32 %v3349_v8, %v1569_v9  ;;  %v3192_v8 = vld [vmem:[%s4256_s16] sm:$0xff] }
 0x7bf   : > { %v1574_v11 = vpack.c.bf16 %v1573_v10, %v1573_v10 }
 0x7c0   : > { %1775 = vmatpush.bf16.msrb.mxu3 %v2935_v43 }
 0x7c1   : > { %1651 = vmatmul.bf16.vlgmr.msrb.gmra.mxu1 %v1574_v11  ;;  %v1877_v27 = vpop.permute.xlu1 %1876 }
 0x7c2   : > { %v1882_v28 = vsel %vm1144_vm4, %v1877_v27, 0 }
 0x7c3   : > { %1891 = vmatpush.bf16.xpose.msra.mxu1 %v1882_v28 }
 0x7c4   : > { %1776 = vmatpush.bf16.msrb.mxu3 %v2927_v20 }
 0x7c8   : > { %1777 = vmatpush.bf16.msrb.mxu3 %v2919_v49 }
 0x7cc   : > { %1778 = vmatpush.bf16.msrb.mxu3 %v2911_v52 }
 0x7d0   : > { %1779 = vmatpush.bf16.msrb.mxu3 %v2903_v56 }
 0x7d3   : > { %1780 = vmatmul.bf16.vlgmr.msrb.gmra.mxu3 %v4067_v54  ;;  %v1676_v54 = vperm.slane %v4080_v12, 1 }
 0x83e   : > { %v1652_v22 = vpop.f32.mrf.mxu1 }
 0x83f   : > { %v1653_v23 = vadd.f32 %v3350_v46, %v1652_v22 }
 0x841   : > { %v1656_v24 = vmul.f32 0.17677669, %v1653_v23 }
 0x843   : > { %v1805_v25 = vpack.c.bf16 %v1656_v24, %v1656_v24 }
 0x845   : > { %2001 = vrot.lane.b32.xlu1 %v1805_v25, %s3702_s7  ;;  %2960 = vmatmul.msk.bf16.vlgmr.msra.gmra.mxu0 %vm1144_vm4, %v1805_v25 }
 0x846   : > { %v1654_v26 = vpop.f32.mrf.mxu1 }
 0x856   : > { %v1781_v63 = vpop.f32.mrf.mxu3 }
 0x857   : > { %v1782_v3 = vadd.f32 %v1781_v63, %v1676_v54 }
 0x859   : > { %v4112_v4 = vpack.c.bf16 %v1782_v3, %v1782_v3 }
 0x85b   : > { %v1856_v6 = vsel %vm1193_vm5, %v4112_v4, 0 }
 0x85c   : > { %1865 = vmatpush.bf16.msrb.mxu0 %v1856_v6 }
 0x85e   : > { %v1783_v0 = vpop.f32.mrf.mxu3 }
 0x860   : > { %1994 = vmatpush.bf16.msra.mxu0 %v3193_v7 }
 0x864   : > { %1995 = vmatpush.bf16.msra.mxu0 %v3192_v8 }
 0x8c2   : > { %v1823_v31 = vpop.f32.mrf.mxu0 }
 0x8c3   : > { %v1824_v1 = vadd.f32 %v1823_v31, %v4098_v30  ;;  %v2002_v31 = vpop.permute.xlu1 %2001 }
 0x8c5   : > { %v1827_v32 = vsel %vm1164_vm9, %v1824_v1, -inf }
 0x8c6   : > { %1828 = vmax.xlane.f32.xlu2 %v1827_v32 }
 0x8ca   : > { %v1825_v39 = vpop.f32.mrf.mxu0 }
 0x8de   : > { %1873 = vrot.lane.b32.xlu2 %v1805_v25, %s3701_s4 }
 0x8e6   : > { %2100 = vrot.lane.b32.xlu2 %v1805_v25, %s3700_s14 }
 0x939   : > { %v1829_v57 = vpop.xlane.xlu2 %1828 }
 0x93a   : > { %v1830_v58 = vsub.f32 %v1824_v1, %v1829_v57 }
 0x93c   : > { %v1831_v59 = vmul.f32 1.442695, %v1830_v58 }
 0x93e   : > { %3379 = vpow2.f32 %v1831_v59 }
 0x941   : > { %v1874_v60 = vpop.permute.xlu2 %1873 }
 0x942   : > { %2962 = vmatmul.msk.bf16.vlgmr.msra.gmra.mxu1 %vm1144_vm4, %v1874_v60 }
 0x944   : > { %v3380_v61 = vpop.eup %3379 }
 0x945   : > { %v1833_v62 = vsel %vm1164_vm9, %v3380_v61, 0.0 }
 0x946   : > { %1834 = vadd.xlane.f32.xlu0 %v1833_v62 }
 0x949   : > { %v2101_v43 = vpop.permute.xlu2 %2100 }
 0x95a   : > { %2003 = vrot.lane.b32.xlu0 %v4083_v16, %s3702_s7 }
 0x962   : > { %2102 = vrot.lane.b32.xlu0 %v4083_v16, %s3700_s14 }
 0x9b9   : > { %v1835_v9 = vpop.xlane.xlu0 %1834 }
 0x9ba   : > { %3381 = vrcp.f32 %v1835_v9  ;;  %v1847_v16 = vand.u32 2147483648, %v1835_v9  ;;  %v1845_v21 = vand.u32 2147483647, %v1835_v9  ;;  %vm1841_vm2 = vweird.f32 %v1835_v9 }
 0x9bc   : > { %v1848_v23 = vor.u32 1.1754944e-38, %v1847_v16  ;;  %vm1846_vm6 = vcmp.eq.f32.partialorder %v1845_v21, 8.507059e+37 }
 0x9bf   : > { %v1893_v10 = vpop.f32.mrf.mxu1 }
 0x9c0   : > { %v3382_v11 = vpop.eup %3381  ;;  %v1894_v12 = vadd.f32 %v1893_v10, %v4098_v30 }
 0x9c1   : > { %v1837_v13 = vmul.f32 %v3382_v11, %v1835_v9  ;;  %vm1842_vm1 = vweird.f32 %v3382_v11 }
 0x9c2   : > { %v1897_v14 = vsel %vm1164_vm9, %v1894_v12, -inf  ;;  %vm1843_vm3 = vmor %vm1841_vm2, %vm1842_vm1 }
 0x9c3   : > { %v1838_v15 = vsub.f32 1.0, %v1837_v13  ;;  %1898 = vmax.xlane.f32.xlu1 %v1897_v14 }
 0x9c5   : > { %v1839_v18 = vmul.f32 %v3382_v11, %v1838_v15 }
 0x9c7   : > { %v1840_v46 = vadd.f32 %v3382_v11, %v1839_v18  ;;  %v1895_v22 = vpop.f32.mrf.mxu1 }
 0x9c9   : > { %v1844_v24 = vsel %vm1843_vm3, %v3382_v11, %v1840_v46 }
 0x9ca   : > { %v1849_v25 = vsel %vm1846_vm6, %v1848_v23, %v1844_v24 }
 0x9cb   : > { %v1850_v26 = vmul.f32 %v3380_v61, %v1849_v25 }
 0x9cc   : > { %v2004_v27 = vpop.permute.xlu0 %2003 }
 0x9cd   : > { %v2009_v28 = vsel %vm1144_vm4, %v2004_v27, 0  ;;  %v1851_v29 = vpack.c.bf16 %v1850_v26, %v1850_v26 }
 0x9ce   : > { %2018 = vmatpush.bf16.xpose.msrb.mxu1 %v2009_v28 }
 0x9cf   : > { %2961 = vmatmul.msk.bf16.vlgmr.msrb.gmra.mxu0 %vm1164_vm9, %v1851_v29 }
 0x9d4   : > { %v2103_v1 = vpop.permute.xlu0 %2102 }
 0x9d5   : > { %v2108_v32 = vsel %vm1144_vm4, %v2103_v1, 0  ;;  %2982 = vmatmul.msk.bf16.vlgmr.msrb.gmra.mxu1 %vm1144_vm4, %v2002_v31  ;;  %v3195_v1 = vld [vmem:[%s4256_s16 + $0x18] sm:$0xff] }
 0x9d6   : > { %2117 = vmatpush.bf16.xpose.msrb.mxu0 %v2108_v32  ;;  %1966 = vmatpush.bf16.msra.mxu3 %v3195_v1  ;;  %v3194_v32 = vld [vmem:[%s4256_s16 + $0x10] sm:$0xff] }
 0x9da   : > { %1967 = vmatpush.bf16.msra.mxu3 %v3194_v32  ;;  %v3038_v32 = vld [vmem:[#allocation13 + $0x40] sm:$0xf] }
 0xa36   : > { %v1899_v33 = vpop.xlane.xlu1 %1898 }
 0xa37   : > { %v1900_v34 = vsub.f32 %v1894_v12, %v1899_v33  ;;  %v3197_v33 = vld [vmem:[%s4256_s16 + $0x28] sm:$0xff] }
 0xa38   : > { %2092 = vmatpush.bf16.msrb.mxu3 %v3197_v33  ;;  %v3209_v33 = vld [vmem:[#allocation13 + $0x44] sm:$0xf0] }
 0xa39   : > { %v1901_v35 = vmul.f32 1.442695, %v1900_v34  ;;  %v3196_v34 = vld [vmem:[%s4256_s16 + $0x20] sm:$0xff] }
 0xa3b   : > { %3383 = vpow2.f32 %v1901_v35 }
 0xa3c   : > { %2093 = vmatpush.bf16.msrb.mxu3 %v3196_v34  ;;  %v3208_v34 = vld [vmem:[#allocation13 + $0x44] sm:$0xf] }
 0xa41   : > { %v3384_v36 = vpop.eup %3383 }
 0xa42   : > { %v1903_v37 = vsel %vm1164_vm9, %v3384_v36, 0.0 }
 0xa43   : > { %1904 = vadd.xlane.f32.xlu1 %v1903_v37 }
 0xa4c   : > { %v1867_v38 = vpop.f32.mrf.mxu0 }
 0xa4d   : > { %v1871_v39 = vpack.c.bf16 %v1867_v38, %v1867_v38 }
 0xa4f   : > { %2981 = vmatmul.msk.bf16.vlgmr.msra.gmra.mxu0 %vm1144_vm4, %v1871_v39 }
 0xa52   : > { %v2020_v40 = vpop.f32.mrf.mxu1 }
 0xa53   : > { %v2021_v41 = vadd.f32 %v2020_v40, %v4098_v30 }
 0xa54   : > { %v1869_v2 = vpop.f32.mrf.mxu0 }
 0xa55   : > { %v2024_v5 = vsel %vm1164_vm9, %v2021_v41, -inf }
 0xa56   : > { %2025 = vmax.xlane.f32.xlu0 %v2024_v5 }
 0xa5a   : > { %v2022_v42 = vpop.f32.mrf.mxu1 }
 0xa5f   : > { %2993 = vmatmul.msk.bf16.vlgmr.msrb.gmra.mxu0 %vm1144_vm4, %v2101_v43 }
 0xab6   : > { %v1905_v56 = vpop.xlane.xlu1 %1904 }
 0xab7   : > { %v1917_v63 = vand.u32 2147483648, %v1905_v56  ;;  %vm1911_vm8 = vweird.f32 %v1905_v56  ;;  %v1915_v54 = vand.u32 2147483647, %v1905_v56 }
 0xab9   : > { %v1918_v8 = vor.u32 1.1754944e-38, %v1917_v63  ;;  %vm1916_vm11 = vcmp.eq.f32.partialorder %v1915_v54, 8.507059e+37 }
 0xac9   : > { %v2026_v44 = vpop.xlane.xlu0 %2025 }
 0xaca   : > { %v2027_v45 = vsub.f32 %v2021_v41, %v2026_v44 }
 0xacc   : > { %v2028_v20 = vmul.f32 1.442695, %v2027_v45  ;;  %v4133_v47 = vpop.f32.mrf.mxu0 }
 0xace   : > { %3385 = vpow2.f32 %v2028_v20 }
 0xacf   : > { %3387 = vrcp.f32 %v1905_v56 }
 0xad4   : > { %v3386_v48 = vpop.eup %3385  ;;  %v1999_v49 = vpop.f32.mrf.mxu0 }
 0xad5   : > { %v2030_v50 = vsel %vm1164_vm9, %v3386_v48, 0.0  ;;  %v3388_v57 = vpop.eup %3387 }
 0xad6   : > { %2031 = vadd.xlane.f32.xlu0 %v2030_v50  ;;  %v1907_v58 = vmul.f32 %v3388_v57, %v1905_v56  ;;  %vm1912_vm7 = vweird.f32 %v3388_v57  ;;  %v3198_v56 = vld [vmem:[%s4256_s16 + $0x30] sm:$0xff] }
 0xad7   : > { %vm1913_vm10 = vmor %vm1911_vm8, %vm1912_vm7 }
 0xad8   : > { %v1908_v59 = vsub.f32 1.0, %v1907_v58 }
 0xada   : > { %v1909_v61 = vmul.f32 %v3388_v57, %v1908_v59 }
 0xadc   : > { %v2119_v51 = vpop.f32.mrf.mxu0  ;;  %v1910_v62 = vadd.f32 %v3388_v57, %v1909_v61 }
 0xadd   : > { %v2120_v52 = vadd.f32 %v2119_v51, %v4098_v30 }
 0xade   : > { %v1914_v3 = vsel %vm1913_vm10, %v3388_v57, %v1910_v62 }
 0xadf   : > { %v2123_v53 = vsel %vm1164_vm9, %v2120_v52, -inf  ;;  %v1919_v10 = vsel %vm1916_vm11, %v1918_v8, %v1914_v3 }
 0xae0   : > { %2124 = vmax.xlane.f32.xlu2 %v2123_v53  ;;  %v1920_v12 = vmul.f32 %v3384_v36, %v1919_v10  ;;  %v3062_v10 = vld [vmem:[#allocation13 + $0x70] sm:$0xf] }
 0xae2   : > { %v1921_v46 = vpack.c.bf16 %v1920_v12, %v1920_v12  ;;  %v3214_v12 = vld [vmem:[#allocation13 + $0x74] sm:$0xf] }
 0xae4   : > { %v2121_v55 = vpop.f32.mrf.mxu0 }
 0xae5   : > { %v3199_v55 = vld [vmem:[%s4256_s16 + $0x38] sm:$0xff] }
 0xaea   : > { %2049 = vrot.lane.b32.xlu0 %v4112_v4, %s3702_s7  ;;  %s4316_s7 = sld [smem:[#allocation42_spill]] }
 0xaf8   : > { %1923 = vrot.lane.b32.xlu2 %v4112_v4, %s3701_s4  ;;  %s2573_s4 = sshll.u32 %s2569_s28, 4  ;;  %s2574_s4 = int_to_ptr.hbm [resolvable:$true] %s2573_s4 }
 0xaf9   : > { %s3617_s6 = sshra.s32 %s2574_s4, 4  ;;  %s3618_s6 = int_to_ptr.hbm [resolvable:$true] %s3617_s6 }
 0xafa   : > { %s3619_s10 = scalar_lea.hbm %s3618_s6, 8  ;;  %p3624_p3 = scmp.lt.s32.totalorder %s3618_s6, %s4318_s29 }
 0xafb   : > { %p3620_p0 = scmp.ne.s32.totalorder %s3618_s6, %s3619_s10 }
 0xafd   : > { %p3621_p1 = pnand %p3620_p0, %p3883_p5 }
 0xaff   : > { %p3622_p2 = pneg %p3621_p1 }
 0xb49   : > { %v2032_v60 = vpop.xlane.xlu0 %2031 }
 0xb4a   : > { %3389 = vrcp.f32 %v2032_v60  ;;  %v2044_v24 = vand.u32 2147483648, %v2032_v60  ;;  %vm2038_vm13 = vweird.f32 %v2032_v60  ;;  %v2042_v25 = vand.u32 2147483647, %v2032_v60 }
 0xb4c   : > { %v2045_v27 = vor.u32 1.1754944e-38, %v2044_v24  ;;  %vm2043_vm15 = vcmp.eq.f32.partialorder %v2042_v25, 8.507059e+37  ;;  %v3056_v24 = vld [vmem:[#allocation13 + $0x68] sm:$0xf0] }
 0xb50   : > { %v3390_v30 = vpop.eup %3389 }
 0xb51   : > { %v2034_v6 = vmul.f32 %v3390_v30, %v2032_v60  ;;  %vm2039_vm12 = vweird.f32 %v3390_v30 }
 0xb52   : > { %vm2040_vm14 = vmor %vm2038_vm13, %vm2039_vm12 }
 0xb53   : > { %v2125_v0 = vpop.xlane.xlu2 %2124  ;;  %v2035_v11 = vsub.f32 1.0, %v2034_v6  ;;  %v3351_v6 = vld [vmem:[%s4257_s17] ss:$0 sm:$0xff] }
 0xb54   : > { %v2126_v7 = vsub.f32 %v2120_v52, %v2125_v0 }
 0xb55   : > { %v2036_v14 = vmul.f32 %v3390_v30, %v2035_v11  ;;  %v3215_v11 = vld [vmem:[#allocation13 + $0x74] sm:$0xf0] }
 0xb56   : > { %v2127_v9 = vmul.f32 1.442695, %v2126_v7 }
 0xb57   : > { %v2037_v23 = vadd.f32 %v3390_v30, %v2036_v14 }
 0xb58   : > { %3391 = vpow2.f32 %v2127_v9 }
 0xb59   : > { %v2041_v26 = vsel %vm2040_vm14, %v3390_v30, %v2037_v23 }
 0xb5a   : > { %v2046_v28 = vsel %vm2043_vm15, %v2045_v27, %v2041_v26  ;;  %v3046_v26 = vld [vmem:[#allocation13 + $0x50] sm:$0xf]  ;;  %v3211_v27 = vld [vmem:[#allocation13 + $0x54] sm:$0xf0] }
 0xb5b   : > { %v1924_v13 = vpop.permute.xlu2 %1923  ;;  %v2047_v29 = vmul.f32 %v3386_v48, %v2046_v28  ;;  %v3210_v28 = vld [vmem:[#allocation13 + $0x54] sm:$0xf] }
 0xb5c   : > { %v1929_v15 = vsel %vm1193_vm5, %v1924_v13, 0  ;;  %v2050_v16 = vpop.permute.xlu0 %2049  ;;  %v3064_v13 = vld [vmem:[#allocation13 + $0x78] sm:$0xf0] }
 0xb5d   : > { %v2055_v18 = vsel %vm1193_vm5, %v2050_v16, 0  ;;  %1938 = vmatpush.bf16.msra.mxu2 %v1929_v15  ;;  %v2048_v31 = vpack.c.bf16 %v2047_v29, %v2047_v29  ;;  %v3067_v14 = vor.u32 %v3214_v12, %v3064_v13  ;;  %v3047_v29 = vor.u32 %v3211_v27, %v3046_v26  ;;  %v3219_v13 = vld [vmem:[#allocation14 + $0x18] sm:$0xff] }
 0xb5e   : > { %v3392_v21 = vpop.eup %3391 }
 0xb5f   : > { %v2129_v22 = vsel %vm1164_vm9, %v3392_v21, 0.0  ;;  %2351 = vmatpush.bf16.msra.mxu0 %v3067_v14 }
 0xb60   : > { %2130 = vadd.xlane.f32.xlu1 %v2129_v22  ;;  %2963 = vmatmul.msk.bf16.vlgmr.msra.gmra.mxu2 %vm1164_vm9, %v1921_v46  ;;  %v3213_v46 = vld [vmem:[#allocation13 + $0x64] sm:$0xf0]  ;;  %v3212_v22 = vld [vmem:[#allocation13 + $0x64] sm:$0xf] }
 0xb61   : > { %2064 = vmatpush.bf16.msrb.mxu2 %v2055_v18  ;;  %v3059_v25 = vor.u32 %v3212_v22, %v3056_v24  ;;  %v3353_v24 = vld [vmem:[%s4259_s19] ss:$0 sm:$0xff] }
 0xb63   : > { %2352 = vmatpush.bf16.msra.mxu0 %v3059_v25 }
 0xb65   : > { %2191 = vmatpush.bf16.msra.mxu2 %v3199_v55  ;;  %v3201_v55 = vld [vmem:[#allocation13 + $0x4] sm:$0xf0] }
 0xb69   : > { %2192 = vmatpush.bf16.msra.mxu2 %v3198_v56 }
 0xb70   : > { %2983 = vmatmul.msk.bf16.vlgmr.msrb.gmra.mxu2 %vm1164_vm9, %v2048_v31  ;;  %v3048_v31 = vld [vmem:[#allocation13 + $0x58] sm:$0xf0] }
 0xb71   : > { %v3051_v1 = vor.u32 %v3210_v28, %v3048_v31  ;;  %v3225_v28 = vld [vmem:[#allocation14 + $0x48] sm:$0xff]  ;;  %v3224_v31 = vld [vmem:[#allocation14 + $0x40] sm:$0xff] }
 0xb73   : > { %2353 = vmatpush.bf16.msra.mxu0 %v3051_v1  ;;  %v3217_v1 = vld [vmem:[#allocation14 + $0x8] sm:$0xff] }
 0xb79   : > { %2148 = vrot.lane.b32.xlu1 %v4112_v4, %s3700_s14  ;;  %s3623_s14 = scalar_lea.hbm %s4318_s29, 16 }
 0xb7a   : > { %p3625_p4 = scmp.lt.s32.totalorder %s3623_s14, %s3619_s10 }
 0xb7c   : > { %p3626_p7 = por %p3625_p4, %p3624_p3 }
 0xb7e   : > { %p3627_p8 = pnand %p3626_p7, %p3622_p2 }
 0xbd3   : > { %v2131_v4 = vpop.xlane.xlu1 %2130 }
 0xbd4   : > { %3393 = vrcp.f32 %v2131_v4  ;;  %v2143_v40 = vand.u32 2147483648, %v2131_v4  ;;  %vm2137_vm1 = vweird.f32 %v2131_v4  ;;  %v2141_v41 = vand.u32 2147483647, %v2131_v4 }
 0xbd6   : > { %v2144_v43 = vor.u32 1.1754944e-38, %v2143_v40  ;;  %vm2142_vm3 = vcmp.eq.f32.partialorder %v2141_v41, 8.507059e+37  ;;  %v3032_v41 = vld [vmem:[#allocation13 + $0x38] sm:$0xf0] }
 0xbda   : > { %v3394_v35 = vpop.eup %3393 }
 0xbdb   : > { %v2133_v36 = vmul.f32 %v3394_v35, %v2131_v4  ;;  %vm2138_vm0 = vweird.f32 %v3394_v35  ;;  %v3039_v4 = vor.u32 %v3209_v33, %v3038_v32  ;;  %v3216_v32 = vld [vmem:[#allocation14] sm:$0xff] }
 0xbdc   : > { %vm2139_vm2 = vmor %vm2137_vm1, %vm2138_vm0 }
 0xbdd   : > { %v2134_v37 = vsub.f32 1.0, %v2133_v36 }
 0xbdf   : > { %v2135_v38 = vmul.f32 %v3394_v35, %v2134_v37  ;;  %v3030_v37 = vld [vmem:[#allocation13 + $0x30] sm:$0xf] }
 0xbe1   : > { %v2136_v39 = vadd.f32 %v3394_v35, %v2135_v38  ;;  %v3207_v38 = vld [vmem:[#allocation13 + $0x34] sm:$0xf0] }
 0xbe2   : > { %v3031_v40 = vor.u32 %v3207_v38, %v3030_v37 }
 0xbe3   : > { %v1940_v2 = vpop.f32.mrf.mxu2  ;;  %v2140_v5 = vsel %vm2139_vm2, %v3394_v35, %v2136_v39  ;;  %v3040_v35 = vld [vmem:[#allocation13 + $0x48] sm:$0xf0]  ;;  %v3206_v39 = vld [vmem:[#allocation13 + $0x34] sm:$0xf] }
 0xbe4   : > { %v1944_v42 = vpack.c.bf16 %v1940_v2, %v1940_v2  ;;  %v2145_v44 = vsel %vm2142_vm3, %v2144_v43, %v2140_v5  ;;  %v3043_v36 = vor.u32 %v3208_v34, %v3040_v35  ;;  %v3035_v2 = vor.u32 %v3206_v39, %v3032_v41  ;;  %v3022_v5 = vld [vmem:[#allocation13 + $0x20] sm:$0xf]  ;;  %v3204_v43 = vld [vmem:[#allocation13 + $0x24] sm:$0xf] }
 0xbe5   : > { %v2146_v45 = vmul.f32 %v3392_v21, %v2145_v44  ;;  %v3054_v21 = vld [vmem:[#allocation13 + $0x60] sm:$0xf] }
 0xbe6   : > { %2972 = vmatmul.msk.bf16.vlgmr.msra.gmra.mxu3 %vm1144_vm4, %v1944_v42  ;;  %v3055_v23 = vor.u32 %v3213_v46, %v3054_v21  ;;  %2354 = vmatpush.bf16.msra.mxu0 %v3043_v36  ;;  %v3205_v42 = vld [vmem:[#allocation13 + $0x24] sm:$0xf0]  ;;  %v3352_v46 = vld [vmem:[%s4258_s18] ss:$0 sm:$0xff] }
 0xbe7   : > { %v2147_v50 = vpack.c.bf16 %v2146_v45, %v2146_v45  ;;  %v3023_v44 = vor.u32 %v3205_v42, %v3022_v5  ;;  %v3024_v45 = vld [vmem:[#allocation13 + $0x28] sm:$0xf0]  ;;  %v3354_v42 = vld [vmem:[%s4263_s23] ss:$0 sm:$0xff] }
 0xbea   : > { %2355 = vmatpush.bf16.msra.mxu0 %v3035_v2 }
 0xbeb   : > { %v2149_v20 = vpop.permute.xlu1 %2148  ;;  %v1942_v48 = vpop.f32.mrf.mxu2 }
 0xbec   : > { %v2154_v49 = vsel %vm1193_vm5, %v2149_v20, 0  ;;  %v3027_v20 = vor.u32 %v3204_v43, %v3024_v45  ;;  %v3014_v48 = vld [vmem:[#allocation13 + $0x10] sm:$0xf] }
 0xbed   : > { %2163 = vmatpush.bf16.msra.mxu1 %v2154_v49  ;;  %v3203_v49 = vld [vmem:[#allocation13 + $0x14] sm:$0xf0] }
 0xbee   : > { %2356 = vmatpush.bf16.msra.mxu0 %v3027_v20 }
 0xbf0   : > { %2994 = vmatmul.msk.bf16.vlgmr.msra.gmra.mxu1 %vm1164_vm9, %v2147_v50  ;;  %v3202_v50 = vld [vmem:[#allocation13 + $0x14] sm:$0xf] }
 0xbf3   : > { %v2066_v51 = vpop.f32.mrf.mxu2 }
 0xbf4   : > { %v2070_v52 = vpack.c.bf16 %v2066_v51, %v2066_v51  ;;  %v3015_v51 = vor.u32 %v3203_v49, %v3014_v48 }
 0xbf6   : > { %2992 = vmatmul.msk.bf16.vlgmr.msrb.gmra.mxu3 %vm1144_vm4, %v2070_v52  ;;  %v3016_v52 = vld [vmem:[#allocation13 + $0x18] sm:$0xf0] }
 0xbf7   : > { %v3019_v56 = vor.u32 %v3202_v50, %v3016_v52 }
 0xbf9   : > { %2357 = vmatpush.bf16.msra.mxu0 %v3019_v56 }
 0xbfb   : > { %v2068_v53 = vpop.f32.mrf.mxu2 }
 0xbfc   : > { %v3006_v53 = vld [vmem:[#allocation13] sm:$0xf] }
 0xc69   : > { %v1969_v57 = vpop.f32.mrf.mxu3 }
 0xc6a   : > { %v1998_v62 = vadd.f32 %v4133_v47, %v1969_v57  ;;  %v3063_v47 = vor.u32 %v3215_v11, %v3062_v10  ;;  %v3200_v57 = vld [vmem:[#allocation13 + $0x4] sm:$0xf] }
 0xc6b   : > { %v3220_v10 = vld [vmem:[#allocation14 + $0x20] sm:$0xff] }
 0xc6c   : > { %2338 = vmatpush.bf16.msra.mxu3 %v3063_v47  ;;  %v3227_v47 = vld [vmem:[#allocation14 + $0x58] sm:$0xff] }
 0xc6d   : > { %v2165_v58 = vpop.f32.mrf.mxu1 }
 0xc6e   : > { %v2169_v59 = vpack.c.bf16 %v2165_v58, %v2165_v58  ;;  %v3008_v58 = vld [vmem:[#allocation13 + $0x8] sm:$0xf0] }
 0xc70   : > { %3003 = vmatmul.msk.bf16.vlgmr.msra.gmra.mxu2 %vm1144_vm4, %v2169_v59  ;;  %2339 = vmatpush.bf16.msra.mxu3 %v3055_v23  ;;  %v3007_v59 = vor.u32 %v3201_v55, %v3006_v53 }
 0xc71   : > { %v1971_v60 = vpop.f32.mrf.mxu3 }
 0xc72   : > { %v3011_v60 = vor.u32 %v3200_v57, %v3008_v58 }
 0xc74   : > { %2340 = vmatpush.bf16.msra.mxu3 %v3047_v29  ;;  %2358 = vmatpush.bf16.msra.mxu0 %v3011_v60  ;;  %v3218_v29 = vld [vmem:[#allocation14 + $0x10] sm:$0xff] }
 0xc75   : > { %v2167_v61 = vpop.f32.mrf.mxu1 }
 0xc76   : > { %v3231_v61 = vld [vmem:[#allocation14 + $0x78] sm:$0xff] }
 0xc77   : > { %2513 = vmatpush.bf16.msrb.mxu2 %v3231_v61 }
 0xc78   : > { %2341 = vmatpush.bf16.msra.mxu3 %v3039_v4 }
 0xc79   : > { %v2095_v30 = vpop.f32.mrf.mxu3 }
 0xc7a   : > { %v2099_v63 = vadd.f32 %v2095_v30, %v1998_v62  ;;  %v3223_v62 = vld [vmem:[#allocation14 + $0x38] sm:$0xff] }
 0xc7b   : > { %2500 = vmatpush.bf16.msrb.mxu1 %v3223_v62 }
 0xc7c   : > { %2342 = vmatpush.bf16.msra.mxu3 %v3031_v40 }
 0xc80   : > { %2343 = vmatpush.bf16.msra.mxu3 %v3023_v44 }
 0xc81   : > { %v2097_v54 = vpop.f32.mrf.mxu3 }
 0xc82   : > { %v3230_v54 = vld [vmem:[#allocation14 + $0x70] sm:$0xff] }
 0xc83   : > { %2514 = vmatpush.bf16.msrb.mxu2 %v3230_v54 }
 0xc84   : > { %2344 = vmatpush.bf16.msra.mxu3 %v3015_v51 }
 0xc88   : > { %2345 = vmatpush.bf16.msra.mxu3 %v3007_v59 }
 0xcf3   : > { %v2194_v0 = vpop.f32.mrf.mxu2 }
 0xcf4   : > { %v2198_v3 = vadd.f32 %v2194_v0, %v2099_v63  ;;  %v3222_v0 = vld [vmem:[#allocation14 + $0x30] sm:$0xff] }
 0xcf5   : > { %2501 = vmatpush.bf16.msrb.mxu1 %v3222_v0  ;;  %v3356_v0 = vld [vmem:[%s4320_s0] ss:$0 sm:$0xff] }
 0xcf6   : > { %v2199_v7 = vadd.f32 %v2198_v3, %v4057_v19 }
 0xcf8   : > { %v4177_v8 = vadd.f32 %v3351_v6, %v2199_v7  ;;  %v3229_v6 = vld [vmem:[#allocation14 + $0x68] sm:$0xff] }
 0xcf9   : > { %v3221_v7 = vld [vmem:[#allocation14 + $0x28] sm:$0xff]  ;;  %2515 = vmatpush.bf16.msrb.mxu2 %v3229_v6 }
 0xcfa   : > { %2207 = vadd.xlane.f32.xlu2 %v4177_v8  ;;  %2502 = vmatpush.bf16.msrb.mxu1 %v3221_v7 }
 0xcfb   : > { %v2196_v9 = vpop.f32.mrf.mxu2 }
 0xcfc   : > { %v3228_v9 = vld [vmem:[#allocation14 + $0x60] sm:$0xff] }
 0xcfd   : > { %2516 = vmatpush.bf16.msrb.mxu2 %v3228_v9 }
 0xcfe   : > { %2503 = vmatpush.bf16.msrb.mxu1 %v3220_v10 }
 0xd01   : > { %2517 = vmatpush.bf16.msrb.mxu2 %v3227_v47 }
 0xd02   : > { %2504 = vmatpush.bf16.msrb.mxu1 %v3219_v13 }
 0xd06   : > { %2505 = vmatpush.bf16.msrb.mxu1 %v3218_v29 }
 0xd0a   : > { %2506 = vmatpush.bf16.msrb.mxu1 %v3217_v1 }
 0xd0e   : > { %2507 = vmatpush.bf16.msrb.mxu1 %v3216_v32 }
 0xd6d   : > { %v2208_v15 = vpop.xlane.xlu2 %2207 }
 0xd6e   : > { %v2209_v16 = vmul.f32 %v2208_v15, %v3976_v17 }
 0xd70   : > { %v4182_v18 = vsub.f32 %v4177_v8, %v2209_v16  ;;  %v3226_v16 = vld [vmem:[#allocation14 + $0x50] sm:$0xff] }
 0xd71   : > { %2518 = vmatpush.bf16.msrb.mxu2 %v3226_v16 }
 0xd72   : > { %v2211_v19 = vmul.f32 %v4182_v18, %v4182_v18 }
 0xd74   : > { %2212 = vadd.xlane.f32.xlu0 %v2211_v19 }
 0xd75   : > { %2519 = vmatpush.bf16.msrb.mxu2 %v3225_v28 }
 0xd79   : > { %2520 = vmatpush.bf16.msrb.mxu2 %v3224_v31 }
 0xde7   : > { %v2213_v30 = vpop.xlane.xlu0 %2212 }
 0xde8   : > { %v2214_v63 = vmul.f32 %v2213_v30, %v3976_v17 }
 0xdea   : > { %v2215_v3 = vadd.f32 1e-05, %v2214_v63  ;;  %v3355_v63 = vld [vmem:[%s4317_s24] ss:$0 sm:$0xff] }
 0xdec   : > { %3395 = vrsqrt.f32 %v2215_v3  ;;  %vm2222_vm5 = vweird.f32 %v2215_v3 }
 0xdf2   : > { %v3396_v11 = vpop.eup %3395 }
 0xdf3   : > { %v2217_v12 = vmul.f32 %v3396_v11, %v2215_v3  ;;  %vm2223_vm4 = vweird.f32 %v3396_v11 }
 0xdf4   : > { %vm2224_vm9 = vmor %vm2222_vm5, %vm2223_vm4 }
 0xdf5   : > { %v2218_v14 = vmul.f32 %v3396_v11, %v2217_v12 }
 0xdf7   : > { %v2219_v15 = vmul.f32 0.5, %v2218_v14 }
 0xdf9   : > { %v2220_v19 = vsub.f32 1.5, %v2219_v15 }
 0xdfb   : > { %v2221_v21 = vmul.f32 %v3396_v11, %v2220_v19 }
 0xdfd   : > { %v2225_v22 = vsel %vm2224_vm9, %v3396_v11, %v2221_v21 }
 0xdfe   : > { %v2226_v23 = vmul.f32 %v2225_v22, %v4182_v18  ;;  %v2252_v18 = vld [vmem:[%s4316_s7] sm:$0x3]  ;;  %s2559_s7 = scalar_lea.sflag [#allocation7], %s854_s8 }
 0xdff   : > { %v2255_v33 = vperm.slane %v2252_v18, 1  ;;  %v2254_v36 = vperm.slane %v2252_v18, 0 }
 0xe00   : > { %v2230_v25 = vmul.f32 %v3352_v46, %v2226_v23 }
 0xe02   : > { %v2234_v26 = vadd.f32 %v3353_v24, %v2230_v25 }
 0xe04   : > { %v2235_v27 = vpack.c.bf16 %v2234_v26, %v2234_v26 }
 0xe06   : > { %2346 = vmatmul.bf16.vlgmr.msra.gmra.mxu3 %v2235_v27  ;;  %2359 = vmatmul.bf16.vlgmr.msra.gmra.mxu0 %v2235_v27 }
 0xe83   : > { %v2360_v34 = vpop.f32.mrf.mxu0 }
 0xe84   : > { %v2361_v4 = vadd.f32 %v2360_v34, %v2255_v33 }
 0xe86   : > { %v2365_v35 = vmax.f32 %v2361_v4, 0.0 }
 0xe88   : > { %v2367_v37 = vpack.c.bf16 %v2365_v35, %v2365_v35 }
 0xe89   : > { %v2347_v38 = vpop.f32.mrf.mxu3 }
 0xe8a   : > { %v2348_v39 = vadd.f32 %v2347_v38, %v2254_v36  ;;  %2521 = vmatmul.bf16.vlgmr.msrb.gmra.mxu2 %v2367_v37 }
 0xe8b   : > { %v2362_v40 = vpop.f32.mrf.mxu0 }
 0xe8c   : > { %v2364_v41 = vmax.f32 %v2348_v39, 0.0 }
 0xe8e   : > { %v2366_v2 = vpack.c.bf16 %v2364_v41, %v2364_v41 }
 0xe90   : > { %2508 = vmatmul.bf16.vlgmr.msrb.gmra.mxu1 %v2366_v2 }
 0xe91   : > { %v2349_v5 = vpop.f32.mrf.mxu3 }
 0xf0d   : > { %v2509_v43 = vpop.f32.mrf.mxu1  ;;  %v2522_v44 = vpop.f32.mrf.mxu2 }
 0xf0e   : > { %v2510_v45 = vadd.f32 %v3354_v42, %v2509_v43 }
 0xf10   : > { %v2523_v20 = vadd.f32 %v2522_v44, %v2510_v45 }
 0xf12   : > { %v2526_v48 = vadd.f32 %v2523_v20, %v4177_v8 }
 0xf14   : > { %2529 = vadd.xlane.f32.xlu1 %v2526_v48 }
 0xf15   : > { %v2511_v49 = vpop.f32.mrf.mxu1  ;;  %v2524_v50 = vpop.f32.mrf.mxu2 }
 0xf87   : > { %v2530_v51 = vpop.xlane.xlu1 %2529 }
 0xf88   : > { %v2531_v52 = vmul.f32 %v2530_v51, %v3976_v17 }
 0xf8a   : > { %v2532_v53 = vsub.f32 %v2526_v48, %v2531_v52 }
 0xf8c   : > { %v2533_v55 = vmul.f32 %v2532_v53, %v2532_v53 }
 0xf8e   : > { %2534 = vadd.xlane.f32.xlu2 %v2533_v55 }
0x1001   : > { %v2535_v56 = vpop.xlane.xlu2 %2534 }
0x1002   : > { %v2536_v57 = vmul.f32 %v2535_v56, %v3976_v17 }
0x1004   : > { %v2537_v58 = vadd.f32 1e-05, %v2536_v57 }
0x1006   : > { %3397 = vrsqrt.f32 %v2537_v58  ;;  %vm2544_vm7 = vweird.f32 %v2537_v58 }
0x100c   : > { %v3398_v59 = vpop.eup %3397 }
0x100d   : > { %v2539_v60 = vmul.f32 %v3398_v59, %v2537_v58  ;;  %vm2545_vm6 = vweird.f32 %v3398_v59 }
0x100e   : > { %vm2546_vm8 = vmor %vm2544_vm7, %vm2545_vm6 }
0x100f   : > { %v2540_v61 = vmul.f32 %v3398_v59, %v2539_v60 }
0x1011   : > { %v2541_v8 = vmul.f32 0.5, %v2540_v61 }
0x1013   : > { %v2542_v62 = vsub.f32 1.5, %v2541_v8 }
0x1015   : > { %v2543_v30 = vmul.f32 %v3398_v59, %v2542_v62 }
0x1017   : > { %v2547_v17 = vsel %vm2546_vm8, %v3398_v59, %v2543_v30 }
0x1018   : > { %v2548_v54 = vmul.f32 %v2547_v17, %v2532_v53 }
0x101a   : > { %v2552_v3 = vmul.f32 %v3355_v63, %v2548_v54 }
0x101c   : > { %v2556_v6 = vadd.f32 %v3356_v0, %v2552_v3 }
0x101e   : > { %2557 = vst [vmem:[%s856_s11] sm:$0xff] %v2556_v6 }
0x101f   : > { %3630 = shalt.err (!%p3627_p8)
}
0x1020   : > { %3256 = dma.vmem_to_hbm [thread:$0]  (%p3883_p5), %s2572_s21, 128, %s2574_s4, %s2559_s7  }
0x1021 PF: > { %s4321_s8 = sld [smem:[#allocation25_spill]] }
0x1022   : > { %s4322_s25 = sld [smem:[#allocation23_spill]] }
0x1027   : > { %p3293_p9 = scmp.ge.s32.totalorder %s4321_s8, 2 }
0x1028   : > { %s2585_s28 = sand.u32 1, %s4322_s25  }
0x1029   : > { %p3278_p10 = pnand %p3293_p9, %p3887_p6  ;;  %s2586_s9 = scalar_lea.sflag [#allocation7], %s2585_s28 }
0x102b   : > { %p3279_p11 = pneg %p3278_p10 }
0x102d   : > { %3666 = dma.done.wait (%p3279_p11), %s2586_s9, 128  }
0x102e   : > { %3668 = vsyncadd (%p3279_p11), %s2586_s9, 4294967168  ;;  %s4324_s3 = sld [smem:[#allocation26_spill]]  ;;  %s4327_s10 = smov %s3675_s30 }
0x102f   : > { %s4325_s5 = sld [smem:[#allocation24_spill]] }
0x1030   : > { %s4326_s1 = sld [smem:[#allocation27_spill]] }
0x1034   : > { %p53_p12 = scmp.ge.s32.totalorder %s4324_s3, 4  }
0x1035   : > { %s4328_s30 = smov %s4325_s5 }
0x1036   :  { %55 = sbr.rel (!%p53_p12) target bundleno = 36 (0x24), region = 179 }
0x103b   :  { %2592 = vsyncpa [#allocation6], 1 }
0x103c   :  { %2594 = vsyncpa [#allocation6 + $0x1], 1 }
0x103d   :  { %2595 = vsyncpa [#allocation9], 1 }
0x103e   :  { %2596 = vsyncpa [#allocation12], 1 }
0x103f   :  { %2597 = vsyncpa [#allocation15], 1 }
0x1040   :  { %2598 = vsyncpa [#allocation7], 1 }
0x1041   :  { %2600 = vsyncpa [#allocation7 + $0x1], 1 }

</bundles_post_ra>
